<compile_context>
chip_gen: v6e
topology: v6e:2x2x1
jax: 0.10.0
libtpu: 0.0.40
codegen_flags: <defaults>
</compile_context>

<pallas_src>
import functools
import math

import jax
import jax.numpy as jnp
from jax import lax
from jax.experimental import pallas as pl
from jax.experimental.pallas import tpu as pltpu

NEG_INF = -1e9
LN_EPS = 1e-5


def _softmax(s):
    m = jnp.max(s, axis=-1, keepdims=True)
    e = jnp.exp(s - m)
    return e * pl.reciprocal(jnp.sum(e, axis=-1, keepdims=True), approx=True)


def _layer_norm(v, g, b):
    mu = jnp.mean(v, axis=-1, keepdims=True)
    c = v - mu
    var = jnp.mean(c * c, axis=-1, keepdims=True)
    return g * (c * lax.rsqrt(var + LN_EPS)) + b


def _mha(q_scaled, k, v, bias, n_heads, head_dim):
    """Multi-head attention on already-projected, already-scaled q and full-width k/v."""
    outs = []
    for h in range(n_heads):
        sl = slice(h * head_dim, (h + 1) * head_dim)
        s = jnp.dot(q_scaled[:, sl], k[:, sl].T, preferred_element_type=jnp.float32) + bias
        outs.append(jnp.dot(_softmax(s), v[:, sl], preferred_element_type=jnp.float32))
    return jnp.concatenate(outs, axis=-1)


def _dec_kernel(x_ref, genc_ref, gcode_ref, onehot_ref, tmask_ref, gmask_ref, cmask_ref,
                eln_g_ref, eln_b_ref,
                w_sqkv_ref, b_sqkv_ref, w_so_ref, b_so_ref,
                w_cq_ref, b_cq_ref, w_ckv_ref, b_ckv_ref, w_co_ref, b_co_ref,
                ln_g_ref, ln_b_ref,
                w_ff1_ref, b_ff1_ref, w_ff2_ref, b_ff2_ref,
                w_gen_ref, b_gen_ref,
                w_cpq_ref, b_cpq_ref, w_cpk_ref, b_cpk_ref,
                w_pg_ref, b_pg_ref,
                out_ref, *, n_layers, n_heads, head_dim, emb_dims):
    D, H, dh = emb_dims, n_heads, head_dim
    scale = 1.0 / math.sqrt(dh)

    x = x_ref[0]            # (T, D)  sqrt(D)*token_emb + pos_emb
    genc = genc_ref[0]      # (S, Dk) graph encoding (cross-attention keys)
    gcode = gcode_ref[0]    # (Sc, Dk) code-node encoding (copy source)
    onehot = onehot_ref[0]  # (Sc, V)  one-hot of code_src_map (copy scatter matrix)
    tmask = tmask_ref[0]    # (1, T)
    gmask = gmask_ref[0]    # (1, S)
    cmask = cmask_ref[0]    # (1, Sc)
    T = x.shape[0]

    # embedding LayerNorm (dropout p=0 is identity)
    x = _layer_norm(x, eln_g_ref[...], eln_b_ref[...])

    # attention bias terms (hoisted out of the layer loop)
    row = lax.broadcasted_iota(jnp.int32, (T, T), 0)
    col = lax.broadcasted_iota(jnp.int32, (T, T), 1)
    causal = (col <= row).astype(jnp.float32)
    bias_self = (1.0 - causal * tmask) * NEG_INF    # (T, T) causal + text key pad mask
    bias_cross = (1.0 - gmask) * NEG_INF            # (1, S)
    bias_copy = (1.0 - cmask) * NEG_INF             # (1, Sc)

    # decoder layers: static Python loop -> all stacked-weight slices are static.
    for l in range(n_layers):
        lg, lb = ln_g_ref[l], ln_b_ref[l]           # (3, D) each

        # --- causal self-attention (packed QKV matmul) ---
        qkv = jnp.dot(x, w_sqkv_ref[l], preferred_element_type=jnp.float32) + b_sqkv_ref[l]
        ctx = _mha(qkv[:, :D] * scale, qkv[:, D:2 * D], qkv[:, 2 * D:], bias_self, H, dh)
        attn = jnp.dot(ctx, w_so_ref[l], preferred_element_type=jnp.float32) + b_so_ref[l]
        x = _layer_norm(x + attn, lg[0:1], lb[0:1])

        # --- cross-attention over graph_enc (packed KV matmul) ---
        q = jnp.dot(x, w_cq_ref[l], preferred_element_type=jnp.float32) + b_cq_ref[l]
        kv = jnp.dot(genc, w_ckv_ref[l], preferred_element_type=jnp.float32) + b_ckv_ref[l]
        ctx = _mha(q * scale, kv[:, :D], kv[:, D:], bias_cross, H, dh)
        attn = jnp.dot(ctx, w_co_ref[l], preferred_element_type=jnp.float32) + b_co_ref[l]
        x = _layer_norm(x + attn, lg[1:2], lb[1:2])

        # --- position-wise feed forward ---
        h1 = jnp.maximum(
            jnp.dot(x, w_ff1_ref[l], preferred_element_type=jnp.float32) + b_ff1_ref[l], 0.0)
        ffn = jnp.dot(h1, w_ff2_ref[l], preferred_element_type=jnp.float32) + b_ff2_ref[l]
        x = _layer_norm(x + ffn, lg[2:3], lb[2:3])

    # --- copy generator (out_fc is unused when copy=True, matching the module default) ---
    p_vocab = _softmax(
        jnp.dot(x, w_gen_ref[...], preferred_element_type=jnp.float32) + b_gen_ref[...])  # (T, V)

    cq = (jnp.dot(x, w_cpq_ref[...], preferred_element_type=jnp.float32)
          + b_cpq_ref[...]) * scale                                                       # (T, H*dh)
    ck = jnp.dot(gcode, w_cpk_ref[...], preferred_element_type=jnp.float32) + b_cpk_ref[...]  # (Sc, H*dh)

    copy_attn = None
    for h in range(H):                      # average attention weights over heads
        sl = slice(h * dh, (h + 1) * dh)
        s = jnp.dot(cq[:, sl], ck[:, sl].T, preferred_element_type=jnp.float32) + bias_copy
        p = _softmax(s)
        copy_attn = p if copy_attn is None else copy_attn + p
    copy_attn = copy_attn * (1.0 / H)                                                    # (T, Sc)

    # scatter the copy distribution into the vocab via a single one-hot matmul (MXU)
    copy_vocab = jnp.dot(copy_attn, onehot, preferred_element_type=jnp.float32)          # (T, V)

    # generation / copy gate
    z = jnp.sum(x * w_pg_ref[...], axis=-1, keepdims=True) + b_pg_ref[...]               # (T, 1)
    p_gen = 1.0 / (1.0 + jnp.exp(-z))

    out_ref[0] = p_gen * p_vocab + (1.0 - p_gen) * copy_vocab   # lane-dense (T, V) store


def dec_forward(params, graph_enc, graph_code_enc, code_src_map, text_input, *, n_heads):
    B, T = text_input.shape
    D = params["emb"].shape[1]
    S, Dk = graph_enc.shape[1], graph_enc.shape[2]
    Sc = graph_code_enc.shape[1]
    V = params["w_gen"].shape[1]
    L = params["w_sqkv"].shape[0]
    F = params["w_ff1"].shape[-1]
    H = n_heads
    dh = D // H

    # --- JAX glue: embeddings, trainable positional encoding (pad_idx=0), masks, one-hot ---
    text_emb = params["emb"][text_input] * math.sqrt(D)
    pos_ids = jnp.where(text_input != 0, jnp.arange(1, T + 1, dtype=jnp.int32)[None, :], 0)
    x = text_emb + params["pos"][pos_ids]                                          # (B, T, D)

    text_mask = (text_input != 0).astype(jnp.float32)[:, None, :]                  # (B, 1, T)
    graph_mask = jnp.sign(jnp.sum(jnp.abs(graph_enc), axis=-1))[:, None, :]        # (B, 1, S)
    code_mask = (code_src_map != 0).astype(jnp.float32)[:, None, :]                # (B, 1, Sc)
    onehot = (code_src_map[:, :, None]
              == jnp.arange(V, dtype=code_src_map.dtype)[None, None, :]).astype(jnp.float32)

    kern = functools.partial(_dec_kernel, n_layers=L, n_heads=H, head_dim=dh, emb_dims=D)
    per = lambda shape: pl.BlockSpec(shape, lambda b: (b,) + (0,) * (len(shape) - 1))
    rep = lambda shape: pl.BlockSpec(shape, lambda b: (0,) * len(shape))  # resident weights

    out_btv = pl.pallas_call(
        kern,
        out_shape=jax.ShapeDtypeStruct((B, T, V), jnp.float32),
        grid_spec=pltpu.PrefetchScalarGridSpec(
            num_scalar_prefetch=0,
            grid=(B,),
            in_specs=[
                per((1, T, D)), per((1, S, Dk)), per((1, Sc, Dk)), per((1, Sc, V)),
                per((1, 1, T)), per((1, 1, S)), per((1, 1, Sc)),
                rep((1, D)), rep((1, D)),
                rep((L, D, 3 * D)), rep((L, 1, 3 * D)),
                rep((L, D, D)), rep((L, 1, D)),
                rep((L, D, D)), rep((L, 1, D)),
                rep((L, Dk, 2 * D)), rep((L, 1, 2 * D)),
                rep((L, D, D)), rep((L, 1, D)),
                rep((L, 3, D)), rep((L, 3, D)),
                rep((L, D, F)), rep((L, 1, F)),
                rep((L, F, D)), rep((L, 1, D)),
                rep((D, V)), rep((1, V)),
                rep((D, H * dh)), rep((1, H * dh)),
                rep((Dk, H * dh)), rep((1, H * dh)),
                rep((1, D)), rep((1, 1)),
            ],
            out_specs=pl.BlockSpec((1, T, V), lambda b: (b, 0, 0)),
        ),
        compiler_params=pltpu.CompilerParams(dimension_semantics=("parallel",)),
    )(x, graph_enc, graph_code_enc, onehot, text_mask, graph_mask, code_mask,
      params["eln_g"], params["eln_b"],
      params["w_sqkv"], params["b_sqkv"], params["w_so"], params["b_so"],
      params["w_cq"], params["b_cq"], params["w_ckv"], params["b_ckv"],
      params["w_co"], params["b_co"],
      params["ln_g"], params["ln_b"],
      params["w_ff1"], params["b_ff1"], params["w_ff2"], params["b_ff2"],
      params["w_gen"], params["b_gen"],
      params["w_cpq"], params["b_cpq"], params["w_cpk"], params["b_cpk"],
      params["w_pg"], params["b_pg"])

    # torch: text_output.transpose(1, 2)  ->  (B, V, T)
    return jnp.transpose(out_btv, (0, 2, 1))


def init_params(key, *, emb_dims, enc_out_dims, text_voc_size, text_max_len,
                att_layers, att_heads, ff_hid_dims):
    D, Dk, V, L, H, F = emb_dims, enc_out_dims, text_voc_size, att_layers, att_heads, ff_hid_dims
    dh = D // H
    ks = iter(jax.random.split(key, 16))
    dense = lambda k, fan_in, shape: jax.random.normal(k, shape, jnp.float32) / math.sqrt(fan_in)

    emb = jax.random.normal(next(ks), (V, D), jnp.float32) * 0.02
    emb = emb.at[0].set(0.0)                                   # pad_idx = 0
    pos = jax.random.normal(next(ks), (text_max_len + 1, D), jnp.float32) * 0.02
    pos = pos.at[0].set(0.0)                                   # pad position

    return {
        "emb": emb, "pos": pos,
        "eln_g": jnp.ones((1, D), jnp.float32), "eln_b": jnp.zeros((1, D), jnp.float32),
        "w_sqkv": dense(next(ks), D, (L, D, 3 * D)), "b_sqkv": jnp.zeros((L, 1, 3 * D), jnp.float32),
        "w_so": dense(next(ks), D, (L, D, D)), "b_so": jnp.zeros((L, 1, D), jnp.float32),
        "w_cq": dense(next(ks), D, (L, D, D)), "b_cq": jnp.zeros((L, 1, D), jnp.float32),
        "w_ckv": dense(next(ks), Dk, (L, Dk, 2 * D)), "b_ckv": jnp.zeros((L, 1, 2 * D), jnp.float32),
        "w_co": dense(next(ks), D, (L, D, D)), "b_co": jnp.zeros((L, 1, D), jnp.float32),
        "ln_g": jnp.ones((L, 3, D), jnp.float32), "ln_b": jnp.zeros((L, 3, D), jnp.float32),
        "w_ff1": dense(next(ks), D, (L, D, F)), "b_ff1": jnp.zeros((L, 1, F), jnp.float32),
        "w_ff2": dense(next(ks), F, (L, F, D)), "b_ff2": jnp.zeros((L, 1, D), jnp.float32),
        "w_gen": dense(next(ks), D, (D, V)), "b_gen": jnp.zeros((1, V), jnp.float32),
        "w_cpq": dense(next(ks), D, (D, H * dh)), "b_cpq": jnp.zeros((1, H * dh), jnp.float32),
        "w_cpk": dense(next(ks), Dk, (Dk, H * dh)), "b_cpk": jnp.zeros((1, H * dh), jnp.float32),
        "w_pg": dense(next(ks), D, (1, D)), "b_pg": jnp.zeros((1, 1), jnp.float32),
    }


if __name__ == "__main__":
    B = 2
    TEXT_MAX_LEN = 8       # T
    GRAPH_MAX_SIZE = 16    # S
    CODE_MAX_LEN = 8       # Sc
    EMB_DIMS = 32          # D
    ENC_OUT_DIMS = 32      # Dk (enc_out_dims)
    TEXT_VOC_SIZE = 128    # V (multiple of 128 -> lane-dense output store)
    ATT_LAYERS = 2
    ATT_HEADS = 4
    FF_HID_DIMS = 64

    key = jax.random.PRNGKey(0)
    kp, kt, kg, kc, ks = jax.random.split(key, 5)

    params = init_params(kp, emb_dims=EMB_DIMS, enc_out_dims=ENC_OUT_DIMS,
                         text_voc_size=TEXT_VOC_SIZE, text_max_len=TEXT_MAX_LEN,
                         att_layers=ATT_LAYERS, att_heads=ATT_HEADS, ff_hid_dims=FF_HID_DIMS)

    # text tokens (pad_idx = 0), different lengths per batch element
    text_len = jnp.array([8, 5], jnp.int32)
    tvalid = jnp.arange(TEXT_MAX_LEN)[None, :] < text_len[:, None]
    text_input = jnp.where(
        tvalid, jax.random.randint(kt, (B, TEXT_MAX_LEN), 1, TEXT_VOC_SIZE, jnp.int32), 0)

    # encoder outputs: padded graph / code slots zeroed (this drives graph_mask / code pad mask)
    graph_len = jnp.array([16, 11], jnp.int32)
    gvalid = (jnp.arange(GRAPH_MAX_SIZE)[None, :] < graph_len[:, None]).astype(jnp.float32)
    graph_enc = (jax.random.normal(kg, (B, GRAPH_MAX_SIZE, ENC_OUT_DIMS), jnp.float32)
                 * gvalid[:, :, None])

    code_len = jnp.array([8, 5], jnp.int32)
    cvalid = jnp.arange(CODE_MAX_LEN)[None, :] < code_len[:, None]
    graph_code_enc = (jax.random.normal(kc, (B, CODE_MAX_LEN, ENC_OUT_DIMS), jnp.float32)
                      * cvalid[:, :, None].astype(jnp.float32))
    code_src_map = jnp.where(
        cvalid, jax.random.randint(ks, (B, CODE_MAX_LEN), 1, TEXT_VOC_SIZE, jnp.int32), 0)

    fwd = jax.jit(lambda ge, gce, csm, ti: dec_forward(params, ge, gce, csm, ti,
                                                       n_heads=ATT_HEADS))
    out = fwd(graph_enc, graph_code_enc, code_src_map, text_input)
    jax.block_until_ready(out)

    assert out.shape == (B, TEXT_VOC_SIZE, TEXT_MAX_LEN)        # (B, voc, T) after transpose(1,2)
    assert bool(jnp.all(jnp.isfinite(out)))
    # gated mixture of two softmaxes -> each (b, :, t) column is a probability distribution
    sums = jnp.sum(out, axis=1)
    assert bool(jnp.all(jnp.abs(sums - 1.0) < 5e-2))
    print("KERNEL_OK")
</pallas_src>

<mosaic_0001>
module attributes {stable_mosaic.version = 11 : i64} {
  func.func @_dec_kernel(%arg0: i32, %arg1: memref<1x8x32xf32, #tpu.memory_space<vmem>>, %arg2: memref<1x16x32xf32, #tpu.memory_space<vmem>>, %arg3: memref<1x8x32xf32, #tpu.memory_space<vmem>>, %arg4: memref<1x8x128xf32, #tpu.memory_space<vmem>>, %arg5: memref<1x1x8xf32, #tpu.memory_space<vmem>>, %arg6: memref<1x1x16xf32, #tpu.memory_space<vmem>>, %arg7: memref<1x1x8xf32, #tpu.memory_space<vmem>>, %arg8: memref<1x32xf32, #tpu.memory_space<vmem>>, %arg9: memref<1x32xf32, #tpu.memory_space<vmem>>, %arg10: memref<2x32x96xf32, #tpu.memory_space<vmem>>, %arg11: memref<2x1x96xf32, #tpu.memory_space<vmem>>, %arg12: memref<2x32x32xf32, #tpu.memory_space<vmem>>, %arg13: memref<2x1x32xf32, #tpu.memory_space<vmem>>, %arg14: memref<2x32x32xf32, #tpu.memory_space<vmem>>, %arg15: memref<2x1x32xf32, #tpu.memory_space<vmem>>, %arg16: memref<2x32x64xf32, #tpu.memory_space<vmem>>, %arg17: memref<2x1x64xf32, #tpu.memory_space<vmem>>, %arg18: memref<2x32x32xf32, #tpu.memory_space<vmem>>, %arg19: memref<2x1x32xf32, #tpu.memory_space<vmem>>, %arg20: memref<2x3x32xf32, #tpu.memory_space<vmem>>, %arg21: memref<2x3x32xf32, #tpu.memory_space<vmem>>, %arg22: memref<2x32x64xf32, #tpu.memory_space<vmem>>, %arg23: memref<2x1x64xf32, #tpu.memory_space<vmem>>, %arg24: memref<2x64x32xf32, #tpu.memory_space<vmem>>, %arg25: memref<2x1x32xf32, #tpu.memory_space<vmem>>, %arg26: memref<32x128xf32, #tpu.memory_space<vmem>>, %arg27: memref<1x128xf32, #tpu.memory_space<vmem>>, %arg28: memref<32x32xf32, #tpu.memory_space<vmem>>, %arg29: memref<1x32xf32, #tpu.memory_space<vmem>>, %arg30: memref<32x32xf32, #tpu.memory_space<vmem>>, %arg31: memref<1x32xf32, #tpu.memory_space<vmem>>, %arg32: memref<1x32xf32, #tpu.memory_space<vmem>>, %arg33: memref<1x1xf32, #tpu.memory_space<vmem>>, %arg34: memref<1x8x128xf32, #tpu.memory_space<vmem>>) attributes {dimension_semantics = [#tpu.dimension_semantics<parallel>], iteration_bounds = array<i64: 2>, scalar_prefetch = 0 : i64, scratch_operands = 0 : i64, tpu.core_type = #tpu.core_type<tc>, window_params = [{transform_indices = @transform_0, window_bounds = array<i64: 1, 8, 32>}, {transform_indices = @transform_1, window_bounds = array<i64: 1, 16, 32>}, {transform_indices = @transform_2, window_bounds = array<i64: 1, 8, 32>}, {transform_indices = @transform_3, window_bounds = array<i64: 1, 8, 128>}, {transform_indices = @transform_4, window_bounds = array<i64: 1, 1, 8>}, {transform_indices = @transform_5, window_bounds = array<i64: 1, 1, 16>}, {transform_indices = @transform_6, window_bounds = array<i64: 1, 1, 8>}, {pipeline_mode = #tpu.pipeline_mode<synchronous>, transform_indices = @transform_7, window_bounds = array<i64: 1, 32>}, {pipeline_mode = #tpu.pipeline_mode<synchronous>, transform_indices = @transform_8, window_bounds = array<i64: 1, 32>}, {pipeline_mode = #tpu.pipeline_mode<synchronous>, transform_indices = @transform_9, window_bounds = array<i64: 2, 32, 96>}, {pipeline_mode = #tpu.pipeline_mode<synchronous>, transform_indices = @transform_10, window_bounds = array<i64: 2, 1, 96>}, {pipeline_mode = #tpu.pipeline_mode<synchronous>, transform_indices = @transform_11, window_bounds = array<i64: 2, 32, 32>}, {pipeline_mode = #tpu.pipeline_mode<synchronous>, transform_indices = @transform_12, window_bounds = array<i64: 2, 1, 32>}, {pipeline_mode = #tpu.pipeline_mode<synchronous>, transform_indices = @transform_13, window_bounds = array<i64: 2, 32, 32>}, {pipeline_mode = #tpu.pipeline_mode<synchronous>, transform_indices = @transform_14, window_bounds = array<i64: 2, 1, 32>}, {pipeline_mode = #tpu.pipeline_mode<synchronous>, transform_indices = @transform_15, window_bounds = array<i64: 2, 32, 64>}, {pipeline_mode = #tpu.pipeline_mode<synchronous>, transform_indices = @transform_16, window_bounds = array<i64: 2, 1, 64>}, {pipeline_mode = #tpu.pipeline_mode<synchronous>, transform_indices = @transform_17, window_bounds = array<i64: 2, 32, 32>}, {pipeline_mode = #tpu.pipeline_mode<synchronous>, transform_indices = @transform_18, window_bounds = array<i64: 2, 1, 32>}, {pipeline_mode = #tpu.pipeline_mode<synchronous>, transform_indices = @transform_19, window_bounds = array<i64: 2, 3, 32>}, {pipeline_mode = #tpu.pipeline_mode<synchronous>, transform_indices = @transform_20, window_bounds = array<i64: 2, 3, 32>}, {pipeline_mode = #tpu.pipeline_mode<synchronous>, transform_indices = @transform_21, window_bounds = array<i64: 2, 32, 64>}, {pipeline_mode = #tpu.pipeline_mode<synchronous>, transform_indices = @transform_22, window_bounds = array<i64: 2, 1, 64>}, {pipeline_mode = #tpu.pipeline_mode<synchronous>, transform_indices = @transform_23, window_bounds = array<i64: 2, 64, 32>}, {pipeline_mode = #tpu.pipeline_mode<synchronous>, transform_indices = @transform_24, window_bounds = array<i64: 2, 1, 32>}, {pipeline_mode = #tpu.pipeline_mode<synchronous>, transform_indices = @transform_25, window_bounds = array<i64: 32, 128>}, {pipeline_mode = #tpu.pipeline_mode<synchronous>, transform_indices = @transform_26, window_bounds = array<i64: 1, 128>}, {pipeline_mode = #tpu.pipeline_mode<synchronous>, transform_indices = @transform_27, window_bounds = array<i64: 32, 32>}, {pipeline_mode = #tpu.pipeline_mode<synchronous>, transform_indices = @transform_28, window_bounds = array<i64: 1, 32>}, {pipeline_mode = #tpu.pipeline_mode<synchronous>, transform_indices = @transform_29, window_bounds = array<i64: 32, 32>}, {pipeline_mode = #tpu.pipeline_mode<synchronous>, transform_indices = @transform_30, window_bounds = array<i64: 1, 32>}, {pipeline_mode = #tpu.pipeline_mode<synchronous>, transform_indices = @transform_31, window_bounds = array<i64: 1, 32>}, {pipeline_mode = #tpu.pipeline_mode<synchronous>, transform_indices = @transform_32, window_bounds = array<i64: 1, 1>}, {transform_indices = @transform_33, window_bounds = array<i64: 1, 8, 128>}]} {
    %c0 = arith.constant 0 : index
    %c0_0 = arith.constant 0 : index
    %c0_1 = arith.constant 0 : index
    %0 = vector.load %arg1[%c0, %c0_0, %c0_1] : memref<1x8x32xf32, #tpu.memory_space<vmem>>, vector<1x8x32xf32>
    %1 = vector.shape_cast %0 : vector<1x8x32xf32> to vector<8x32xf32>
    %c0_2 = arith.constant 0 : index
    %c0_3 = arith.constant 0 : index
    %c0_4 = arith.constant 0 : index
    %2 = vector.load %arg2[%c0_2, %c0_3, %c0_4] : memref<1x16x32xf32, #tpu.memory_space<vmem>>, vector<1x16x32xf32>
    %3 = vector.shape_cast %2 : vector<1x16x32xf32> to vector<16x32xf32>
    %c0_5 = arith.constant 0 : index
    %c0_6 = arith.constant 0 : index
    %c0_7 = arith.constant 0 : index
    %4 = vector.load %arg3[%c0_5, %c0_6, %c0_7] : memref<1x8x32xf32, #tpu.memory_space<vmem>>, vector<1x8x32xf32>
    %5 = vector.shape_cast %4 : vector<1x8x32xf32> to vector<8x32xf32>
    %c0_8 = arith.constant 0 : index
    %c0_9 = arith.constant 0 : index
    %c0_10 = arith.constant 0 : index
    %6 = vector.load %arg4[%c0_8, %c0_9, %c0_10] : memref<1x8x128xf32, #tpu.memory_space<vmem>>, vector<1x8x128xf32>
    %7 = vector.shape_cast %6 : vector<1x8x128xf32> to vector<8x128xf32>
    %c0_11 = arith.constant 0 : index
    %c0_12 = arith.constant 0 : index
    %c0_13 = arith.constant 0 : index
    %8 = vector.load %arg5[%c0_11, %c0_12, %c0_13] : memref<1x1x8xf32, #tpu.memory_space<vmem>>, vector<1x1x8xf32>
    %9 = vector.shape_cast %8 : vector<1x1x8xf32> to vector<1x8xf32>
    %c0_14 = arith.constant 0 : index
    %c0_15 = arith.constant 0 : index
    %c0_16 = arith.constant 0 : index
    %10 = vector.load %arg6[%c0_14, %c0_15, %c0_16] : memref<1x1x16xf32, #tpu.memory_space<vmem>>, vector<1x1x16xf32>
    %11 = vector.shape_cast %10 : vector<1x1x16xf32> to vector<1x16xf32>
    %c0_17 = arith.constant 0 : index
    %c0_18 = arith.constant 0 : index
    %c0_19 = arith.constant 0 : index
    %12 = vector.load %arg7[%c0_17, %c0_18, %c0_19] : memref<1x1x8xf32, #tpu.memory_space<vmem>>, vector<1x1x8xf32>
    %13 = vector.shape_cast %12 : vector<1x1x8xf32> to vector<1x8xf32>
    %c0_20 = arith.constant 0 : index
    %c0_21 = arith.constant 0 : index
    %14 = vector.load %arg8[%c0_20, %c0_21] : memref<1x32xf32, #tpu.memory_space<vmem>>, vector<1x32xf32>
    %c0_22 = arith.constant 0 : index
    %c0_23 = arith.constant 0 : index
    %15 = vector.load %arg9[%c0_22, %c0_23] : memref<1x32xf32, #tpu.memory_space<vmem>>, vector<1x32xf32>
    %cst = arith.constant dense<0.000000e+00> : vector<8xf32>
    %16 = vector.multi_reduction <add>, %1, %cst [1] : vector<8x32xf32> to vector<8xf32>
    %17 = vector.shape_cast %16 : vector<8xf32> to vector<8x1xf32>
    %cst_24 = arith.constant 3.200000e+01 : f32
    %18 = vector.broadcast %cst_24 : f32 to vector<8x1xf32>
    %19 = arith.divf %17, %18 : vector<8x1xf32>
    %20 = vector.broadcast %19 : vector<8x1xf32> to vector<8x32xf32>
    %21 = arith.subf %1, %20 : vector<8x32xf32>
    %22 = arith.mulf %21, %21 : vector<8x32xf32>
    %cst_25 = arith.constant dense<0.000000e+00> : vector<8xf32>
    %23 = vector.multi_reduction <add>, %22, %cst_25 [1] : vector<8x32xf32> to vector<8xf32>
    %24 = vector.shape_cast %23 : vector<8xf32> to vector<8x1xf32>
    %cst_26 = arith.constant 3.200000e+01 : f32
    %25 = vector.broadcast %cst_26 : f32 to vector<8x1xf32>
    %26 = arith.divf %24, %25 : vector<8x1xf32>
    %cst_27 = arith.constant 9.99999974E-6 : f32
    %27 = vector.broadcast %cst_27 : f32 to vector<8x1xf32>
    %28 = arith.addf %26, %27 : vector<8x1xf32>
    %29 = math.rsqrt %28 : vector<8x1xf32>
    %30 = vector.broadcast %29 : vector<8x1xf32> to vector<8x32xf32>
    %31 = arith.mulf %21, %30 : vector<8x32xf32>
    %32 = vector.broadcast %14 : vector<1x32xf32> to vector<8x32xf32>
    %33 = arith.mulf %32, %31 : vector<8x32xf32>
    %34 = vector.broadcast %15 : vector<1x32xf32> to vector<8x32xf32>
    %35 = arith.addf %33, %34 : vector<8x32xf32>
    %36 = tpu.iota {dimensions = array<i32: 0>} : vector<8x8xi32>
    %37 = tpu.iota {dimensions = array<i32: 1>} : vector<8x8xi32>
    %38 = arith.cmpi sle, %37, %36 : vector<8x8xi32>
    %39 = arith.extui %38 : vector<8x8xi1> to vector<8x8xi32>
    %40 = arith.sitofp %39 : vector<8x8xi32> to vector<8x8xf32>
    %41 = vector.broadcast %9 : vector<1x8xf32> to vector<8x8xf32>
    %42 = arith.mulf %40, %41 : vector<8x8xf32>
    %cst_28 = arith.constant 1.000000e+00 : f32
    %43 = vector.broadcast %cst_28 : f32 to vector<8x8xf32>
    %44 = arith.subf %43, %42 : vector<8x8xf32>
    %cst_29 = arith.constant -1.000000e+09 : f32
    %45 = vector.broadcast %cst_29 : f32 to vector<8x8xf32>
    %46 = arith.mulf %44, %45 : vector<8x8xf32>
    %cst_30 = arith.constant 1.000000e+00 : f32
    %47 = vector.broadcast %cst_30 : f32 to vector<1x16xf32>
    %48 = arith.subf %47, %11 : vector<1x16xf32>
    %cst_31 = arith.constant -1.000000e+09 : f32
    %49 = vector.broadcast %cst_31 : f32 to vector<1x16xf32>
    %50 = arith.mulf %48, %49 : vector<1x16xf32>
    %cst_32 = arith.constant 1.000000e+00 : f32
    %51 = vector.broadcast %cst_32 : f32 to vector<1x8xf32>
    %52 = arith.subf %51, %13 : vector<1x8xf32>
    %cst_33 = arith.constant -1.000000e+09 : f32
    %53 = vector.broadcast %cst_33 : f32 to vector<1x8xf32>
    %54 = arith.mulf %52, %53 : vector<1x8xf32>
    %c0_34 = arith.constant 0 : index
    %c0_35 = arith.constant 0 : index
    %c0_36 = arith.constant 0 : index
    %55 = vector.load %arg20[%c0_34, %c0_35, %c0_36] : memref<2x3x32xf32, #tpu.memory_space<vmem>>, vector<1x3x32xf32>
    %56 = vector.shape_cast %55 : vector<1x3x32xf32> to vector<3x32xf32>
    %c0_37 = arith.constant 0 : index
    %c0_38 = arith.constant 0 : index
    %c0_39 = arith.constant 0 : index
    %57 = vector.load %arg21[%c0_37, %c0_38, %c0_39] : memref<2x3x32xf32, #tpu.memory_space<vmem>>, vector<1x3x32xf32>
    %58 = vector.shape_cast %57 : vector<1x3x32xf32> to vector<3x32xf32>
    %c0_40 = arith.constant 0 : index
    %c0_41 = arith.constant 0 : index
    %c0_42 = arith.constant 0 : index
    %59 = vector.load %arg10[%c0_40, %c0_41, %c0_42] : memref<2x32x96xf32, #tpu.memory_space<vmem>>, vector<1x32x96xf32>
    %60 = vector.shape_cast %59 : vector<1x32x96xf32> to vector<32x96xf32>
    %cst_43 = arith.constant dense<0.000000e+00> : vector<8x96xf32>
    %61 = tpu.matmul %35, %60, %cst_43 {dimension_numbers = #tpu.dot_dimension_numbers<[1], [0], [0], [1], [0, 0, 1, 1], [], []>} : vector<8x32xf32>, vector<32x96xf32>, vector<8x96xf32> -> vector<8x96xf32>
    %c0_44 = arith.constant 0 : index
    %c0_45 = arith.constant 0 : index
    %c0_46 = arith.constant 0 : index
    %62 = vector.load %arg11[%c0_44, %c0_45, %c0_46] : memref<2x1x96xf32, #tpu.memory_space<vmem>>, vector<1x1x96xf32>
    %63 = vector.shape_cast %62 : vector<1x1x96xf32> to vector<1x96xf32>
    %64 = vector.broadcast %63 : vector<1x96xf32> to vector<8x96xf32>
    %65 = arith.addf %61, %64 : vector<8x96xf32>
    %66 = vector.extract_strided_slice %65 {offsets = [0, 0], sizes = [8, 32], strides = [1, 1]} : vector<8x96xf32> to vector<8x32xf32>
    %cst_47 = arith.constant 0.353553385 : f32
    %67 = vector.broadcast %cst_47 : f32 to vector<8x32xf32>
    %68 = arith.mulf %66, %67 : vector<8x32xf32>
    %69 = vector.extract_strided_slice %65 {offsets = [0, 32], sizes = [8, 32], strides = [1, 1]} : vector<8x96xf32> to vector<8x32xf32>
    %70 = vector.extract_strided_slice %65 {offsets = [0, 64], sizes = [8, 32], strides = [1, 1]} : vector<8x96xf32> to vector<8x32xf32>
    %71 = vector.extract_strided_slice %68 {offsets = [0, 0], sizes = [8, 8], strides = [1, 1]} : vector<8x32xf32> to vector<8x8xf32>
    %72 = vector.extract_strided_slice %69 {offsets = [0, 0], sizes = [8, 8], strides = [1, 1]} : vector<8x32xf32> to vector<8x8xf32>
    %73 = tpu.transpose %72, [1, 0] : vector<8x8xf32> -> vector<8x8xf32>
    %cst_48 = arith.constant dense<0.000000e+00> : vector<8x8xf32>
    %74 = tpu.matmul %71, %73, %cst_48 {dimension_numbers = #tpu.dot_dimension_numbers<[1], [0], [0], [1], [0, 0, 1, 1], [], []>} : vector<8x8xf32>, vector<8x8xf32>, vector<8x8xf32> -> vector<8x8xf32>
    %75 = arith.addf %74, %46 : vector<8x8xf32>
    %cst_49 = arith.constant dense<0xFF800000> : vector<8xf32>
    %76 = vector.multi_reduction <maximumf>, %75, %cst_49 [1] : vector<8x8xf32> to vector<8xf32>
    %77 = vector.shape_cast %76 : vector<8xf32> to vector<8x1xf32>
    %78 = vector.broadcast %77 : vector<8x1xf32> to vector<8x8xf32>
    %79 = arith.subf %75, %78 : vector<8x8xf32>
    %80 = math.exp %79 : vector<8x8xf32>
    %cst_50 = arith.constant dense<0.000000e+00> : vector<8xf32>
    %81 = vector.multi_reduction <add>, %80, %cst_50 [1] : vector<8x8xf32> to vector<8xf32>
    %82 = vector.shape_cast %81 : vector<8xf32> to vector<8x1xf32>
    %83 = tpu.reciprocal %82 {approx = true} : vector<8x1xf32> -> vector<8x1xf32>
    %84 = vector.broadcast %83 : vector<8x1xf32> to vector<8x8xf32>
    %85 = arith.mulf %80, %84 : vector<8x8xf32>
    %86 = vector.extract_strided_slice %70 {offsets = [0, 0], sizes = [8, 8], strides = [1, 1]} : vector<8x32xf32> to vector<8x8xf32>
    %cst_51 = arith.constant dense<0.000000e+00> : vector<8x8xf32>
    %87 = tpu.matmul %85, %86, %cst_51 {dimension_numbers = #tpu.dot_dimension_numbers<[1], [0], [0], [1], [0, 0, 1, 1], [], []>} : vector<8x8xf32>, vector<8x8xf32>, vector<8x8xf32> -> vector<8x8xf32>
    %88 = vector.extract_strided_slice %68 {offsets = [0, 8], sizes = [8, 8], strides = [1, 1]} : vector<8x32xf32> to vector<8x8xf32>
    %89 = vector.extract_strided_slice %69 {offsets = [0, 8], sizes = [8, 8], strides = [1, 1]} : vector<8x32xf32> to vector<8x8xf32>
    %90 = tpu.transpose %89, [1, 0] : vector<8x8xf32> -> vector<8x8xf32>
    %cst_52 = arith.constant dense<0.000000e+00> : vector<8x8xf32>
    %91 = tpu.matmul %88, %90, %cst_52 {dimension_numbers = #tpu.dot_dimension_numbers<[1], [0], [0], [1], [0, 0, 1, 1], [], []>} : vector<8x8xf32>, vector<8x8xf32>, vector<8x8xf32> -> vector<8x8xf32>
    %92 = arith.addf %91, %46 : vector<8x8xf32>
    %cst_53 = arith.constant dense<0xFF800000> : vector<8xf32>
    %93 = vector.multi_reduction <maximumf>, %92, %cst_53 [1] : vector<8x8xf32> to vector<8xf32>
    %94 = vector.shape_cast %93 : vector<8xf32> to vector<8x1xf32>
    %95 = vector.broadcast %94 : vector<8x1xf32> to vector<8x8xf32>
    %96 = arith.subf %92, %95 : vector<8x8xf32>
    %97 = math.exp %96 : vector<8x8xf32>
    %cst_54 = arith.constant dense<0.000000e+00> : vector<8xf32>
    %98 = vector.multi_reduction <add>, %97, %cst_54 [1] : vector<8x8xf32> to vector<8xf32>
    %99 = vector.shape_cast %98 : vector<8xf32> to vector<8x1xf32>
    %100 = tpu.reciprocal %99 {approx = true} : vector<8x1xf32> -> vector<8x1xf32>
    %101 = vector.broadcast %100 : vector<8x1xf32> to vector<8x8xf32>
    %102 = arith.mulf %97, %101 : vector<8x8xf32>
    %103 = vector.extract_strided_slice %70 {offsets = [0, 8], sizes = [8, 8], strides = [1, 1]} : vector<8x32xf32> to vector<8x8xf32>
    %cst_55 = arith.constant dense<0.000000e+00> : vector<8x8xf32>
    %104 = tpu.matmul %102, %103, %cst_55 {dimension_numbers = #tpu.dot_dimension_numbers<[1], [0], [0], [1], [0, 0, 1, 1], [], []>} : vector<8x8xf32>, vector<8x8xf32>, vector<8x8xf32> -> vector<8x8xf32>
    %105 = vector.extract_strided_slice %68 {offsets = [0, 16], sizes = [8, 8], strides = [1, 1]} : vector<8x32xf32> to vector<8x8xf32>
    %106 = vector.extract_strided_slice %69 {offsets = [0, 16], sizes = [8, 8], strides = [1, 1]} : vector<8x32xf32> to vector<8x8xf32>
    %107 = tpu.transpose %106, [1, 0] : vector<8x8xf32> -> vector<8x8xf32>
    %cst_56 = arith.constant dense<0.000000e+00> : vector<8x8xf32>
    %108 = tpu.matmul %105, %107, %cst_56 {dimension_numbers = #tpu.dot_dimension_numbers<[1], [0], [0], [1], [0, 0, 1, 1], [], []>} : vector<8x8xf32>, vector<8x8xf32>, vector<8x8xf32> -> vector<8x8xf32>
    %109 = arith.addf %108, %46 : vector<8x8xf32>
    %cst_57 = arith.constant dense<0xFF800000> : vector<8xf32>
    %110 = vector.multi_reduction <maximumf>, %109, %cst_57 [1] : vector<8x8xf32> to vector<8xf32>
    %111 = vector.shape_cast %110 : vector<8xf32> to vector<8x1xf32>
    %112 = vector.broadcast %111 : vector<8x1xf32> to vector<8x8xf32>
    %113 = arith.subf %109, %112 : vector<8x8xf32>
    %114 = math.exp %113 : vector<8x8xf32>
    %cst_58 = arith.constant dense<0.000000e+00> : vector<8xf32>
    %115 = vector.multi_reduction <add>, %114, %cst_58 [1] : vector<8x8xf32> to vector<8xf32>
    %116 = vector.shape_cast %115 : vector<8xf32> to vector<8x1xf32>
    %117 = tpu.reciprocal %116 {approx = true} : vector<8x1xf32> -> vector<8x1xf32>
    %118 = vector.broadcast %117 : vector<8x1xf32> to vector<8x8xf32>
    %119 = arith.mulf %114, %118 : vector<8x8xf32>
    %120 = vector.extract_strided_slice %70 {offsets = [0, 16], sizes = [8, 8], strides = [1, 1]} : vector<8x32xf32> to vector<8x8xf32>
    %cst_59 = arith.constant dense<0.000000e+00> : vector<8x8xf32>
    %121 = tpu.matmul %119, %120, %cst_59 {dimension_numbers = #tpu.dot_dimension_numbers<[1], [0], [0], [1], [0, 0, 1, 1], [], []>} : vector<8x8xf32>, vector<8x8xf32>, vector<8x8xf32> -> vector<8x8xf32>
    %122 = vector.extract_strided_slice %68 {offsets = [0, 24], sizes = [8, 8], strides = [1, 1]} : vector<8x32xf32> to vector<8x8xf32>
    %123 = vector.extract_strided_slice %69 {offsets = [0, 24], sizes = [8, 8], strides = [1, 1]} : vector<8x32xf32> to vector<8x8xf32>
    %124 = tpu.transpose %123, [1, 0] : vector<8x8xf32> -> vector<8x8xf32>
    %cst_60 = arith.constant dense<0.000000e+00> : vector<8x8xf32>
    %125 = tpu.matmul %122, %124, %cst_60 {dimension_numbers = #tpu.dot_dimension_numbers<[1], [0], [0], [1], [0, 0, 1, 1], [], []>} : vector<8x8xf32>, vector<8x8xf32>, vector<8x8xf32> -> vector<8x8xf32>
    %126 = arith.addf %125, %46 : vector<8x8xf32>
    %cst_61 = arith.constant dense<0xFF800000> : vector<8xf32>
    %127 = vector.multi_reduction <maximumf>, %126, %cst_61 [1] : vector<8x8xf32> to vector<8xf32>
    %128 = vector.shape_cast %127 : vector<8xf32> to vector<8x1xf32>
    %129 = vector.broadcast %128 : vector<8x1xf32> to vector<8x8xf32>
    %130 = arith.subf %126, %129 : vector<8x8xf32>
    %131 = math.exp %130 : vector<8x8xf32>
    %cst_62 = arith.constant dense<0.000000e+00> : vector<8xf32>
    %132 = vector.multi_reduction <add>, %131, %cst_62 [1] : vector<8x8xf32> to vector<8xf32>
    %133 = vector.shape_cast %132 : vector<8xf32> to vector<8x1xf32>
    %134 = tpu.reciprocal %133 {approx = true} : vector<8x1xf32> -> vector<8x1xf32>
    %135 = vector.broadcast %134 : vector<8x1xf32> to vector<8x8xf32>
    %136 = arith.mulf %131, %135 : vector<8x8xf32>
    %137 = vector.extract_strided_slice %70 {offsets = [0, 24], sizes = [8, 8], strides = [1, 1]} : vector<8x32xf32> to vector<8x8xf32>
    %cst_63 = arith.constant dense<0.000000e+00> : vector<8x8xf32>
    %138 = tpu.matmul %136, %137, %cst_63 {dimension_numbers = #tpu.dot_dimension_numbers<[1], [0], [0], [1], [0, 0, 1, 1], [], []>} : vector<8x8xf32>, vector<8x8xf32>, vector<8x8xf32> -> vector<8x8xf32>
    %139 = tpu.concatenate %87, %104, %121, %138 in 1 : vector<8x8xf32>, vector<8x8xf32>, vector<8x8xf32>, vector<8x8xf32> -> vector<8x32xf32>
    %c0_64 = arith.constant 0 : index
    %c0_65 = arith.constant 0 : index
    %c0_66 = arith.constant 0 : index
    %140 = vector.load %arg12[%c0_64, %c0_65, %c0_66] : memref<2x32x32xf32, #tpu.memory_space<vmem>>, vector<1x32x32xf32>
    %141 = vector.shape_cast %140 : vector<1x32x32xf32> to vector<32x32xf32>
    %cst_67 = arith.constant dense<0.000000e+00> : vector<8x32xf32>
    %142 = tpu.matmul %139, %141, %cst_67 {dimension_numbers = #tpu.dot_dimension_numbers<[1], [0], [0], [1], [0, 0, 1, 1], [], []>} : vector<8x32xf32>, vector<32x32xf32>, vector<8x32xf32> -> vector<8x32xf32>
    %c0_68 = arith.constant 0 : index
    %c0_69 = arith.constant 0 : index
    %c0_70 = arith.constant 0 : index
    %143 = vector.load %arg13[%c0_68, %c0_69, %c0_70] : memref<2x1x32xf32, #tpu.memory_space<vmem>>, vector<1x1x32xf32>
    %144 = vector.shape_cast %143 : vector<1x1x32xf32> to vector<1x32xf32>
    %145 = vector.broadcast %144 : vector<1x32xf32> to vector<8x32xf32>
    %146 = arith.addf %142, %145 : vector<8x32xf32>
    %147 = arith.addf %35, %146 : vector<8x32xf32>
    %148 = vector.extract_strided_slice %56 {offsets = [0, 0], sizes = [1, 32], strides = [1, 1]} : vector<3x32xf32> to vector<1x32xf32>
    %149 = vector.extract_strided_slice %58 {offsets = [0, 0], sizes = [1, 32], strides = [1, 1]} : vector<3x32xf32> to vector<1x32xf32>
    %cst_71 = arith.constant dense<0.000000e+00> : vector<8xf32>
    %150 = vector.multi_reduction <add>, %147, %cst_71 [1] : vector<8x32xf32> to vector<8xf32>
    %151 = vector.shape_cast %150 : vector<8xf32> to vector<8x1xf32>
    %cst_72 = arith.constant 3.200000e+01 : f32
    %152 = vector.broadcast %cst_72 : f32 to vector<8x1xf32>
    %153 = arith.divf %151, %152 : vector<8x1xf32>
    %154 = vector.broadcast %153 : vector<8x1xf32> to vector<8x32xf32>
    %155 = arith.subf %147, %154 : vector<8x32xf32>
    %156 = arith.mulf %155, %155 : vector<8x32xf32>
    %cst_73 = arith.constant dense<0.000000e+00> : vector<8xf32>
    %157 = vector.multi_reduction <add>, %156, %cst_73 [1] : vector<8x32xf32> to vector<8xf32>
    %158 = vector.shape_cast %157 : vector<8xf32> to vector<8x1xf32>
    %cst_74 = arith.constant 3.200000e+01 : f32
    %159 = vector.broadcast %cst_74 : f32 to vector<8x1xf32>
    %160 = arith.divf %158, %159 : vector<8x1xf32>
    %cst_75 = arith.constant 9.99999974E-6 : f32
    %161 = vector.broadcast %cst_75 : f32 to vector<8x1xf32>
    %162 = arith.addf %160, %161 : vector<8x1xf32>
    %163 = math.rsqrt %162 : vector<8x1xf32>
    %164 = vector.broadcast %163 : vector<8x1xf32> to vector<8x32xf32>
    %165 = arith.mulf %155, %164 : vector<8x32xf32>
    %166 = vector.broadcast %148 : vector<1x32xf32> to vector<8x32xf32>
    %167 = arith.mulf %166, %165 : vector<8x32xf32>
    %168 = vector.broadcast %149 : vector<1x32xf32> to vector<8x32xf32>
    %169 = arith.addf %167, %168 : vector<8x32xf32>
    %c0_76 = arith.constant 0 : index
    %c0_77 = arith.constant 0 : index
    %c0_78 = arith.constant 0 : index
    %170 = vector.load %arg14[%c0_76, %c0_77, %c0_78] : memref<2x32x32xf32, #tpu.memory_space<vmem>>, vector<1x32x32xf32>
    %171 = vector.shape_cast %170 : vector<1x32x32xf32> to vector<32x32xf32>
    %cst_79 = arith.constant dense<0.000000e+00> : vector<8x32xf32>
    %172 = tpu.matmul %169, %171, %cst_79 {dimension_numbers = #tpu.dot_dimension_numbers<[1], [0], [0], [1], [0, 0, 1, 1], [], []>} : vector<8x32xf32>, vector<32x32xf32>, vector<8x32xf32> -> vector<8x32xf32>
    %c0_80 = arith.constant 0 : index
    %c0_81 = arith.constant 0 : index
    %c0_82 = arith.constant 0 : index
    %173 = vector.load %arg15[%c0_80, %c0_81, %c0_82] : memref<2x1x32xf32, #tpu.memory_space<vmem>>, vector<1x1x32xf32>
    %174 = vector.shape_cast %173 : vector<1x1x32xf32> to vector<1x32xf32>
    %175 = vector.broadcast %174 : vector<1x32xf32> to vector<8x32xf32>
    %176 = arith.addf %172, %175 : vector<8x32xf32>
    %c0_83 = arith.constant 0 : index
    %c0_84 = arith.constant 0 : index
    %c0_85 = arith.constant 0 : index
    %177 = vector.load %arg16[%c0_83, %c0_84, %c0_85] : memref<2x32x64xf32, #tpu.memory_space<vmem>>, vector<1x32x64xf32>
    %178 = vector.shape_cast %177 : vector<1x32x64xf32> to vector<32x64xf32>
    %cst_86 = arith.constant dense<0.000000e+00> : vector<16x64xf32>
    %179 = tpu.matmul %3, %178, %cst_86 {dimension_numbers = #tpu.dot_dimension_numbers<[1], [0], [0], [1], [0, 0, 1, 1], [], []>} : vector<16x32xf32>, vector<32x64xf32>, vector<16x64xf32> -> vector<16x64xf32>
    %c0_87 = arith.constant 0 : index
    %c0_88 = arith.constant 0 : index
    %c0_89 = arith.constant 0 : index
    %180 = vector.load %arg17[%c0_87, %c0_88, %c0_89] : memref<2x1x64xf32, #tpu.memory_space<vmem>>, vector<1x1x64xf32>
    %181 = vector.shape_cast %180 : vector<1x1x64xf32> to vector<1x64xf32>
    %182 = vector.broadcast %181 : vector<1x64xf32> to vector<16x64xf32>
    %183 = arith.addf %179, %182 : vector<16x64xf32>
    %cst_90 = arith.constant 0.353553385 : f32
    %184 = vector.broadcast %cst_90 : f32 to vector<8x32xf32>
    %185 = arith.mulf %176, %184 : vector<8x32xf32>
    %186 = vector.extract_strided_slice %183 {offsets = [0, 0], sizes = [16, 32], strides = [1, 1]} : vector<16x64xf32> to vector<16x32xf32>
    %187 = vector.extract_strided_slice %183 {offsets = [0, 32], sizes = [16, 32], strides = [1, 1]} : vector<16x64xf32> to vector<16x32xf32>
    %188 = vector.extract_strided_slice %185 {offsets = [0, 0], sizes = [8, 8], strides = [1, 1]} : vector<8x32xf32> to vector<8x8xf32>
    %189 = vector.extract_strided_slice %186 {offsets = [0, 0], sizes = [16, 8], strides = [1, 1]} : vector<16x32xf32> to vector<16x8xf32>
    %190 = tpu.transpose %189, [1, 0] : vector<16x8xf32> -> vector<8x16xf32>
    %cst_91 = arith.constant dense<0.000000e+00> : vector<8x16xf32>
    %191 = tpu.matmul %188, %190, %cst_91 {dimension_numbers = #tpu.dot_dimension_numbers<[1], [0], [0], [1], [0, 0, 1, 1], [], []>} : vector<8x8xf32>, vector<8x16xf32>, vector<8x16xf32> -> vector<8x16xf32>
    %192 = vector.broadcast %50 : vector<1x16xf32> to vector<8x16xf32>
    %193 = arith.addf %191, %192 : vector<8x16xf32>
    %cst_92 = arith.constant dense<0xFF800000> : vector<8xf32>
    %194 = vector.multi_reduction <maximumf>, %193, %cst_92 [1] : vector<8x16xf32> to vector<8xf32>
    %195 = vector.shape_cast %194 : vector<8xf32> to vector<8x1xf32>
    %196 = vector.broadcast %195 : vector<8x1xf32> to vector<8x16xf32>
    %197 = arith.subf %193, %196 : vector<8x16xf32>
    %198 = math.exp %197 : vector<8x16xf32>
    %cst_93 = arith.constant dense<0.000000e+00> : vector<8xf32>
    %199 = vector.multi_reduction <add>, %198, %cst_93 [1] : vector<8x16xf32> to vector<8xf32>
    %200 = vector.shape_cast %199 : vector<8xf32> to vector<8x1xf32>
    %201 = tpu.reciprocal %200 {approx = true} : vector<8x1xf32> -> vector<8x1xf32>
    %202 = vector.broadcast %201 : vector<8x1xf32> to vector<8x16xf32>
    %203 = arith.mulf %198, %202 : vector<8x16xf32>
    %204 = vector.extract_strided_slice %187 {offsets = [0, 0], sizes = [16, 8], strides = [1, 1]} : vector<16x32xf32> to vector<16x8xf32>
    %cst_94 = arith.constant dense<0.000000e+00> : vector<8x8xf32>
    %205 = tpu.matmul %203, %204, %cst_94 {dimension_numbers = #tpu.dot_dimension_numbers<[1], [0], [0], [1], [0, 0, 1, 1], [], []>} : vector<8x16xf32>, vector<16x8xf32>, vector<8x8xf32> -> vector<8x8xf32>
    %206 = vector.extract_strided_slice %185 {offsets = [0, 8], sizes = [8, 8], strides = [1, 1]} : vector<8x32xf32> to vector<8x8xf32>
    %207 = vector.extract_strided_slice %186 {offsets = [0, 8], sizes = [16, 8], strides = [1, 1]} : vector<16x32xf32> to vector<16x8xf32>
    %208 = tpu.transpose %207, [1, 0] : vector<16x8xf32> -> vector<8x16xf32>
    %cst_95 = arith.constant dense<0.000000e+00> : vector<8x16xf32>
    %209 = tpu.matmul %206, %208, %cst_95 {dimension_numbers = #tpu.dot_dimension_numbers<[1], [0], [0], [1], [0, 0, 1, 1], [], []>} : vector<8x8xf32>, vector<8x16xf32>, vector<8x16xf32> -> vector<8x16xf32>
    %210 = vector.broadcast %50 : vector<1x16xf32> to vector<8x16xf32>
    %211 = arith.addf %209, %210 : vector<8x16xf32>
    %cst_96 = arith.constant dense<0xFF800000> : vector<8xf32>
    %212 = vector.multi_reduction <maximumf>, %211, %cst_96 [1] : vector<8x16xf32> to vector<8xf32>
    %213 = vector.shape_cast %212 : vector<8xf32> to vector<8x1xf32>
    %214 = vector.broadcast %213 : vector<8x1xf32> to vector<8x16xf32>
    %215 = arith.subf %211, %214 : vector<8x16xf32>
    %216 = math.exp %215 : vector<8x16xf32>
    %cst_97 = arith.constant dense<0.000000e+00> : vector<8xf32>
    %217 = vector.multi_reduction <add>, %216, %cst_97 [1] : vector<8x16xf32> to vector<8xf32>
    %218 = vector.shape_cast %217 : vector<8xf32> to vector<8x1xf32>
    %219 = tpu.reciprocal %218 {approx = true} : vector<8x1xf32> -> vector<8x1xf32>
    %220 = vector.broadcast %219 : vector<8x1xf32> to vector<8x16xf32>
    %221 = arith.mulf %216, %220 : vector<8x16xf32>
    %222 = vector.extract_strided_slice %187 {offsets = [0, 8], sizes = [16, 8], strides = [1, 1]} : vector<16x32xf32> to vector<16x8xf32>
    %cst_98 = arith.constant dense<0.000000e+00> : vector<8x8xf32>
    %223 = tpu.matmul %221, %222, %cst_98 {dimension_numbers = #tpu.dot_dimension_numbers<[1], [0], [0], [1], [0, 0, 1, 1], [], []>} : vector<8x16xf32>, vector<16x8xf32>, vector<8x8xf32> -> vector<8x8xf32>
    %224 = vector.extract_strided_slice %185 {offsets = [0, 16], sizes = [8, 8], strides = [1, 1]} : vector<8x32xf32> to vector<8x8xf32>
    %225 = vector.extract_strided_slice %186 {offsets = [0, 16], sizes = [16, 8], strides = [1, 1]} : vector<16x32xf32> to vector<16x8xf32>
    %226 = tpu.transpose %225, [1, 0] : vector<16x8xf32> -> vector<8x16xf32>
    %cst_99 = arith.constant dense<0.000000e+00> : vector<8x16xf32>
    %227 = tpu.matmul %224, %226, %cst_99 {dimension_numbers = #tpu.dot_dimension_numbers<[1], [0], [0], [1], [0, 0, 1, 1], [], []>} : vector<8x8xf32>, vector<8x16xf32>, vector<8x16xf32> -> vector<8x16xf32>
    %228 = vector.broadcast %50 : vector<1x16xf32> to vector<8x16xf32>
    %229 = arith.addf %227, %228 : vector<8x16xf32>
    %cst_100 = arith.constant dense<0xFF800000> : vector<8xf32>
    %230 = vector.multi_reduction <maximumf>, %229, %cst_100 [1] : vector<8x16xf32> to vector<8xf32>
    %231 = vector.shape_cast %230 : vector<8xf32> to vector<8x1xf32>
    %232 = vector.broadcast %231 : vector<8x1xf32> to vector<8x16xf32>
    %233 = arith.subf %229, %232 : vector<8x16xf32>
    %234 = math.exp %233 : vector<8x16xf32>
    %cst_101 = arith.constant dense<0.000000e+00> : vector<8xf32>
    %235 = vector.multi_reduction <add>, %234, %cst_101 [1] : vector<8x16xf32> to vector<8xf32>
    %236 = vector.shape_cast %235 : vector<8xf32> to vector<8x1xf32>
    %237 = tpu.reciprocal %236 {approx = true} : vector<8x1xf32> -> vector<8x1xf32>
    %238 = vector.broadcast %237 : vector<8x1xf32> to vector<8x16xf32>
    %239 = arith.mulf %234, %238 : vector<8x16xf32>
    %240 = vector.extract_strided_slice %187 {offsets = [0, 16], sizes = [16, 8], strides = [1, 1]} : vector<16x32xf32> to vector<16x8xf32>
    %cst_102 = arith.constant dense<0.000000e+00> : vector<8x8xf32>
    %241 = tpu.matmul %239, %240, %cst_102 {dimension_numbers = #tpu.dot_dimension_numbers<[1], [0], [0], [1], [0, 0, 1, 1], [], []>} : vector<8x16xf32>, vector<16x8xf32>, vector<8x8xf32> -> vector<8x8xf32>
    %242 = vector.extract_strided_slice %185 {offsets = [0, 24], sizes = [8, 8], strides = [1, 1]} : vector<8x32xf32> to vector<8x8xf32>
    %243 = vector.extract_strided_slice %186 {offsets = [0, 24], sizes = [16, 8], strides = [1, 1]} : vector<16x32xf32> to vector<16x8xf32>
    %244 = tpu.transpose %243, [1, 0] : vector<16x8xf32> -> vector<8x16xf32>
    %cst_103 = arith.constant dense<0.000000e+00> : vector<8x16xf32>
    %245 = tpu.matmul %242, %244, %cst_103 {dimension_numbers = #tpu.dot_dimension_numbers<[1], [0], [0], [1], [0, 0, 1, 1], [], []>} : vector<8x8xf32>, vector<8x16xf32>, vector<8x16xf32> -> vector<8x16xf32>
    %246 = vector.broadcast %50 : vector<1x16xf32> to vector<8x16xf32>
    %247 = arith.addf %245, %246 : vector<8x16xf32>
    %cst_104 = arith.constant dense<0xFF800000> : vector<8xf32>
    %248 = vector.multi_reduction <maximumf>, %247, %cst_104 [1] : vector<8x16xf32> to vector<8xf32>
    %249 = vector.shape_cast %248 : vector<8xf32> to vector<8x1xf32>
    %250 = vector.broadcast %249 : vector<8x1xf32> to vector<8x16xf32>
    %251 = arith.subf %247, %250 : vector<8x16xf32>
    %252 = math.exp %251 : vector<8x16xf32>
    %cst_105 = arith.constant dense<0.000000e+00> : vector<8xf32>
    %253 = vector.multi_reduction <add>, %252, %cst_105 [1] : vector<8x16xf32> to vector<8xf32>
    %254 = vector.shape_cast %253 : vector<8xf32> to vector<8x1xf32>
    %255 = tpu.reciprocal %254 {approx = true} : vector<8x1xf32> -> vector<8x1xf32>
    %256 = vector.broadcast %255 : vector<8x1xf32> to vector<8x16xf32>
    %257 = arith.mulf %252, %256 : vector<8x16xf32>
    %258 = vector.extract_strided_slice %187 {offsets = [0, 24], sizes = [16, 8], strides = [1, 1]} : vector<16x32xf32> to vector<16x8xf32>
    %cst_106 = arith.constant dense<0.000000e+00> : vector<8x8xf32>
    %259 = tpu.matmul %257, %258, %cst_106 {dimension_numbers = #tpu.dot_dimension_numbers<[1], [0], [0], [1], [0, 0, 1, 1], [], []>} : vector<8x16xf32>, vector<16x8xf32>, vector<8x8xf32> -> vector<8x8xf32>
    %260 = tpu.concatenate %205, %223, %241, %259 in 1 : vector<8x8xf32>, vector<8x8xf32>, vector<8x8xf32>, vector<8x8xf32> -> vector<8x32xf32>
    %c0_107 = arith.constant 0 : index
    %c0_108 = arith.constant 0 : index
    %c0_109 = arith.constant 0 : index
    %261 = vector.load %arg18[%c0_107, %c0_108, %c0_109] : memref<2x32x32xf32, #tpu.memory_space<vmem>>, vector<1x32x32xf32>
    %262 = vector.shape_cast %261 : vector<1x32x32xf32> to vector<32x32xf32>
    %cst_110 = arith.constant dense<0.000000e+00> : vector<8x32xf32>
    %263 = tpu.matmul %260, %262, %cst_110 {dimension_numbers = #tpu.dot_dimension_numbers<[1], [0], [0], [1], [0, 0, 1, 1], [], []>} : vector<8x32xf32>, vector<32x32xf32>, vector<8x32xf32> -> vector<8x32xf32>
    %c0_111 = arith.constant 0 : index
    %c0_112 = arith.constant 0 : index
    %c0_113 = arith.constant 0 : index
    %264 = vector.load %arg19[%c0_111, %c0_112, %c0_113] : memref<2x1x32xf32, #tpu.memory_space<vmem>>, vector<1x1x32xf32>
    %265 = vector.shape_cast %264 : vector<1x1x32xf32> to vector<1x32xf32>
    %266 = vector.broadcast %265 : vector<1x32xf32> to vector<8x32xf32>
    %267 = arith.addf %263, %266 : vector<8x32xf32>
    %268 = arith.addf %169, %267 : vector<8x32xf32>
    %269 = vector.extract_strided_slice %56 {offsets = [1, 0], sizes = [1, 32], strides = [1, 1]} : vector<3x32xf32> to vector<1x32xf32>
    %270 = vector.extract_strided_slice %58 {offsets = [1, 0], sizes = [1, 32], strides = [1, 1]} : vector<3x32xf32> to vector<1x32xf32>
    %cst_114 = arith.constant dense<0.000000e+00> : vector<8xf32>
    %271 = vector.multi_reduction <add>, %268, %cst_114 [1] : vector<8x32xf32> to vector<8xf32>
    %272 = vector.shape_cast %271 : vector<8xf32> to vector<8x1xf32>
    %cst_115 = arith.constant 3.200000e+01 : f32
    %273 = vector.broadcast %cst_115 : f32 to vector<8x1xf32>
    %274 = arith.divf %272, %273 : vector<8x1xf32>
    %275 = vector.broadcast %274 : vector<8x1xf32> to vector<8x32xf32>
    %276 = arith.subf %268, %275 : vector<8x32xf32>
    %277 = arith.mulf %276, %276 : vector<8x32xf32>
    %cst_116 = arith.constant dense<0.000000e+00> : vector<8xf32>
    %278 = vector.multi_reduction <add>, %277, %cst_116 [1] : vector<8x32xf32> to vector<8xf32>
    %279 = vector.shape_cast %278 : vector<8xf32> to vector<8x1xf32>
    %cst_117 = arith.constant 3.200000e+01 : f32
    %280 = vector.broadcast %cst_117 : f32 to vector<8x1xf32>
    %281 = arith.divf %279, %280 : vector<8x1xf32>
    %cst_118 = arith.constant 9.99999974E-6 : f32
    %282 = vector.broadcast %cst_118 : f32 to vector<8x1xf32>
    %283 = arith.addf %281, %282 : vector<8x1xf32>
    %284 = math.rsqrt %283 : vector<8x1xf32>
    %285 = vector.broadcast %284 : vector<8x1xf32> to vector<8x32xf32>
    %286 = arith.mulf %276, %285 : vector<8x32xf32>
    %287 = vector.broadcast %269 : vector<1x32xf32> to vector<8x32xf32>
    %288 = arith.mulf %287, %286 : vector<8x32xf32>
    %289 = vector.broadcast %270 : vector<1x32xf32> to vector<8x32xf32>
    %290 = arith.addf %288, %289 : vector<8x32xf32>
    %c0_119 = arith.constant 0 : index
    %c0_120 = arith.constant 0 : index
    %c0_121 = arith.constant 0 : index
    %291 = vector.load %arg22[%c0_119, %c0_120, %c0_121] : memref<2x32x64xf32, #tpu.memory_space<vmem>>, vector<1x32x64xf32>
    %292 = vector.shape_cast %291 : vector<1x32x64xf32> to vector<32x64xf32>
    %cst_122 = arith.constant dense<0.000000e+00> : vector<8x64xf32>
    %293 = tpu.matmul %290, %292, %cst_122 {dimension_numbers = #tpu.dot_dimension_numbers<[1], [0], [0], [1], [0, 0, 1, 1], [], []>} : vector<8x32xf32>, vector<32x64xf32>, vector<8x64xf32> -> vector<8x64xf32>
    %c0_123 = arith.constant 0 : index
    %c0_124 = arith.constant 0 : index
    %c0_125 = arith.constant 0 : index
    %294 = vector.load %arg23[%c0_123, %c0_124, %c0_125] : memref<2x1x64xf32, #tpu.memory_space<vmem>>, vector<1x1x64xf32>
    %295 = vector.shape_cast %294 : vector<1x1x64xf32> to vector<1x64xf32>
    %296 = vector.broadcast %295 : vector<1x64xf32> to vector<8x64xf32>
    %297 = arith.addf %293, %296 : vector<8x64xf32>
    %cst_126 = arith.constant 0.000000e+00 : f32
    %298 = vector.broadcast %cst_126 : f32 to vector<8x64xf32>
    %299 = arith.maximumf %297, %298 : vector<8x64xf32>
    %c0_127 = arith.constant 0 : index
    %c0_128 = arith.constant 0 : index
    %c0_129 = arith.constant 0 : index
    %300 = vector.load %arg24[%c0_127, %c0_128, %c0_129] : memref<2x64x32xf32, #tpu.memory_space<vmem>>, vector<1x64x32xf32>
    %301 = vector.shape_cast %300 : vector<1x64x32xf32> to vector<64x32xf32>
    %cst_130 = arith.constant dense<0.000000e+00> : vector<8x32xf32>
    %302 = tpu.matmul %299, %301, %cst_130 {dimension_numbers = #tpu.dot_dimension_numbers<[1], [0], [0], [1], [0, 0, 1, 1], [], []>} : vector<8x64xf32>, vector<64x32xf32>, vector<8x32xf32> -> vector<8x32xf32>
    %c0_131 = arith.constant 0 : index
    %c0_132 = arith.constant 0 : index
    %c0_133 = arith.constant 0 : index
    %303 = vector.load %arg25[%c0_131, %c0_132, %c0_133] : memref<2x1x32xf32, #tpu.memory_space<vmem>>, vector<1x1x32xf32>
    %304 = vector.shape_cast %303 : vector<1x1x32xf32> to vector<1x32xf32>
    %305 = vector.broadcast %304 : vector<1x32xf32> to vector<8x32xf32>
    %306 = arith.addf %302, %305 : vector<8x32xf32>
    %307 = arith.addf %290, %306 : vector<8x32xf32>
    %308 = vector.extract_strided_slice %56 {offsets = [2, 0], sizes = [1, 32], strides = [1, 1]} : vector<3x32xf32> to vector<1x32xf32>
    %309 = vector.extract_strided_slice %58 {offsets = [2, 0], sizes = [1, 32], strides = [1, 1]} : vector<3x32xf32> to vector<1x32xf32>
    %cst_134 = arith.constant dense<0.000000e+00> : vector<8xf32>
    %310 = vector.multi_reduction <add>, %307, %cst_134 [1] : vector<8x32xf32> to vector<8xf32>
    %311 = vector.shape_cast %310 : vector<8xf32> to vector<8x1xf32>
    %cst_135 = arith.constant 3.200000e+01 : f32
    %312 = vector.broadcast %cst_135 : f32 to vector<8x1xf32>
    %313 = arith.divf %311, %312 : vector<8x1xf32>
    %314 = vector.broadcast %313 : vector<8x1xf32> to vector<8x32xf32>
    %315 = arith.subf %307, %314 : vector<8x32xf32>
    %316 = arith.mulf %315, %315 : vector<8x32xf32>
    %cst_136 = arith.constant dense<0.000000e+00> : vector<8xf32>
    %317 = vector.multi_reduction <add>, %316, %cst_136 [1] : vector<8x32xf32> to vector<8xf32>
    %318 = vector.shape_cast %317 : vector<8xf32> to vector<8x1xf32>
    %cst_137 = arith.constant 3.200000e+01 : f32
    %319 = vector.broadcast %cst_137 : f32 to vector<8x1xf32>
    %320 = arith.divf %318, %319 : vector<8x1xf32>
    %cst_138 = arith.constant 9.99999974E-6 : f32
    %321 = vector.broadcast %cst_138 : f32 to vector<8x1xf32>
    %322 = arith.addf %320, %321 : vector<8x1xf32>
    %323 = math.rsqrt %322 : vector<8x1xf32>
    %324 = vector.broadcast %323 : vector<8x1xf32> to vector<8x32xf32>
    %325 = arith.mulf %315, %324 : vector<8x32xf32>
    %326 = vector.broadcast %308 : vector<1x32xf32> to vector<8x32xf32>
    %327 = arith.mulf %326, %325 : vector<8x32xf32>
    %328 = vector.broadcast %309 : vector<1x32xf32> to vector<8x32xf32>
    %329 = arith.addf %327, %328 : vector<8x32xf32>
    %c1 = arith.constant 1 : index
    %c0_139 = arith.constant 0 : index
    %c0_140 = arith.constant 0 : index
    %330 = vector.load %arg20[%c1, %c0_139, %c0_140] : memref<2x3x32xf32, #tpu.memory_space<vmem>>, vector<1x3x32xf32>
    %331 = vector.shape_cast %330 : vector<1x3x32xf32> to vector<3x32xf32>
    %c1_141 = arith.constant 1 : index
    %c0_142 = arith.constant 0 : index
    %c0_143 = arith.constant 0 : index
    %332 = vector.load %arg21[%c1_141, %c0_142, %c0_143] : memref<2x3x32xf32, #tpu.memory_space<vmem>>, vector<1x3x32xf32>
    %333 = vector.shape_cast %332 : vector<1x3x32xf32> to vector<3x32xf32>
    %c1_144 = arith.constant 1 : index
    %c0_145 = arith.constant 0 : index
    %c0_146 = arith.constant 0 : index
    %334 = vector.load %arg10[%c1_144, %c0_145, %c0_146] : memref<2x32x96xf32, #tpu.memory_space<vmem>>, vector<1x32x96xf32>
    %335 = vector.shape_cast %334 : vector<1x32x96xf32> to vector<32x96xf32>
    %cst_147 = arith.constant dense<0.000000e+00> : vector<8x96xf32>
    %336 = tpu.matmul %329, %335, %cst_147 {dimension_numbers = #tpu.dot_dimension_numbers<[1], [0], [0], [1], [0, 0, 1, 1], [], []>} : vector<8x32xf32>, vector<32x96xf32>, vector<8x96xf32> -> vector<8x96xf32>
    %c1_148 = arith.constant 1 : index
    %c0_149 = arith.constant 0 : index
    %c0_150 = arith.constant 0 : index
    %337 = vector.load %arg11[%c1_148, %c0_149, %c0_150] : memref<2x1x96xf32, #tpu.memory_space<vmem>>, vector<1x1x96xf32>
    %338 = vector.shape_cast %337 : vector<1x1x96xf32> to vector<1x96xf32>
    %339 = vector.broadcast %338 : vector<1x96xf32> to vector<8x96xf32>
    %340 = arith.addf %336, %339 : vector<8x96xf32>
    %341 = vector.extract_strided_slice %340 {offsets = [0, 0], sizes = [8, 32], strides = [1, 1]} : vector<8x96xf32> to vector<8x32xf32>
    %cst_151 = arith.constant 0.353553385 : f32
    %342 = vector.broadcast %cst_151 : f32 to vector<8x32xf32>
    %343 = arith.mulf %341, %342 : vector<8x32xf32>
    %344 = vector.extract_strided_slice %340 {offsets = [0, 32], sizes = [8, 32], strides = [1, 1]} : vector<8x96xf32> to vector<8x32xf32>
    %345 = vector.extract_strided_slice %340 {offsets = [0, 64], sizes = [8, 32], strides = [1, 1]} : vector<8x96xf32> to vector<8x32xf32>
    %346 = vector.extract_strided_slice %343 {offsets = [0, 0], sizes = [8, 8], strides = [1, 1]} : vector<8x32xf32> to vector<8x8xf32>
    %347 = vector.extract_strided_slice %344 {offsets = [0, 0], sizes = [8, 8], strides = [1, 1]} : vector<8x32xf32> to vector<8x8xf32>
    %348 = tpu.transpose %347, [1, 0] : vector<8x8xf32> -> vector<8x8xf32>
    %cst_152 = arith.constant dense<0.000000e+00> : vector<8x8xf32>
    %349 = tpu.matmul %346, %348, %cst_152 {dimension_numbers = #tpu.dot_dimension_numbers<[1], [0], [0], [1], [0, 0, 1, 1], [], []>} : vector<8x8xf32>, vector<8x8xf32>, vector<8x8xf32> -> vector<8x8xf32>
    %350 = arith.addf %349, %46 : vector<8x8xf32>
    %cst_153 = arith.constant dense<0xFF800000> : vector<8xf32>
    %351 = vector.multi_reduction <maximumf>, %350, %cst_153 [1] : vector<8x8xf32> to vector<8xf32>
    %352 = vector.shape_cast %351 : vector<8xf32> to vector<8x1xf32>
    %353 = vector.broadcast %352 : vector<8x1xf32> to vector<8x8xf32>
    %354 = arith.subf %350, %353 : vector<8x8xf32>
    %355 = math.exp %354 : vector<8x8xf32>
    %cst_154 = arith.constant dense<0.000000e+00> : vector<8xf32>
    %356 = vector.multi_reduction <add>, %355, %cst_154 [1] : vector<8x8xf32> to vector<8xf32>
    %357 = vector.shape_cast %356 : vector<8xf32> to vector<8x1xf32>
    %358 = tpu.reciprocal %357 {approx = true} : vector<8x1xf32> -> vector<8x1xf32>
    %359 = vector.broadcast %358 : vector<8x1xf32> to vector<8x8xf32>
    %360 = arith.mulf %355, %359 : vector<8x8xf32>
    %361 = vector.extract_strided_slice %345 {offsets = [0, 0], sizes = [8, 8], strides = [1, 1]} : vector<8x32xf32> to vector<8x8xf32>
    %cst_155 = arith.constant dense<0.000000e+00> : vector<8x8xf32>
    %362 = tpu.matmul %360, %361, %cst_155 {dimension_numbers = #tpu.dot_dimension_numbers<[1], [0], [0], [1], [0, 0, 1, 1], [], []>} : vector<8x8xf32>, vector<8x8xf32>, vector<8x8xf32> -> vector<8x8xf32>
    %363 = vector.extract_strided_slice %343 {offsets = [0, 8], sizes = [8, 8], strides = [1, 1]} : vector<8x32xf32> to vector<8x8xf32>
    %364 = vector.extract_strided_slice %344 {offsets = [0, 8], sizes = [8, 8], strides = [1, 1]} : vector<8x32xf32> to vector<8x8xf32>
    %365 = tpu.transpose %364, [1, 0] : vector<8x8xf32> -> vector<8x8xf32>
    %cst_156 = arith.constant dense<0.000000e+00> : vector<8x8xf32>
    %366 = tpu.matmul %363, %365, %cst_156 {dimension_numbers = #tpu.dot_dimension_numbers<[1], [0], [0], [1], [0, 0, 1, 1], [], []>} : vector<8x8xf32>, vector<8x8xf32>, vector<8x8xf32> -> vector<8x8xf32>
    %367 = arith.addf %366, %46 : vector<8x8xf32>
    %cst_157 = arith.constant dense<0xFF800000> : vector<8xf32>
    %368 = vector.multi_reduction <maximumf>, %367, %cst_157 [1] : vector<8x8xf32> to vector<8xf32>
    %369 = vector.shape_cast %368 : vector<8xf32> to vector<8x1xf32>
    %370 = vector.broadcast %369 : vector<8x1xf32> to vector<8x8xf32>
    %371 = arith.subf %367, %370 : vector<8x8xf32>
    %372 = math.exp %371 : vector<8x8xf32>
    %cst_158 = arith.constant dense<0.000000e+00> : vector<8xf32>
    %373 = vector.multi_reduction <add>, %372, %cst_158 [1] : vector<8x8xf32> to vector<8xf32>
    %374 = vector.shape_cast %373 : vector<8xf32> to vector<8x1xf32>
    %375 = tpu.reciprocal %374 {approx = true} : vector<8x1xf32> -> vector<8x1xf32>
    %376 = vector.broadcast %375 : vector<8x1xf32> to vector<8x8xf32>
    %377 = arith.mulf %372, %376 : vector<8x8xf32>
    %378 = vector.extract_strided_slice %345 {offsets = [0, 8], sizes = [8, 8], strides = [1, 1]} : vector<8x32xf32> to vector<8x8xf32>
    %cst_159 = arith.constant dense<0.000000e+00> : vector<8x8xf32>
    %379 = tpu.matmul %377, %378, %cst_159 {dimension_numbers = #tpu.dot_dimension_numbers<[1], [0], [0], [1], [0, 0, 1, 1], [], []>} : vector<8x8xf32>, vector<8x8xf32>, vector<8x8xf32> -> vector<8x8xf32>
    %380 = vector.extract_strided_slice %343 {offsets = [0, 16], sizes = [8, 8], strides = [1, 1]} : vector<8x32xf32> to vector<8x8xf32>
    %381 = vector.extract_strided_slice %344 {offsets = [0, 16], sizes = [8, 8], strides = [1, 1]} : vector<8x32xf32> to vector<8x8xf32>
    %382 = tpu.transpose %381, [1, 0] : vector<8x8xf32> -> vector<8x8xf32>
    %cst_160 = arith.constant dense<0.000000e+00> : vector<8x8xf32>
    %383 = tpu.matmul %380, %382, %cst_160 {dimension_numbers = #tpu.dot_dimension_numbers<[1], [0], [0], [1], [0, 0, 1, 1], [], []>} : vector<8x8xf32>, vector<8x8xf32>, vector<8x8xf32> -> vector<8x8xf32>
    %384 = arith.addf %383, %46 : vector<8x8xf32>
    %cst_161 = arith.constant dense<0xFF800000> : vector<8xf32>
    %385 = vector.multi_reduction <maximumf>, %384, %cst_161 [1] : vector<8x8xf32> to vector<8xf32>
    %386 = vector.shape_cast %385 : vector<8xf32> to vector<8x1xf32>
    %387 = vector.broadcast %386 : vector<8x1xf32> to vector<8x8xf32>
    %388 = arith.subf %384, %387 : vector<8x8xf32>
    %389 = math.exp %388 : vector<8x8xf32>
    %cst_162 = arith.constant dense<0.000000e+00> : vector<8xf32>
    %390 = vector.multi_reduction <add>, %389, %cst_162 [1] : vector<8x8xf32> to vector<8xf32>
    %391 = vector.shape_cast %390 : vector<8xf32> to vector<8x1xf32>
    %392 = tpu.reciprocal %391 {approx = true} : vector<8x1xf32> -> vector<8x1xf32>
    %393 = vector.broadcast %392 : vector<8x1xf32> to vector<8x8xf32>
    %394 = arith.mulf %389, %393 : vector<8x8xf32>
    %395 = vector.extract_strided_slice %345 {offsets = [0, 16], sizes = [8, 8], strides = [1, 1]} : vector<8x32xf32> to vector<8x8xf32>
    %cst_163 = arith.constant dense<0.000000e+00> : vector<8x8xf32>
    %396 = tpu.matmul %394, %395, %cst_163 {dimension_numbers = #tpu.dot_dimension_numbers<[1], [0], [0], [1], [0, 0, 1, 1], [], []>} : vector<8x8xf32>, vector<8x8xf32>, vector<8x8xf32> -> vector<8x8xf32>
    %397 = vector.extract_strided_slice %343 {offsets = [0, 24], sizes = [8, 8], strides = [1, 1]} : vector<8x32xf32> to vector<8x8xf32>
    %398 = vector.extract_strided_slice %344 {offsets = [0, 24], sizes = [8, 8], strides = [1, 1]} : vector<8x32xf32> to vector<8x8xf32>
    %399 = tpu.transpose %398, [1, 0] : vector<8x8xf32> -> vector<8x8xf32>
    %cst_164 = arith.constant dense<0.000000e+00> : vector<8x8xf32>
    %400 = tpu.matmul %397, %399, %cst_164 {dimension_numbers = #tpu.dot_dimension_numbers<[1], [0], [0], [1], [0, 0, 1, 1], [], []>} : vector<8x8xf32>, vector<8x8xf32>, vector<8x8xf32> -> vector<8x8xf32>
    %401 = arith.addf %400, %46 : vector<8x8xf32>
    %cst_165 = arith.constant dense<0xFF800000> : vector<8xf32>
    %402 = vector.multi_reduction <maximumf>, %401, %cst_165 [1] : vector<8x8xf32> to vector<8xf32>
    %403 = vector.shape_cast %402 : vector<8xf32> to vector<8x1xf32>
    %404 = vector.broadcast %403 : vector<8x1xf32> to vector<8x8xf32>
    %405 = arith.subf %401, %404 : vector<8x8xf32>
    %406 = math.exp %405 : vector<8x8xf32>
    %cst_166 = arith.constant dense<0.000000e+00> : vector<8xf32>
    %407 = vector.multi_reduction <add>, %406, %cst_166 [1] : vector<8x8xf32> to vector<8xf32>
    %408 = vector.shape_cast %407 : vector<8xf32> to vector<8x1xf32>
    %409 = tpu.reciprocal %408 {approx = true} : vector<8x1xf32> -> vector<8x1xf32>
    %410 = vector.broadcast %409 : vector<8x1xf32> to vector<8x8xf32>
    %411 = arith.mulf %406, %410 : vector<8x8xf32>
    %412 = vector.extract_strided_slice %345 {offsets = [0, 24], sizes = [8, 8], strides = [1, 1]} : vector<8x32xf32> to vector<8x8xf32>
    %cst_167 = arith.constant dense<0.000000e+00> : vector<8x8xf32>
    %413 = tpu.matmul %411, %412, %cst_167 {dimension_numbers = #tpu.dot_dimension_numbers<[1], [0], [0], [1], [0, 0, 1, 1], [], []>} : vector<8x8xf32>, vector<8x8xf32>, vector<8x8xf32> -> vector<8x8xf32>
    %414 = tpu.concatenate %362, %379, %396, %413 in 1 : vector<8x8xf32>, vector<8x8xf32>, vector<8x8xf32>, vector<8x8xf32> -> vector<8x32xf32>
    %c1_168 = arith.constant 1 : index
    %c0_169 = arith.constant 0 : index
    %c0_170 = arith.constant 0 : index
    %415 = vector.load %arg12[%c1_168, %c0_169, %c0_170] : memref<2x32x32xf32, #tpu.memory_space<vmem>>, vector<1x32x32xf32>
    %416 = vector.shape_cast %415 : vector<1x32x32xf32> to vector<32x32xf32>
    %cst_171 = arith.constant dense<0.000000e+00> : vector<8x32xf32>
    %417 = tpu.matmul %414, %416, %cst_171 {dimension_numbers = #tpu.dot_dimension_numbers<[1], [0], [0], [1], [0, 0, 1, 1], [], []>} : vector<8x32xf32>, vector<32x32xf32>, vector<8x32xf32> -> vector<8x32xf32>
    %c1_172 = arith.constant 1 : index
    %c0_173 = arith.constant 0 : index
    %c0_174 = arith.constant 0 : index
    %418 = vector.load %arg13[%c1_172, %c0_173, %c0_174] : memref<2x1x32xf32, #tpu.memory_space<vmem>>, vector<1x1x32xf32>
    %419 = vector.shape_cast %418 : vector<1x1x32xf32> to vector<1x32xf32>
    %420 = vector.broadcast %419 : vector<1x32xf32> to vector<8x32xf32>
    %421 = arith.addf %417, %420 : vector<8x32xf32>
    %422 = arith.addf %329, %421 : vector<8x32xf32>
    %423 = vector.extract_strided_slice %331 {offsets = [0, 0], sizes = [1, 32], strides = [1, 1]} : vector<3x32xf32> to vector<1x32xf32>
    %424 = vector.extract_strided_slice %333 {offsets = [0, 0], sizes = [1, 32], strides = [1, 1]} : vector<3x32xf32> to vector<1x32xf32>
    %cst_175 = arith.constant dense<0.000000e+00> : vector<8xf32>
    %425 = vector.multi_reduction <add>, %422, %cst_175 [1] : vector<8x32xf32> to vector<8xf32>
    %426 = vector.shape_cast %425 : vector<8xf32> to vector<8x1xf32>
    %cst_176 = arith.constant 3.200000e+01 : f32
    %427 = vector.broadcast %cst_176 : f32 to vector<8x1xf32>
    %428 = arith.divf %426, %427 : vector<8x1xf32>
    %429 = vector.broadcast %428 : vector<8x1xf32> to vector<8x32xf32>
    %430 = arith.subf %422, %429 : vector<8x32xf32>
    %431 = arith.mulf %430, %430 : vector<8x32xf32>
    %cst_177 = arith.constant dense<0.000000e+00> : vector<8xf32>
    %432 = vector.multi_reduction <add>, %431, %cst_177 [1] : vector<8x32xf32> to vector<8xf32>
    %433 = vector.shape_cast %432 : vector<8xf32> to vector<8x1xf32>
    %cst_178 = arith.constant 3.200000e+01 : f32
    %434 = vector.broadcast %cst_178 : f32 to vector<8x1xf32>
    %435 = arith.divf %433, %434 : vector<8x1xf32>
    %cst_179 = arith.constant 9.99999974E-6 : f32
    %436 = vector.broadcast %cst_179 : f32 to vector<8x1xf32>
    %437 = arith.addf %435, %436 : vector<8x1xf32>
    %438 = math.rsqrt %437 : vector<8x1xf32>
    %439 = vector.broadcast %438 : vector<8x1xf32> to vector<8x32xf32>
    %440 = arith.mulf %430, %439 : vector<8x32xf32>
    %441 = vector.broadcast %423 : vector<1x32xf32> to vector<8x32xf32>
    %442 = arith.mulf %441, %440 : vector<8x32xf32>
    %443 = vector.broadcast %424 : vector<1x32xf32> to vector<8x32xf32>
    %444 = arith.addf %442, %443 : vector<8x32xf32>
    %c1_180 = arith.constant 1 : index
    %c0_181 = arith.constant 0 : index
    %c0_182 = arith.constant 0 : index
    %445 = vector.load %arg14[%c1_180, %c0_181, %c0_182] : memref<2x32x32xf32, #tpu.memory_space<vmem>>, vector<1x32x32xf32>
    %446 = vector.shape_cast %445 : vector<1x32x32xf32> to vector<32x32xf32>
    %cst_183 = arith.constant dense<0.000000e+00> : vector<8x32xf32>
    %447 = tpu.matmul %444, %446, %cst_183 {dimension_numbers = #tpu.dot_dimension_numbers<[1], [0], [0], [1], [0, 0, 1, 1], [], []>} : vector<8x32xf32>, vector<32x32xf32>, vector<8x32xf32> -> vector<8x32xf32>
    %c1_184 = arith.constant 1 : index
    %c0_185 = arith.constant 0 : index
    %c0_186 = arith.constant 0 : index
    %448 = vector.load %arg15[%c1_184, %c0_185, %c0_186] : memref<2x1x32xf32, #tpu.memory_space<vmem>>, vector<1x1x32xf32>
    %449 = vector.shape_cast %448 : vector<1x1x32xf32> to vector<1x32xf32>
    %450 = vector.broadcast %449 : vector<1x32xf32> to vector<8x32xf32>
    %451 = arith.addf %447, %450 : vector<8x32xf32>
    %c1_187 = arith.constant 1 : index
    %c0_188 = arith.constant 0 : index
    %c0_189 = arith.constant 0 : index
    %452 = vector.load %arg16[%c1_187, %c0_188, %c0_189] : memref<2x32x64xf32, #tpu.memory_space<vmem>>, vector<1x32x64xf32>
    %453 = vector.shape_cast %452 : vector<1x32x64xf32> to vector<32x64xf32>
    %cst_190 = arith.constant dense<0.000000e+00> : vector<16x64xf32>
    %454 = tpu.matmul %3, %453, %cst_190 {dimension_numbers = #tpu.dot_dimension_numbers<[1], [0], [0], [1], [0, 0, 1, 1], [], []>} : vector<16x32xf32>, vector<32x64xf32>, vector<16x64xf32> -> vector<16x64xf32>
    %c1_191 = arith.constant 1 : index
    %c0_192 = arith.constant 0 : index
    %c0_193 = arith.constant 0 : index
    %455 = vector.load %arg17[%c1_191, %c0_192, %c0_193] : memref<2x1x64xf32, #tpu.memory_space<vmem>>, vector<1x1x64xf32>
    %456 = vector.shape_cast %455 : vector<1x1x64xf32> to vector<1x64xf32>
    %457 = vector.broadcast %456 : vector<1x64xf32> to vector<16x64xf32>
    %458 = arith.addf %454, %457 : vector<16x64xf32>
    %cst_194 = arith.constant 0.353553385 : f32
    %459 = vector.broadcast %cst_194 : f32 to vector<8x32xf32>
    %460 = arith.mulf %451, %459 : vector<8x32xf32>
    %461 = vector.extract_strided_slice %458 {offsets = [0, 0], sizes = [16, 32], strides = [1, 1]} : vector<16x64xf32> to vector<16x32xf32>
    %462 = vector.extract_strided_slice %458 {offsets = [0, 32], sizes = [16, 32], strides = [1, 1]} : vector<16x64xf32> to vector<16x32xf32>
    %463 = vector.extract_strided_slice %460 {offsets = [0, 0], sizes = [8, 8], strides = [1, 1]} : vector<8x32xf32> to vector<8x8xf32>
    %464 = vector.extract_strided_slice %461 {offsets = [0, 0], sizes = [16, 8], strides = [1, 1]} : vector<16x32xf32> to vector<16x8xf32>
    %465 = tpu.transpose %464, [1, 0] : vector<16x8xf32> -> vector<8x16xf32>
    %cst_195 = arith.constant dense<0.000000e+00> : vector<8x16xf32>
    %466 = tpu.matmul %463, %465, %cst_195 {dimension_numbers = #tpu.dot_dimension_numbers<[1], [0], [0], [1], [0, 0, 1, 1], [], []>} : vector<8x8xf32>, vector<8x16xf32>, vector<8x16xf32> -> vector<8x16xf32>
    %467 = vector.broadcast %50 : vector<1x16xf32> to vector<8x16xf32>
    %468 = arith.addf %466, %467 : vector<8x16xf32>
    %cst_196 = arith.constant dense<0xFF800000> : vector<8xf32>
    %469 = vector.multi_reduction <maximumf>, %468, %cst_196 [1] : vector<8x16xf32> to vector<8xf32>
    %470 = vector.shape_cast %469 : vector<8xf32> to vector<8x1xf32>
    %471 = vector.broadcast %470 : vector<8x1xf32> to vector<8x16xf32>
    %472 = arith.subf %468, %471 : vector<8x16xf32>
    %473 = math.exp %472 : vector<8x16xf32>
    %cst_197 = arith.constant dense<0.000000e+00> : vector<8xf32>
    %474 = vector.multi_reduction <add>, %473, %cst_197 [1] : vector<8x16xf32> to vector<8xf32>
    %475 = vector.shape_cast %474 : vector<8xf32> to vector<8x1xf32>
    %476 = tpu.reciprocal %475 {approx = true} : vector<8x1xf32> -> vector<8x1xf32>
    %477 = vector.broadcast %476 : vector<8x1xf32> to vector<8x16xf32>
    %478 = arith.mulf %473, %477 : vector<8x16xf32>
    %479 = vector.extract_strided_slice %462 {offsets = [0, 0], sizes = [16, 8], strides = [1, 1]} : vector<16x32xf32> to vector<16x8xf32>
    %cst_198 = arith.constant dense<0.000000e+00> : vector<8x8xf32>
    %480 = tpu.matmul %478, %479, %cst_198 {dimension_numbers = #tpu.dot_dimension_numbers<[1], [0], [0], [1], [0, 0, 1, 1], [], []>} : vector<8x16xf32>, vector<16x8xf32>, vector<8x8xf32> -> vector<8x8xf32>
    %481 = vector.extract_strided_slice %460 {offsets = [0, 8], sizes = [8, 8], strides = [1, 1]} : vector<8x32xf32> to vector<8x8xf32>
    %482 = vector.extract_strided_slice %461 {offsets = [0, 8], sizes = [16, 8], strides = [1, 1]} : vector<16x32xf32> to vector<16x8xf32>
    %483 = tpu.transpose %482, [1, 0] : vector<16x8xf32> -> vector<8x16xf32>
    %cst_199 = arith.constant dense<0.000000e+00> : vector<8x16xf32>
    %484 = tpu.matmul %481, %483, %cst_199 {dimension_numbers = #tpu.dot_dimension_numbers<[1], [0], [0], [1], [0, 0, 1, 1], [], []>} : vector<8x8xf32>, vector<8x16xf32>, vector<8x16xf32> -> vector<8x16xf32>
    %485 = vector.broadcast %50 : vector<1x16xf32> to vector<8x16xf32>
    %486 = arith.addf %484, %485 : vector<8x16xf32>
    %cst_200 = arith.constant dense<0xFF800000> : vector<8xf32>
    %487 = vector.multi_reduction <maximumf>, %486, %cst_200 [1] : vector<8x16xf32> to vector<8xf32>
    %488 = vector.shape_cast %487 : vector<8xf32> to vector<8x1xf32>
    %489 = vector.broadcast %488 : vector<8x1xf32> to vector<8x16xf32>
    %490 = arith.subf %486, %489 : vector<8x16xf32>
    %491 = math.exp %490 : vector<8x16xf32>
    %cst_201 = arith.constant dense<0.000000e+00> : vector<8xf32>
    %492 = vector.multi_reduction <add>, %491, %cst_201 [1] : vector<8x16xf32> to vector<8xf32>
    %493 = vector.shape_cast %492 : vector<8xf32> to vector<8x1xf32>
    %494 = tpu.reciprocal %493 {approx = true} : vector<8x1xf32> -> vector<8x1xf32>
    %495 = vector.broadcast %494 : vector<8x1xf32> to vector<8x16xf32>
    %496 = arith.mulf %491, %495 : vector<8x16xf32>
    %497 = vector.extract_strided_slice %462 {offsets = [0, 8], sizes = [16, 8], strides = [1, 1]} : vector<16x32xf32> to vector<16x8xf32>
    %cst_202 = arith.constant dense<0.000000e+00> : vector<8x8xf32>
    %498 = tpu.matmul %496, %497, %cst_202 {dimension_numbers = #tpu.dot_dimension_numbers<[1], [0], [0], [1], [0, 0, 1, 1], [], []>} : vector<8x16xf32>, vector<16x8xf32>, vector<8x8xf32> -> vector<8x8xf32>
    %499 = vector.extract_strided_slice %460 {offsets = [0, 16], sizes = [8, 8], strides = [1, 1]} : vector<8x32xf32> to vector<8x8xf32>
    %500 = vector.extract_strided_slice %461 {offsets = [0, 16], sizes = [16, 8], strides = [1, 1]} : vector<16x32xf32> to vector<16x8xf32>
    %501 = tpu.transpose %500, [1, 0] : vector<16x8xf32> -> vector<8x16xf32>
    %cst_203 = arith.constant dense<0.000000e+00> : vector<8x16xf32>
    %502 = tpu.matmul %499, %501, %cst_203 {dimension_numbers = #tpu.dot_dimension_numbers<[1], [0], [0], [1], [0, 0, 1, 1], [], []>} : vector<8x8xf32>, vector<8x16xf32>, vector<8x16xf32> -> vector<8x16xf32>
    %503 = vector.broadcast %50 : vector<1x16xf32> to vector<8x16xf32>
    %504 = arith.addf %502, %503 : vector<8x16xf32>
    %cst_204 = arith.constant dense<0xFF800000> : vector<8xf32>
    %505 = vector.multi_reduction <maximumf>, %504, %cst_204 [1] : vector<8x16xf32> to vector<8xf32>
    %506 = vector.shape_cast %505 : vector<8xf32> to vector<8x1xf32>
    %507 = vector.broadcast %506 : vector<8x1xf32> to vector<8x16xf32>
    %508 = arith.subf %504, %507 : vector<8x16xf32>
    %509 = math.exp %508 : vector<8x16xf32>
    %cst_205 = arith.constant dense<0.000000e+00> : vector<8xf32>
    %510 = vector.multi_reduction <add>, %509, %cst_205 [1] : vector<8x16xf32> to vector<8xf32>
    %511 = vector.shape_cast %510 : vector<8xf32> to vector<8x1xf32>
    %512 = tpu.reciprocal %511 {approx = true} : vector<8x1xf32> -> vector<8x1xf32>
    %513 = vector.broadcast %512 : vector<8x1xf32> to vector<8x16xf32>
    %514 = arith.mulf %509, %513 : vector<8x16xf32>
    %515 = vector.extract_strided_slice %462 {offsets = [0, 16], sizes = [16, 8], strides = [1, 1]} : vector<16x32xf32> to vector<16x8xf32>
    %cst_206 = arith.constant dense<0.000000e+00> : vector<8x8xf32>
    %516 = tpu.matmul %514, %515, %cst_206 {dimension_numbers = #tpu.dot_dimension_numbers<[1], [0], [0], [1], [0, 0, 1, 1], [], []>} : vector<8x16xf32>, vector<16x8xf32>, vector<8x8xf32> -> vector<8x8xf32>
    %517 = vector.extract_strided_slice %460 {offsets = [0, 24], sizes = [8, 8], strides = [1, 1]} : vector<8x32xf32> to vector<8x8xf32>
    %518 = vector.extract_strided_slice %461 {offsets = [0, 24], sizes = [16, 8], strides = [1, 1]} : vector<16x32xf32> to vector<16x8xf32>
    %519 = tpu.transpose %518, [1, 0] : vector<16x8xf32> -> vector<8x16xf32>
    %cst_207 = arith.constant dense<0.000000e+00> : vector<8x16xf32>
    %520 = tpu.matmul %517, %519, %cst_207 {dimension_numbers = #tpu.dot_dimension_numbers<[1], [0], [0], [1], [0, 0, 1, 1], [], []>} : vector<8x8xf32>, vector<8x16xf32>, vector<8x16xf32> -> vector<8x16xf32>
    %521 = vector.broadcast %50 : vector<1x16xf32> to vector<8x16xf32>
    %522 = arith.addf %520, %521 : vector<8x16xf32>
    %cst_208 = arith.constant dense<0xFF800000> : vector<8xf32>
    %523 = vector.multi_reduction <maximumf>, %522, %cst_208 [1] : vector<8x16xf32> to vector<8xf32>
    %524 = vector.shape_cast %523 : vector<8xf32> to vector<8x1xf32>
    %525 = vector.broadcast %524 : vector<8x1xf32> to vector<8x16xf32>
    %526 = arith.subf %522, %525 : vector<8x16xf32>
    %527 = math.exp %526 : vector<8x16xf32>
    %cst_209 = arith.constant dense<0.000000e+00> : vector<8xf32>
    %528 = vector.multi_reduction <add>, %527, %cst_209 [1] : vector<8x16xf32> to vector<8xf32>
    %529 = vector.shape_cast %528 : vector<8xf32> to vector<8x1xf32>
    %530 = tpu.reciprocal %529 {approx = true} : vector<8x1xf32> -> vector<8x1xf32>
    %531 = vector.broadcast %530 : vector<8x1xf32> to vector<8x16xf32>
    %532 = arith.mulf %527, %531 : vector<8x16xf32>
    %533 = vector.extract_strided_slice %462 {offsets = [0, 24], sizes = [16, 8], strides = [1, 1]} : vector<16x32xf32> to vector<16x8xf32>
    %cst_210 = arith.constant dense<0.000000e+00> : vector<8x8xf32>
    %534 = tpu.matmul %532, %533, %cst_210 {dimension_numbers = #tpu.dot_dimension_numbers<[1], [0], [0], [1], [0, 0, 1, 1], [], []>} : vector<8x16xf32>, vector<16x8xf32>, vector<8x8xf32> -> vector<8x8xf32>
    %535 = tpu.concatenate %480, %498, %516, %534 in 1 : vector<8x8xf32>, vector<8x8xf32>, vector<8x8xf32>, vector<8x8xf32> -> vector<8x32xf32>
    %c1_211 = arith.constant 1 : index
    %c0_212 = arith.constant 0 : index
    %c0_213 = arith.constant 0 : index
    %536 = vector.load %arg18[%c1_211, %c0_212, %c0_213] : memref<2x32x32xf32, #tpu.memory_space<vmem>>, vector<1x32x32xf32>
    %537 = vector.shape_cast %536 : vector<1x32x32xf32> to vector<32x32xf32>
    %cst_214 = arith.constant dense<0.000000e+00> : vector<8x32xf32>
    %538 = tpu.matmul %535, %537, %cst_214 {dimension_numbers = #tpu.dot_dimension_numbers<[1], [0], [0], [1], [0, 0, 1, 1], [], []>} : vector<8x32xf32>, vector<32x32xf32>, vector<8x32xf32> -> vector<8x32xf32>
    %c1_215 = arith.constant 1 : index
    %c0_216 = arith.constant 0 : index
    %c0_217 = arith.constant 0 : index
    %539 = vector.load %arg19[%c1_215, %c0_216, %c0_217] : memref<2x1x32xf32, #tpu.memory_space<vmem>>, vector<1x1x32xf32>
    %540 = vector.shape_cast %539 : vector<1x1x32xf32> to vector<1x32xf32>
    %541 = vector.broadcast %540 : vector<1x32xf32> to vector<8x32xf32>
    %542 = arith.addf %538, %541 : vector<8x32xf32>
    %543 = arith.addf %444, %542 : vector<8x32xf32>
    %544 = vector.extract_strided_slice %331 {offsets = [1, 0], sizes = [1, 32], strides = [1, 1]} : vector<3x32xf32> to vector<1x32xf32>
    %545 = vector.extract_strided_slice %333 {offsets = [1, 0], sizes = [1, 32], strides = [1, 1]} : vector<3x32xf32> to vector<1x32xf32>
    %cst_218 = arith.constant dense<0.000000e+00> : vector<8xf32>
    %546 = vector.multi_reduction <add>, %543, %cst_218 [1] : vector<8x32xf32> to vector<8xf32>
    %547 = vector.shape_cast %546 : vector<8xf32> to vector<8x1xf32>
    %cst_219 = arith.constant 3.200000e+01 : f32
    %548 = vector.broadcast %cst_219 : f32 to vector<8x1xf32>
    %549 = arith.divf %547, %548 : vector<8x1xf32>
    %550 = vector.broadcast %549 : vector<8x1xf32> to vector<8x32xf32>
    %551 = arith.subf %543, %550 : vector<8x32xf32>
    %552 = arith.mulf %551, %551 : vector<8x32xf32>
    %cst_220 = arith.constant dense<0.000000e+00> : vector<8xf32>
    %553 = vector.multi_reduction <add>, %552, %cst_220 [1] : vector<8x32xf32> to vector<8xf32>
    %554 = vector.shape_cast %553 : vector<8xf32> to vector<8x1xf32>
    %cst_221 = arith.constant 3.200000e+01 : f32
    %555 = vector.broadcast %cst_221 : f32 to vector<8x1xf32>
    %556 = arith.divf %554, %555 : vector<8x1xf32>
    %cst_222 = arith.constant 9.99999974E-6 : f32
    %557 = vector.broadcast %cst_222 : f32 to vector<8x1xf32>
    %558 = arith.addf %556, %557 : vector<8x1xf32>
    %559 = math.rsqrt %558 : vector<8x1xf32>
    %560 = vector.broadcast %559 : vector<8x1xf32> to vector<8x32xf32>
    %561 = arith.mulf %551, %560 : vector<8x32xf32>
    %562 = vector.broadcast %544 : vector<1x32xf32> to vector<8x32xf32>
    %563 = arith.mulf %562, %561 : vector<8x32xf32>
    %564 = vector.broadcast %545 : vector<1x32xf32> to vector<8x32xf32>
    %565 = arith.addf %563, %564 : vector<8x32xf32>
    %c1_223 = arith.constant 1 : index
    %c0_224 = arith.constant 0 : index
    %c0_225 = arith.constant 0 : index
    %566 = vector.load %arg22[%c1_223, %c0_224, %c0_225] : memref<2x32x64xf32, #tpu.memory_space<vmem>>, vector<1x32x64xf32>
    %567 = vector.shape_cast %566 : vector<1x32x64xf32> to vector<32x64xf32>
    %cst_226 = arith.constant dense<0.000000e+00> : vector<8x64xf32>
    %568 = tpu.matmul %565, %567, %cst_226 {dimension_numbers = #tpu.dot_dimension_numbers<[1], [0], [0], [1], [0, 0, 1, 1], [], []>} : vector<8x32xf32>, vector<32x64xf32>, vector<8x64xf32> -> vector<8x64xf32>
    %c1_227 = arith.constant 1 : index
    %c0_228 = arith.constant 0 : index
    %c0_229 = arith.constant 0 : index
    %569 = vector.load %arg23[%c1_227, %c0_228, %c0_229] : memref<2x1x64xf32, #tpu.memory_space<vmem>>, vector<1x1x64xf32>
    %570 = vector.shape_cast %569 : vector<1x1x64xf32> to vector<1x64xf32>
    %571 = vector.broadcast %570 : vector<1x64xf32> to vector<8x64xf32>
    %572 = arith.addf %568, %571 : vector<8x64xf32>
    %cst_230 = arith.constant 0.000000e+00 : f32
    %573 = vector.broadcast %cst_230 : f32 to vector<8x64xf32>
    %574 = arith.maximumf %572, %573 : vector<8x64xf32>
    %c1_231 = arith.constant 1 : index
    %c0_232 = arith.constant 0 : index
    %c0_233 = arith.constant 0 : index
    %575 = vector.load %arg24[%c1_231, %c0_232, %c0_233] : memref<2x64x32xf32, #tpu.memory_space<vmem>>, vector<1x64x32xf32>
    %576 = vector.shape_cast %575 : vector<1x64x32xf32> to vector<64x32xf32>
    %cst_234 = arith.constant dense<0.000000e+00> : vector<8x32xf32>
    %577 = tpu.matmul %574, %576, %cst_234 {dimension_numbers = #tpu.dot_dimension_numbers<[1], [0], [0], [1], [0, 0, 1, 1], [], []>} : vector<8x64xf32>, vector<64x32xf32>, vector<8x32xf32> -> vector<8x32xf32>
    %c1_235 = arith.constant 1 : index
    %c0_236 = arith.constant 0 : index
    %c0_237 = arith.constant 0 : index
    %578 = vector.load %arg25[%c1_235, %c0_236, %c0_237] : memref<2x1x32xf32, #tpu.memory_space<vmem>>, vector<1x1x32xf32>
    %579 = vector.shape_cast %578 : vector<1x1x32xf32> to vector<1x32xf32>
    %580 = vector.broadcast %579 : vector<1x32xf32> to vector<8x32xf32>
    %581 = arith.addf %577, %580 : vector<8x32xf32>
    %582 = arith.addf %565, %581 : vector<8x32xf32>
    %583 = vector.extract_strided_slice %331 {offsets = [2, 0], sizes = [1, 32], strides = [1, 1]} : vector<3x32xf32> to vector<1x32xf32>
    %584 = vector.extract_strided_slice %333 {offsets = [2, 0], sizes = [1, 32], strides = [1, 1]} : vector<3x32xf32> to vector<1x32xf32>
    %cst_238 = arith.constant dense<0.000000e+00> : vector<8xf32>
    %585 = vector.multi_reduction <add>, %582, %cst_238 [1] : vector<8x32xf32> to vector<8xf32>
    %586 = vector.shape_cast %585 : vector<8xf32> to vector<8x1xf32>
    %cst_239 = arith.constant 3.200000e+01 : f32
    %587 = vector.broadcast %cst_239 : f32 to vector<8x1xf32>
    %588 = arith.divf %586, %587 : vector<8x1xf32>
    %589 = vector.broadcast %588 : vector<8x1xf32> to vector<8x32xf32>
    %590 = arith.subf %582, %589 : vector<8x32xf32>
    %591 = arith.mulf %590, %590 : vector<8x32xf32>
    %cst_240 = arith.constant dense<0.000000e+00> : vector<8xf32>
    %592 = vector.multi_reduction <add>, %591, %cst_240 [1] : vector<8x32xf32> to vector<8xf32>
    %593 = vector.shape_cast %592 : vector<8xf32> to vector<8x1xf32>
    %cst_241 = arith.constant 3.200000e+01 : f32
    %594 = vector.broadcast %cst_241 : f32 to vector<8x1xf32>
    %595 = arith.divf %593, %594 : vector<8x1xf32>
    %cst_242 = arith.constant 9.99999974E-6 : f32
    %596 = vector.broadcast %cst_242 : f32 to vector<8x1xf32>
    %597 = arith.addf %595, %596 : vector<8x1xf32>
    %598 = math.rsqrt %597 : vector<8x1xf32>
    %599 = vector.broadcast %598 : vector<8x1xf32> to vector<8x32xf32>
    %600 = arith.mulf %590, %599 : vector<8x32xf32>
    %601 = vector.broadcast %583 : vector<1x32xf32> to vector<8x32xf32>
    %602 = arith.mulf %601, %600 : vector<8x32xf32>
    %603 = vector.broadcast %584 : vector<1x32xf32> to vector<8x32xf32>
    %604 = arith.addf %602, %603 : vector<8x32xf32>
    %c0_243 = arith.constant 0 : index
    %c0_244 = arith.constant 0 : index
    %605 = vector.load %arg26[%c0_243, %c0_244] : memref<32x128xf32, #tpu.memory_space<vmem>>, vector<32x128xf32>
    %cst_245 = arith.constant dense<0.000000e+00> : vector<8x128xf32>
    %606 = tpu.matmul %604, %605, %cst_245 {dimension_numbers = #tpu.dot_dimension_numbers<[1], [0], [0], [1], [0, 0, 1, 1], [], []>} : vector<8x32xf32>, vector<32x128xf32>, vector<8x128xf32> -> vector<8x128xf32>
    %c0_246 = arith.constant 0 : index
    %c0_247 = arith.constant 0 : index
    %607 = vector.load %arg27[%c0_246, %c0_247] : memref<1x128xf32, #tpu.memory_space<vmem>>, vector<1x128xf32>
    %608 = vector.broadcast %607 : vector<1x128xf32> to vector<8x128xf32>
    %609 = arith.addf %606, %608 : vector<8x128xf32>
    %cst_248 = arith.constant dense<0xFF800000> : vector<8xf32>
    %610 = vector.multi_reduction <maximumf>, %609, %cst_248 [1] : vector<8x128xf32> to vector<8xf32>
    %611 = vector.shape_cast %610 : vector<8xf32> to vector<8x1xf32>
    %612 = vector.broadcast %611 : vector<8x1xf32> to vector<8x128xf32>
    %613 = arith.subf %609, %612 : vector<8x128xf32>
    %614 = math.exp %613 : vector<8x128xf32>
    %cst_249 = arith.constant dense<0.000000e+00> : vector<8xf32>
    %615 = vector.multi_reduction <add>, %614, %cst_249 [1] : vector<8x128xf32> to vector<8xf32>
    %616 = vector.shape_cast %615 : vector<8xf32> to vector<8x1xf32>
    %617 = tpu.reciprocal %616 {approx = true} : vector<8x1xf32> -> vector<8x1xf32>
    %618 = vector.broadcast %617 : vector<8x1xf32> to vector<8x128xf32>
    %619 = arith.mulf %614, %618 : vector<8x128xf32>
    %c0_250 = arith.constant 0 : index
    %c0_251 = arith.constant 0 : index
    %620 = vector.load %arg28[%c0_250, %c0_251] : memref<32x32xf32, #tpu.memory_space<vmem>>, vector<32x32xf32>
    %cst_252 = arith.constant dense<0.000000e+00> : vector<8x32xf32>
    %621 = tpu.matmul %604, %620, %cst_252 {dimension_numbers = #tpu.dot_dimension_numbers<[1], [0], [0], [1], [0, 0, 1, 1], [], []>} : vector<8x32xf32>, vector<32x32xf32>, vector<8x32xf32> -> vector<8x32xf32>
    %c0_253 = arith.constant 0 : index
    %c0_254 = arith.constant 0 : index
    %622 = vector.load %arg29[%c0_253, %c0_254] : memref<1x32xf32, #tpu.memory_space<vmem>>, vector<1x32xf32>
    %623 = vector.broadcast %622 : vector<1x32xf32> to vector<8x32xf32>
    %624 = arith.addf %621, %623 : vector<8x32xf32>
    %cst_255 = arith.constant 0.353553385 : f32
    %625 = vector.broadcast %cst_255 : f32 to vector<8x32xf32>
    %626 = arith.mulf %624, %625 : vector<8x32xf32>
    %c0_256 = arith.constant 0 : index
    %c0_257 = arith.constant 0 : index
    %627 = vector.load %arg30[%c0_256, %c0_257] : memref<32x32xf32, #tpu.memory_space<vmem>>, vector<32x32xf32>
    %cst_258 = arith.constant dense<0.000000e+00> : vector<8x32xf32>
    %628 = tpu.matmul %5, %627, %cst_258 {dimension_numbers = #tpu.dot_dimension_numbers<[1], [0], [0], [1], [0, 0, 1, 1], [], []>} : vector<8x32xf32>, vector<32x32xf32>, vector<8x32xf32> -> vector<8x32xf32>
    %c0_259 = arith.constant 0 : index
    %c0_260 = arith.constant 0 : index
    %629 = vector.load %arg31[%c0_259, %c0_260] : memref<1x32xf32, #tpu.memory_space<vmem>>, vector<1x32xf32>
    %630 = vector.broadcast %629 : vector<1x32xf32> to vector<8x32xf32>
    %631 = arith.addf %628, %630 : vector<8x32xf32>
    %632 = vector.extract_strided_slice %626 {offsets = [0, 0], sizes = [8, 8], strides = [1, 1]} : vector<8x32xf32> to vector<8x8xf32>
    %633 = vector.extract_strided_slice %631 {offsets = [0, 0], sizes = [8, 8], strides = [1, 1]} : vector<8x32xf32> to vector<8x8xf32>
    %634 = tpu.transpose %633, [1, 0] : vector<8x8xf32> -> vector<8x8xf32>
    %cst_261 = arith.constant dense<0.000000e+00> : vector<8x8xf32>
    %635 = tpu.matmul %632, %634, %cst_261 {dimension_numbers = #tpu.dot_dimension_numbers<[1], [0], [0], [1], [0, 0, 1, 1], [], []>} : vector<8x8xf32>, vector<8x8xf32>, vector<8x8xf32> -> vector<8x8xf32>
    %636 = vector.broadcast %54 : vector<1x8xf32> to vector<8x8xf32>
    %637 = arith.addf %635, %636 : vector<8x8xf32>
    %cst_262 = arith.constant dense<0xFF800000> : vector<8xf32>
    %638 = vector.multi_reduction <maximumf>, %637, %cst_262 [1] : vector<8x8xf32> to vector<8xf32>
    %639 = vector.shape_cast %638 : vector<8xf32> to vector<8x1xf32>
    %640 = vector.broadcast %639 : vector<8x1xf32> to vector<8x8xf32>
    %641 = arith.subf %637, %640 : vector<8x8xf32>
    %642 = math.exp %641 : vector<8x8xf32>
    %cst_263 = arith.constant dense<0.000000e+00> : vector<8xf32>
    %643 = vector.multi_reduction <add>, %642, %cst_263 [1] : vector<8x8xf32> to vector<8xf32>
    %644 = vector.shape_cast %643 : vector<8xf32> to vector<8x1xf32>
    %645 = tpu.reciprocal %644 {approx = true} : vector<8x1xf32> -> vector<8x1xf32>
    %646 = vector.broadcast %645 : vector<8x1xf32> to vector<8x8xf32>
    %647 = arith.mulf %642, %646 : vector<8x8xf32>
    %648 = vector.extract_strided_slice %626 {offsets = [0, 8], sizes = [8, 8], strides = [1, 1]} : vector<8x32xf32> to vector<8x8xf32>
    %649 = vector.extract_strided_slice %631 {offsets = [0, 8], sizes = [8, 8], strides = [1, 1]} : vector<8x32xf32> to vector<8x8xf32>
    %650 = tpu.transpose %649, [1, 0] : vector<8x8xf32> -> vector<8x8xf32>
    %cst_264 = arith.constant dense<0.000000e+00> : vector<8x8xf32>
    %651 = tpu.matmul %648, %650, %cst_264 {dimension_numbers = #tpu.dot_dimension_numbers<[1], [0], [0], [1], [0, 0, 1, 1], [], []>} : vector<8x8xf32>, vector<8x8xf32>, vector<8x8xf32> -> vector<8x8xf32>
    %652 = vector.broadcast %54 : vector<1x8xf32> to vector<8x8xf32>
    %653 = arith.addf %651, %652 : vector<8x8xf32>
    %cst_265 = arith.constant dense<0xFF800000> : vector<8xf32>
    %654 = vector.multi_reduction <maximumf>, %653, %cst_265 [1] : vector<8x8xf32> to vector<8xf32>
    %655 = vector.shape_cast %654 : vector<8xf32> to vector<8x1xf32>
    %656 = vector.broadcast %655 : vector<8x1xf32> to vector<8x8xf32>
    %657 = arith.subf %653, %656 : vector<8x8xf32>
    %658 = math.exp %657 : vector<8x8xf32>
    %cst_266 = arith.constant dense<0.000000e+00> : vector<8xf32>
    %659 = vector.multi_reduction <add>, %658, %cst_266 [1] : vector<8x8xf32> to vector<8xf32>
    %660 = vector.shape_cast %659 : vector<8xf32> to vector<8x1xf32>
    %661 = tpu.reciprocal %660 {approx = true} : vector<8x1xf32> -> vector<8x1xf32>
    %662 = vector.broadcast %661 : vector<8x1xf32> to vector<8x8xf32>
    %663 = arith.mulf %658, %662 : vector<8x8xf32>
    %664 = arith.addf %647, %663 : vector<8x8xf32>
    %665 = vector.extract_strided_slice %626 {offsets = [0, 16], sizes = [8, 8], strides = [1, 1]} : vector<8x32xf32> to vector<8x8xf32>
    %666 = vector.extract_strided_slice %631 {offsets = [0, 16], sizes = [8, 8], strides = [1, 1]} : vector<8x32xf32> to vector<8x8xf32>
    %667 = tpu.transpose %666, [1, 0] : vector<8x8xf32> -> vector<8x8xf32>
    %cst_267 = arith.constant dense<0.000000e+00> : vector<8x8xf32>
    %668 = tpu.matmul %665, %667, %cst_267 {dimension_numbers = #tpu.dot_dimension_numbers<[1], [0], [0], [1], [0, 0, 1, 1], [], []>} : vector<8x8xf32>, vector<8x8xf32>, vector<8x8xf32> -> vector<8x8xf32>
    %669 = vector.broadcast %54 : vector<1x8xf32> to vector<8x8xf32>
    %670 = arith.addf %668, %669 : vector<8x8xf32>
    %cst_268 = arith.constant dense<0xFF800000> : vector<8xf32>
    %671 = vector.multi_reduction <maximumf>, %670, %cst_268 [1] : vector<8x8xf32> to vector<8xf32>
    %672 = vector.shape_cast %671 : vector<8xf32> to vector<8x1xf32>
    %673 = vector.broadcast %672 : vector<8x1xf32> to vector<8x8xf32>
    %674 = arith.subf %670, %673 : vector<8x8xf32>
    %675 = math.exp %674 : vector<8x8xf32>
    %cst_269 = arith.constant dense<0.000000e+00> : vector<8xf32>
    %676 = vector.multi_reduction <add>, %675, %cst_269 [1] : vector<8x8xf32> to vector<8xf32>
    %677 = vector.shape_cast %676 : vector<8xf32> to vector<8x1xf32>
    %678 = tpu.reciprocal %677 {approx = true} : vector<8x1xf32> -> vector<8x1xf32>
    %679 = vector.broadcast %678 : vector<8x1xf32> to vector<8x8xf32>
    %680 = arith.mulf %675, %679 : vector<8x8xf32>
    %681 = arith.addf %664, %680 : vector<8x8xf32>
    %682 = vector.extract_strided_slice %626 {offsets = [0, 24], sizes = [8, 8], strides = [1, 1]} : vector<8x32xf32> to vector<8x8xf32>
    %683 = vector.extract_strided_slice %631 {offsets = [0, 24], sizes = [8, 8], strides = [1, 1]} : vector<8x32xf32> to vector<8x8xf32>
    %684 = tpu.transpose %683, [1, 0] : vector<8x8xf32> -> vector<8x8xf32>
    %cst_270 = arith.constant dense<0.000000e+00> : vector<8x8xf32>
    %685 = tpu.matmul %682, %684, %cst_270 {dimension_numbers = #tpu.dot_dimension_numbers<[1], [0], [0], [1], [0, 0, 1, 1], [], []>} : vector<8x8xf32>, vector<8x8xf32>, vector<8x8xf32> -> vector<8x8xf32>
    %686 = vector.broadcast %54 : vector<1x8xf32> to vector<8x8xf32>
    %687 = arith.addf %685, %686 : vector<8x8xf32>
    %cst_271 = arith.constant dense<0xFF800000> : vector<8xf32>
    %688 = vector.multi_reduction <maximumf>, %687, %cst_271 [1] : vector<8x8xf32> to vector<8xf32>
    %689 = vector.shape_cast %688 : vector<8xf32> to vector<8x1xf32>
    %690 = vector.broadcast %689 : vector<8x1xf32> to vector<8x8xf32>
    %691 = arith.subf %687, %690 : vector<8x8xf32>
    %692 = math.exp %691 : vector<8x8xf32>
    %cst_272 = arith.constant dense<0.000000e+00> : vector<8xf32>
    %693 = vector.multi_reduction <add>, %692, %cst_272 [1] : vector<8x8xf32> to vector<8xf32>
    %694 = vector.shape_cast %693 : vector<8xf32> to vector<8x1xf32>
    %695 = tpu.reciprocal %694 {approx = true} : vector<8x1xf32> -> vector<8x1xf32>
    %696 = vector.broadcast %695 : vector<8x1xf32> to vector<8x8xf32>
    %697 = arith.mulf %692, %696 : vector<8x8xf32>
    %698 = arith.addf %681, %697 : vector<8x8xf32>
    %cst_273 = arith.constant 2.500000e-01 : f32
    %699 = vector.broadcast %cst_273 : f32 to vector<8x8xf32>
    %700 = arith.mulf %698, %699 : vector<8x8xf32>
    %cst_274 = arith.constant dense<0.000000e+00> : vector<8x128xf32>
    %701 = tpu.matmul %700, %7, %cst_274 {dimension_numbers = #tpu.dot_dimension_numbers<[1], [0], [0], [1], [0, 0, 1, 1], [], []>} : vector<8x8xf32>, vector<8x128xf32>, vector<8x128xf32> -> vector<8x128xf32>
    %c0_275 = arith.constant 0 : index
    %c0_276 = arith.constant 0 : index
    %702 = vector.load %arg32[%c0_275, %c0_276] : memref<1x32xf32, #tpu.memory_space<vmem>>, vector<1x32xf32>
    %703 = vector.broadcast %702 : vector<1x32xf32> to vector<8x32xf32>
    %704 = arith.mulf %604, %703 : vector<8x32xf32>
    %cst_277 = arith.constant dense<0.000000e+00> : vector<8xf32>
    %705 = vector.multi_reduction <add>, %704, %cst_277 [1] : vector<8x32xf32> to vector<8xf32>
    %706 = vector.shape_cast %705 : vector<8xf32> to vector<8x1xf32>
    %c0_278 = arith.constant 0 : index
    %c0_279 = arith.constant 0 : index
    %707 = vector.load %arg33[%c0_278, %c0_279] : memref<1x1xf32, #tpu.memory_space<vmem>>, vector<1x1xf32>
    %708 = vector.broadcast %707 : vector<1x1xf32> to vector<8x1xf32>
    %709 = arith.addf %706, %708 : vector<8x1xf32>
    %cst_280 = arith.constant 0.000000e+00 : f32
    %710 = vector.broadcast %cst_280 : f32 to vector<8x1xf32>
    %711 = arith.subf %710, %709 : vector<8x1xf32>
    %712 = math.exp %711 : vector<8x1xf32>
    %cst_281 = arith.constant 1.000000e+00 : f32
    %713 = vector.broadcast %cst_281 : f32 to vector<8x1xf32>
    %714 = arith.addf %713, %712 : vector<8x1xf32>
    %cst_282 = arith.constant 1.000000e+00 : f32
    %715 = vector.broadcast %cst_282 : f32 to vector<8x1xf32>
    %716 = arith.divf %715, %714 : vector<8x1xf32>
    %717 = vector.broadcast %716 : vector<8x1xf32> to vector<8x128xf32>
    %718 = arith.mulf %717, %619 : vector<8x128xf32>
    %cst_283 = arith.constant 1.000000e+00 : f32
    %719 = vector.broadcast %cst_283 : f32 to vector<8x1xf32>
    %720 = arith.subf %719, %716 : vector<8x1xf32>
    %721 = vector.broadcast %720 : vector<8x1xf32> to vector<8x128xf32>
    %722 = arith.mulf %721, %701 : vector<8x128xf32>
    %723 = arith.addf %718, %722 : vector<8x128xf32>
    %c0_284 = arith.constant 0 : index
    %c0_285 = arith.constant 0 : index
    %c0_286 = arith.constant 0 : index
    %724 = vector.load %arg34[%c0_284, %c0_285, %c0_286] : memref<1x8x128xf32, #tpu.memory_space<vmem>>, vector<1x8x128xf32>
    %725 = vector.shape_cast %724 : vector<1x8x128xf32> to vector<8x128xf32>
    %726 = vector.shape_cast %723 : vector<8x128xf32> to vector<1x8x128xf32>
    tpu.vector_store %arg34[%c0_284, %c0_285, %c0_286], %726 {strides = array<i32>} : memref<1x8x128xf32, #tpu.memory_space<vmem>>, vector<1x8x128xf32>,
    return
  }
  func.func @transform_0(%arg0: i32) -> (i32, i32, i32) {
    %c0_i32 = arith.constant 0 : i32
    %c0_i32_0 = arith.constant 0 : i32
    %c0_i32_1 = arith.constant 0 : i32
    return %arg0, %c0_i32, %c0_i32_0 : i32, i32, i32
  }
  func.func @transform_1(%arg0: i32) -> (i32, i32, i32) {
    %c0_i32 = arith.constant 0 : i32
    %c0_i32_0 = arith.constant 0 : i32
    %c0_i32_1 = arith.constant 0 : i32
    return %arg0, %c0_i32, %c0_i32_0 : i32, i32, i32
  }
  func.func @transform_2(%arg0: i32) -> (i32, i32, i32) {
    %c0_i32 = arith.constant 0 : i32
    %c0_i32_0 = arith.constant 0 : i32
    %c0_i32_1 = arith.constant 0 : i32
    return %arg0, %c0_i32, %c0_i32_0 : i32, i32, i32
  }
  func.func @transform_3(%arg0: i32) -> (i32, i32, i32) {
    %c0_i32 = arith.constant 0 : i32
    %c0_i32_0 = arith.constant 0 : i32
    %c0_i32_1 = arith.constant 0 : i32
    return %arg0, %c0_i32, %c0_i32_0 : i32, i32, i32
  }
  func.func @transform_4(%arg0: i32) -> (i32, i32, i32) {
    %c0_i32 = arith.constant 0 : i32
    %c0_i32_0 = arith.constant 0 : i32
    %c0_i32_1 = arith.constant 0 : i32
    return %arg0, %c0_i32, %c0_i32_0 : i32, i32, i32
  }
  func.func @transform_5(%arg0: i32) -> (i32, i32, i32) {
    %c0_i32 = arith.constant 0 : i32
    %c0_i32_0 = arith.constant 0 : i32
    %c0_i32_1 = arith.constant 0 : i32
    return %arg0, %c0_i32, %c0_i32_0 : i32, i32, i32
  }
  func.func @transform_6(%arg0: i32) -> (i32, i32, i32) {
    %c0_i32 = arith.constant 0 : i32
    %c0_i32_0 = arith.constant 0 : i32
    %c0_i32_1 = arith.constant 0 : i32
    return %arg0, %c0_i32, %c0_i32_0 : i32, i32, i32
  }
  func.func @transform_7(%arg0: i32) -> (i32, i32) {
    %c0_i32 = arith.constant 0 : i32
    %c0_i32_0 = arith.constant 0 : i32
    %c0_i32_1 = arith.constant 0 : i32
    return %c0_i32, %c0_i32_0 : i32, i32
  }
  func.func @transform_8(%arg0: i32) -> (i32, i32) {
    %c0_i32 = arith.constant 0 : i32
    %c0_i32_0 = arith.constant 0 : i32
    %c0_i32_1 = arith.constant 0 : i32
    return %c0_i32, %c0_i32_0 : i32, i32
  }
  func.func @transform_9(%arg0: i32) -> (i32, i32, i32) {
    %c0_i32 = arith.constant 0 : i32
    %c0_i32_0 = arith.constant 0 : i32
    %c0_i32_1 = arith.constant 0 : i32
    %c0_i32_2 = arith.constant 0 : i32
    return %c0_i32, %c0_i32_0, %c0_i32_1 : i32, i32, i32
  }
  func.func @transform_10(%arg0: i32) -> (i32, i32, i32) {
    %c0_i32 = arith.constant 0 : i32
    %c0_i32_0 = arith.constant 0 : i32
    %c0_i32_1 = arith.constant 0 : i32
    %c0_i32_2 = arith.constant 0 : i32
    return %c0_i32, %c0_i32_0, %c0_i32_1 : i32, i32, i32
  }
  func.func @transform_11(%arg0: i32) -> (i32, i32, i32) {
    %c0_i32 = arith.constant 0 : i32
    %c0_i32_0 = arith.constant 0 : i32
    %c0_i32_1 = arith.constant 0 : i32
    %c0_i32_2 = arith.constant 0 : i32
    return %c0_i32, %c0_i32_0, %c0_i32_1 : i32, i32, i32
  }
  func.func @transform_12(%arg0: i32) -> (i32, i32, i32) {
    %c0_i32 = arith.constant 0 : i32
    %c0_i32_0 = arith.constant 0 : i32
    %c0_i32_1 = arith.constant 0 : i32
    %c0_i32_2 = arith.constant 0 : i32
    return %c0_i32, %c0_i32_0, %c0_i32_1 : i32, i32, i32
  }
  func.func @transform_13(%arg0: i32) -> (i32, i32, i32) {
    %c0_i32 = arith.constant 0 : i32
    %c0_i32_0 = arith.constant 0 : i32
    %c0_i32_1 = arith.constant 0 : i32
    %c0_i32_2 = arith.constant 0 : i32
    return %c0_i32, %c0_i32_0, %c0_i32_1 : i32, i32, i32
  }
  func.func @transform_14(%arg0: i32) -> (i32, i32, i32) {
    %c0_i32 = arith.constant 0 : i32
    %c0_i32_0 = arith.constant 0 : i32
    %c0_i32_1 = arith.constant 0 : i32
    %c0_i32_2 = arith.constant 0 : i32
    return %c0_i32, %c0_i32_0, %c0_i32_1 : i32, i32, i32
  }
  func.func @transform_15(%arg0: i32) -> (i32, i32, i32) {
    %c0_i32 = arith.constant 0 : i32
    %c0_i32_0 = arith.constant 0 : i32
    %c0_i32_1 = arith.constant 0 : i32
    %c0_i32_2 = arith.constant 0 : i32
    return %c0_i32, %c0_i32_0, %c0_i32_1 : i32, i32, i32
  }
  func.func @transform_16(%arg0: i32) -> (i32, i32, i32) {
    %c0_i32 = arith.constant 0 : i32
    %c0_i32_0 = arith.constant 0 : i32
    %c0_i32_1 = arith.constant 0 : i32
    %c0_i32_2 = arith.constant 0 : i32
    return %c0_i32, %c0_i32_0, %c0_i32_1 : i32, i32, i32
  }
  func.func @transform_17(%arg0: i32) -> (i32, i32, i32) {
    %c0_i32 = arith.constant 0 : i32
    %c0_i32_0 = arith.constant 0 : i32
    %c0_i32_1 = arith.constant 0 : i32
    %c0_i32_2 = arith.constant 0 : i32
    return %c0_i32, %c0_i32_0, %c0_i32_1 : i32, i32, i32
  }
  func.func @transform_18(%arg0: i32) -> (i32, i32, i32) {
    %c0_i32 = arith.constant 0 : i32
    %c0_i32_0 = arith.constant 0 : i32
    %c0_i32_1 = arith.constant 0 : i32
    %c0_i32_2 = arith.constant 0 : i32
    return %c0_i32, %c0_i32_0, %c0_i32_1 : i32, i32, i32
  }
  func.func @transform_19(%arg0: i32) -> (i32, i32, i32) {
    %c0_i32 = arith.constant 0 : i32
    %c0_i32_0 = arith.constant 0 : i32
    %c0_i32_1 = arith.constant 0 : i32
    %c0_i32_2 = arith.constant 0 : i32
    return %c0_i32, %c0_i32_0, %c0_i32_1 : i32, i32, i32
  }
  func.func @transform_20(%arg0: i32) -> (i32, i32, i32) {
    %c0_i32 = arith.constant 0 : i32
    %c0_i32_0 = arith.constant 0 : i32
    %c0_i32_1 = arith.constant 0 : i32
    %c0_i32_2 = arith.constant 0 : i32
    return %c0_i32, %c0_i32_0, %c0_i32_1 : i32, i32, i32
  }
  func.func @transform_21(%arg0: i32) -> (i32, i32, i32) {
    %c0_i32 = arith.constant 0 : i32
    %c0_i32_0 = arith.constant 0 : i32
    %c0_i32_1 = arith.constant 0 : i32
    %c0_i32_2 = arith.constant 0 : i32
    return %c0_i32, %c0_i32_0, %c0_i32_1 : i32, i32, i32
  }
  func.func @transform_22(%arg0: i32) -> (i32, i32, i32) {
    %c0_i32 = arith.constant 0 : i32
    %c0_i32_0 = arith.constant 0 : i32
    %c0_i32_1 = arith.constant 0 : i32
    %c0_i32_2 = arith.constant 0 : i32
    return %c0_i32, %c0_i32_0, %c0_i32_1 : i32, i32, i32
  }
  func.func @transform_23(%arg0: i32) -> (i32, i32, i32) {
    %c0_i32 = arith.constant 0 : i32
    %c0_i32_0 = arith.constant 0 : i32
    %c0_i32_1 = arith.constant 0 : i32
    %c0_i32_2 = arith.constant 0 : i32
    return %c0_i32, %c0_i32_0, %c0_i32_1 : i32, i32, i32
  }
  func.func @transform_24(%arg0: i32) -> (i32, i32, i32) {
    %c0_i32 = arith.constant 0 : i32
    %c0_i32_0 = arith.constant 0 : i32
    %c0_i32_1 = arith.constant 0 : i32
    %c0_i32_2 = arith.constant 0 : i32
    return %c0_i32, %c0_i32_0, %c0_i32_1 : i32, i32, i32
  }
  func.func @transform_25(%arg0: i32) -> (i32, i32) {
    %c0_i32 = arith.constant 0 : i32
    %c0_i32_0 = arith.constant 0 : i32
    %c0_i32_1 = arith.constant 0 : i32
    return %c0_i32, %c0_i32_0 : i32, i32
  }
  func.func @transform_26(%arg0: i32) -> (i32, i32) {
    %c0_i32 = arith.constant 0 : i32
    %c0_i32_0 = arith.constant 0 : i32
    %c0_i32_1 = arith.constant 0 : i32
    return %c0_i32, %c0_i32_0 : i32, i32
  }
  func.func @transform_27(%arg0: i32) -> (i32, i32) {
    %c0_i32 = arith.constant 0 : i32
    %c0_i32_0 = arith.constant 0 : i32
    %c0_i32_1 = arith.constant 0 : i32
    return %c0_i32, %c0_i32_0 : i32, i32
  }
  func.func @transform_28(%arg0: i32) -> (i32, i32) {
    %c0_i32 = arith.constant 0 : i32
    %c0_i32_0 = arith.constant 0 : i32
    %c0_i32_1 = arith.constant 0 : i32
    return %c0_i32, %c0_i32_0 : i32, i32
  }
  func.func @transform_29(%arg0: i32) -> (i32, i32) {
    %c0_i32 = arith.constant 0 : i32
    %c0_i32_0 = arith.constant 0 : i32
    %c0_i32_1 = arith.constant 0 : i32
    return %c0_i32, %c0_i32_0 : i32, i32
  }
  func.func @transform_30(%arg0: i32) -> (i32, i32) {
    %c0_i32 = arith.constant 0 : i32
    %c0_i32_0 = arith.constant 0 : i32
    %c0_i32_1 = arith.constant 0 : i32
    return %c0_i32, %c0_i32_0 : i32, i32
  }
  func.func @transform_31(%arg0: i32) -> (i32, i32) {
    %c0_i32 = arith.constant 0 : i32
    %c0_i32_0 = arith.constant 0 : i32
    %c0_i32_1 = arith.constant 0 : i32
    return %c0_i32, %c0_i32_0 : i32, i32
  }
  func.func @transform_32(%arg0: i32) -> (i32, i32) {
    %c0_i32 = arith.constant 0 : i32
    %c0_i32_0 = arith.constant 0 : i32
    %c0_i32_1 = arith.constant 0 : i32
    return %c0_i32, %c0_i32_0 : i32, i32
  }
  func.func @transform_33(%arg0: i32) -> (i32, i32, i32) {
    %c0_i32 = arith.constant 0 : i32
    %c0_i32_0 = arith.constant 0 : i32
    %c0_i32_1 = arith.constant 0 : i32
    return %arg0, %c0_i32, %c0_i32_0 : i32, i32, i32
  }
}

</mosaic_0001>

<bundles_post_ra>
// kernel: _lambda_.1
= control target key start
LH: loop header
LB: loop body
LE: loop exit
PB: predicated region body
PF: predicated region fallthrough
CT: control target
= control target key end

     0   :  { %s7481_s6 = smov 1   ;;  %s7482_s10 = smov 2   ;;  %s8605_s0 = inlined_call_operand.smem [shape: u32[34], index: -1, kind: input, shape index: {}] }
   0x1   :  { %s7546_s5 = sld [smem:[%s8605_s0]]   ;;  %s7483_s14 = smov 3  }
   0x2   :  { %s7551_s9 = sld [smem:[%s8605_s0 + %s7481_s6]]   ;;  %s7484_s18 = smov 4  }
   0x3   :  { %s7556_s13 = sld [smem:[%s8605_s0 + %s7482_s10]]   ;;  %s7485_s22 = smov 5  }
   0x4   :  { %s7561_s17 = sld [smem:[%s8605_s0 + %s7483_s14]]   ;;  %s7486_s26 = smov 6  }
   0x5   :  { %s7566_s21 = sld [smem:[%s8605_s0 + %s7484_s18]]   ;;  %s7487_s30 = smov 7  }
   0x6   :  { %s7571_s25 = sld [smem:[%s8605_s0 + %s7485_s22]]   ;;  %s7488_s4 = smov 8  }
   0x7   :  { %8662 = sst [smem:[#allocation16_spill]] %s7546_s5  ;;  %s7489_s10 = smov 9  }
   0x8   :  { %8663 = sst [smem:[#allocation17_spill]] %s7551_s9  ;;  %s7490_s15 = smov 10  }
   0x9   :  { %8664 = sst [smem:[#allocation18_spill]] %s7556_s13  ;;  %s7491_s20 = smov 11  }
   0xa   :  { %8665 = sst [smem:[#allocation19_spill]] %s7561_s17  ;;  %s7493_s1 = smov 13  }
   0xb   :  { %8666 = sst [smem:[#allocation20_spill]] %s7566_s21  ;;  %s7494_s7 = smov 14  }
   0xc   :  { %8667 = sst [smem:[#allocation21_spill]] %s7571_s25  ;;  %s7496_s22 = smov 16  }
   0xd   :  { %s7576_s29 = sld [smem:[%s8605_s0 + %s7486_s26]]   ;;  %s7492_s26 = smov 12  }
   0xe   :  { %s7581_s3 = sld [smem:[%s8605_s0 + %s7487_s30]]   ;;  %s7497_s28 = smov 17  }
   0xf   :  { %s7586_s8 = sld [smem:[%s8605_s0 + %s7488_s4]]  }
  0x10   :  { %s7591_s14 = sld [smem:[%s8605_s0 + %s7489_s10]]  }
  0x11   :  { %s7596_s19 = sld [smem:[%s8605_s0 + %s7490_s15]]   ;;  %s7495_s15 = smov 15  }
  0x12   :  { %s7601_s24 = sld [smem:[%s8605_s0 + %s7491_s20]]  }
  0x13   :  { %8668 = sst [smem:[#allocation22_spill]] %s7576_s29 }
  0x14   :  { %8669 = sst [smem:[#allocation23_spill]] %s7581_s3 }
  0x15   :  { %8670 = sst [smem:[#allocation24_spill]] %s7586_s8 }
  0x16   :  { %8671 = sst [smem:[#allocation25_spill]] %s7591_s14 }
  0x17   :  { %8672 = sst [smem:[#allocation26_spill]] %s7596_s19 }
  0x18   :  { %8673 = sst [smem:[#allocation27_spill]] %s7601_s24 }
  0x19   :  { %s7606_s30 = sld [smem:[%s8605_s0 + %s7492_s26]]  }
  0x1a   :  { %s7611_s6 = sld [smem:[%s8605_s0 + %s7493_s1]]   ;;  %s7513_s1 = smov 33  }
  0x1b   :  { %s7616_s12 = sld [smem:[%s8605_s0 + %s7494_s7]]   ;;  %s7498_s7 = smov 18  }
  0x1c   :  { %s7621_s20 = sld [smem:[%s8605_s0 + %s7495_s15]]   ;;  %s7499_s15 = smov 19  }
  0x1d   :  { %s7626_s27 = sld [smem:[%s8605_s0 + %s7496_s22]]   ;;  %s7500_s22 = smov 20  }
  0x1e   :  { %s7631_s4 = sld [smem:[%s8605_s0 + %s7497_s28]]   ;;  %s7501_s28 = smov 21  }
  0x1f   :  { %s7636_s17 = sld [smem:[%s8605_s0 + %s7498_s7]]   ;;  %s7502_s7 = smov 22  }
  0x20   :  { %s7641_s29 = sld [smem:[%s8605_s0 + %s7499_s15]]   ;;  %s7503_s15 = smov 23  }
  0x21   :  { %8674 = sst [smem:[#allocation28_spill]] %s7616_s12 }
  0x22   :  { %s7646_s25 = sld [smem:[%s8605_s0 + %s7500_s22]]   ;;  %s7504_s22 = smov 24  }
  0x23   :  { %8675 = sst [smem:[#allocation29_spill]] %s7626_s27 }
  0x24   :  { %8676 = sst [smem:[#allocation30_spill]] %s7631_s4 }
  0x25   :  { %8677 = sst [smem:[#allocation31_spill]] %s7636_s17 }
  0x26   :  { %s7651_s4 = sld [smem:[%s8605_s0 + %s7501_s28]]   ;;  %s7505_s28 = smov 25  }
  0x27   :  { %s7656_s17 = sld [smem:[%s8605_s0 + %s7502_s7]]   ;;  %s7506_s7 = smov 26  }
  0x28   :  { %8678 = sst [smem:[#allocation32_spill]] %s7646_s25 }
  0x29   :  { %s7661_s12 = sld [smem:[%s8605_s0 + %s7503_s15]]   ;;  %s7507_s15 = smov 27  }
  0x2a   :  { %s7666_s27 = sld [smem:[%s8605_s0 + %s7504_s22]]   ;;  %s7508_s22 = smov 28  }
  0x2c   :  { %8679 = sst [smem:[#allocation33_spill]] %s7651_s4 }
  0x2d   :  { %8680 = sst [smem:[#allocation34_spill]] %s7656_s17 }
  0x2e   :  { %s7671_s4 = sld [smem:[%s8605_s0 + %s7505_s28]]   ;;  %s7509_s28 = smov 29  }
  0x2f   :  { %8681 = sst [smem:[#allocation35_spill]] %s7661_s12 }
  0x30   :  { %8682 = sst [smem:[#allocation36_spill]] %s7666_s27 }
  0x31   :  { %s7676_s17 = sld [smem:[%s8605_s0 + %s7506_s7]]   ;;  %s7510_s7 = smov 30  }
  0x32   :  { %s7681_s12 = sld [smem:[%s8605_s0 + %s7507_s15]]   ;;  %s7511_s15 = smov 31  }
  0x33   :  { %s7686_s27 = sld [smem:[%s8605_s0 + %s7508_s22]]   ;;  %s7512_s22 = smov 32  }
  0x34   :  { %8683 = sst [smem:[#allocation37_spill]] %s7671_s4 }
  0x35   :  { %s7691_s25 = sld [smem:[%s8605_s0 + %s7509_s28]]  }
  0x37   :  { %8684 = sst [smem:[#allocation38_spill]] %s7676_s17 }
  0x38   :  { %8685 = sst [smem:[#allocation39_spill]] %s7681_s12 }
  0x39   :  { %8686 = sst [smem:[#allocation40_spill]] %s7686_s27 }
  0x3a   :  { %s7696_s17 = sld [smem:[%s8605_s0 + %s7510_s7]]  }
  0x3b   :  { %8687 = sst [smem:[#allocation41_spill]] %s7691_s25 }
  0x3c   :  { %s7701_s12 = sld [smem:[%s8605_s0 + %s7511_s15]]  }
  0x3d   :  { %s6297_s27 = sld [smem:[%s8605_s0 + %s7512_s22]]  }
  0x3e   :  { %s7709_s25 = sld [smem:[%s8605_s0 + %s7513_s1]]  }
  0x43   :  { %v72_v0 = vstv %s6297_s27 }
  0x44   :  { %8688 = sst [smem:[#allocation42_spill]] %s7709_s25  ;;  %73 = vst [vmem:[#allocation2] sm:$0x1] %v72_v0 }
  0x45   :  { %74 = vsyncpa [#allocation4], 0 }
  0x46   :  { %76 = vsyncpa [#allocation4 + $0x1], 0 }
  0x47   :  { %77 = vsyncpa [#allocation7], 0 }
  0x48   :  { %78 = vsyncpa [#allocation10], 0 }
  0x49   :  { %79 = vsyncpa [#allocation5], 0 }
  0x4a   :  { %81 = vsyncpa [#allocation5 + $0x1], 0  ;;  %s7711_s7 = smov 0   ;;  %s7713_s10 = smov 0  }
  0x4b   :  { %s7715_s11 = smov 0   ;;  %s7717_s15 = smov 0  }
  0x4c LB: > { %s8689_s19 = sld [smem:[#allocation26_spill]]  ;;  %s7732_s0 = sadd.s32 4294967295, %s7479_s15   ;;  %s7471_s10 = sphi %s7713_s10, %s8765_s10   ;;  %s7467_s7 = sphi %s7711_s7, %s8764_s7   ;;  %s7479_s15 = sphi %s7717_s15, %s8763_s15   ;;  %s7475_s11 = sphi %s7715_s11, %s8766_s11  }
  0x4d   : > { %s8690_s13 = sld [smem:[#allocation18_spill]]  ;;  %s6300_s27 = sadd.s32 4294967294, %s7479_s15  }
  0x4e   : > { %8691 = sst [smem:[#allocation43_spill]] %s7467_s7  ;;  %p159_p0 = scmp.ne.s32.totalorder %s7471_s10, %s7467_s7 }
  0x4f   : > { %8692 = sst [smem:[#allocation44_spill]] %s7471_s10  ;;  %p8619_p1 = scmp.eq.s32.totalorder %s7732_s0, 0 }
  0x50   : > { %8693 = sst [smem:[#allocation45_spill]] %s7475_s11  ;;  %p839_p3 = scmp.eq.s32.totalorder %s6300_s27, 1 }
  0x51   : > { %8694 = sst [smem:[#allocation46_spill]] %s7479_s15  ;;  %p7741_p4 = por %p8619_p1, %p159_p0 }
  0x52   : > { %p6301_p5 = scmp.ge.s32.totalorder %s7479_s15, 1  ;;  %p7746_p6 = por %p839_p3, %p159_p0 }
  0x53   : > { %s8695_s16 = scalar_select %p7741_p4, 1, 0 }
  0x54   : > { %s8696_s18 = scalar_select %p7746_p6, 1, 0 }
  0x55   : > { %p846_p7 = scmp.lt.s32.totalorder %s7479_s15, 3  ;;  %s7514_s23 = smov [#allocation6]  }
  0x56   : > { %8697 = sst [smem:[#allocation47_spill]] %s8696_s18  ;;  %s864_s26 = sshll.u32 %s7514_s23, 4  ;;  %s865_s26 = int_to_ptr.vmem [resolvable:$true] %s864_s26 }
  0x57   : > { %p7751_p8 = pnand %p6301_p5, %p846_p7  ;;  %s7515_s28 = smov [#allocation8]  }
  0x58   : > { %s880_s2 = sshll.u32 %s7515_s28, 4  ;;  %s7516_s27 = smov [#allocation9]   ;;  %s881_s2 = int_to_ptr.vmem [resolvable:$true] %s880_s2 }
  0x59   : > { %s8698_s22 = scalar_select %p7751_p8, 1, 0 }
  0x5a   : > { %p7084_p9 = pneg %p7751_p8  ;;  %s932_s18 = sshll.u32 %s7516_s27, 4  ;;  %s933_s18 = int_to_ptr.vmem [resolvable:$true] %s932_s18 }
  0x5b   : > { %s7312_s7 = scalar_lea.vmem %s865_s26, 1024  ;;  %p7320_p5 = scmp.lt.s32.totalorder %s865_s26, %s865_s26 }
  0x5c   : > { %p7760_p11 = pnand %p7084_p9, %p8619_p1  ;;  %p7313_p13 = scmp.ne.s32.totalorder %s865_s26, %s7312_s7 }
  0x5d   : > { %p7321_p7 = scmp.lt.s32.totalorder %s7312_s7, %s7312_s7 }
  0x5e   : > { %p7303_p12 = pneg %p7760_p11 }
  0x5f   : > { %p7322_p9 = por %p7321_p7, %p7320_p5 }
  0x60   : > { %p7315_p0 = pnand %p7313_p13, %p7303_p12 }
  0x62   : > { %p7316_p3 = pneg %p7315_p0 }
  0x64   : > { %p7323_p10 = pnand %p7322_p9, %p7316_p3 }
  0x66   : > { %7326 = shalt.err (!%p7323_p10)
}
  0x67   : > { %s7517_s23 = smov 128   ;;  %s8700_s14 = sld [smem:[#allocation25_spill]] }
  0x68   : > { %s7518_s28 = smov 8   ;;  %s7338_s27 = scalar_lea.vmem %s881_s2, 1024 }
  0x69   : > { %p7339_p1 = scmp.ne.s32.totalorder %s881_s2, %s7338_s27  ;;  %p7346_p13 = scmp.lt.s32.totalorder %s881_s2, %s881_s2 }
  0x6a   : > { %p7347_p0 = scmp.lt.s32.totalorder %s7338_s27, %s7338_s27 }
  0x6b   : > { %p7341_p2 = pnand %p7339_p1, %p7303_p12 }
  0x6c   : > { %p7348_p4 = por %p7347_p0, %p7346_p13 }
  0x6d   : > { %7087 = dma.hbm_to_vmem [thread:$0]  (!%p7760_p11), %s8700_s14, 1024, %s865_s26, [#allocation7], %s7517_s23, %s7517_s23, %s7518_s28  }
  0x6e   : > { %p7342_p6 = pneg %p7341_p2 }
  0x70   : > { %p7349_p8 = pnand %p7348_p4, %p7342_p6 }
  0x72   : > { %7352 = shalt.err (!%p7349_p8)
}
  0x73   : > { %s8701_s24 = sld [smem:[#allocation27_spill]]  ;;  %s7364_s7 = scalar_lea.vmem %s933_s18, 512 }
  0x74   : > { %p7365_p10 = scmp.ne.s32.totalorder %s933_s18, %s7364_s7  ;;  %p7372_p7 = scmp.lt.s32.totalorder %s933_s18, %s933_s18 }
  0x75   : > { %p7373_p1 = scmp.lt.s32.totalorder %s7364_s7, %s7364_s7 }
  0x76   : > { %p7367_p3 = pnand %p7365_p10, %p7303_p12 }
  0x77   : > { %p7374_p2 = por %p7373_p1, %p7372_p7 }
  0x78   : > { %p7368_p5 = pneg %p7367_p3 }
  0x79   : > { %7090 = dma.hbm_to_vmem [thread:$0]  (!%p7760_p11), %s8701_s24, 1024, %s881_s2, [#allocation7], %s7517_s23, %s7517_s23, %s7518_s28  }
  0x7a   : > { %p7375_p9 = pnand %p7374_p2, %p7368_p5 }
  0x7c   : > { %7378 = shalt.err (!%p7375_p9)
}
  0x7d   : > { %s8702_s4 = sld [smem:[#allocation37_spill]]  ;;  %s7785_s26 = sadd.s32 1, %s7479_s15  }
  0x7e   : > { %8703 = sst [smem:[#allocation48_spill]] %s7785_s26  ;;  %s143_s2 = ssub.s32 %s7479_s15, %s7785_s26 }
  0x7f   : > { %s146_s27 = sadd.s32 1, %s7475_s11  ;;  %p144_p4 = scmp.eq.s32.totalorder %s143_s2, 0 }
  0x80   : > { %p153_p6 = scmp.ne.s32.totalorder %s7475_s11, %s7471_s10  ;;  %p154_p8 = scmp.eq.s32.totalorder %s7479_s15, 0 }
  0x81   : > { %p7105_p12 = scmp.lt.s32.totalorder %s7479_s15, 2  ;;  %p8705_p0 = scmp.eq.s32.totalorder %s7732_s0, 1 }
  0x82   : > { %s7795_s1 = scalar_select %p144_p4, %s7475_s11, %s146_s27  }
  0x83   : > { %7093 = dma.hbm_to_vmem [thread:$0]  (!%p7760_p11), %s8702_s4, 512, %s933_s18, [#allocation10], %s7517_s23, %s7517_s23, %s7518_s28  }
  0x84   : > { %8704 = sst [smem:[#allocation49_spill]] %s7795_s1  ;;  %p155_p13 = por %p154_p8, %p153_p6 }
  0x85   : > { %p7799_p10 = por %p8705_p0, %p153_p6  ;;  %s982_s18 = sand.u32 1, %s7475_s11  }
  0x86   : > { %s6307_s23 = sshll.u32 %s7479_s15, 7  ;;  %s6306_s28 = sshll.u32 %s982_s18, 3 }
  0x87   : > { %s8706_s7 = scalar_select %p7799_p10, 1, 0 }
  0x88   : > { %s7806_s4 = scalar_lea.hbm %s8690_s13, %s6307_s23  ;;  %s986_s2 = scalar_lea.vmem [#allocation3], %s6306_s28 }
  0x89   : > { %8707 = sst [smem:[#allocation50_spill]] %s8706_s7  ;;  %s993_s14 = sshll.u32 %s986_s2, 4  ;;  %s994_s14 = int_to_ptr.vmem [resolvable:$true] %s993_s14 }
  0x8a   : > { %p7808_p11 = pnand %p7105_p12, %p155_p13  ;;  %s983_s24 = scalar_lea.sflag [#allocation4], %s982_s18 }
  0x8b   : > { %s7379_s1 = scalar_lea.hbm %s7806_s4, 128  ;;  %s7384_s23 = scalar_lea.hbm %s8690_s13, 256 }
  0x8c   : > { %s8708_s27 = scalar_select %p7808_p11, 1, 0 }
  0x8d   : > { %p7380_p3 = scmp.ne.s32.totalorder %s7806_s4, %s7379_s1  ;;  %p7381_p5 = pneg %p7808_p11 }
  0x8e   : > { %p7385_p2 = scmp.lt.s32.totalorder %s7806_s4, %s8690_s13  ;;  %p7386_p9 = scmp.lt.s32.totalorder %s7384_s23, %s7379_s1 }
  0x8f   : > { %p7382_p7 = pnand %p7381_p5, %p7380_p3 }
  0x90   : > { %p7387_p4 = por %p7386_p9, %p7385_p2 }
  0x91   : > { %p7383_p1 = pneg %p7382_p7 }
  0x93   : > { %p7388_p6 = pnand %p7387_p4, %p7383_p1 }
  0x95   : > { %7391 = shalt.err (!%p7388_p6)
}
  0x96   : > { %s7392_s28 = scalar_lea.vmem %s994_s14, 128  ;;  %s7519_s2 = smov [#allocation3]  }
  0x97   : > { %p7393_p8 = scmp.ne.s32.totalorder %s994_s14, %s7392_s28  ;;  %s7397_s11 = sshll.u32 %s7519_s2, 4  ;;  %s7398_s11 = int_to_ptr.vmem [resolvable:$false] %s7397_s11 }
  0x98   : > { %s7399_s18 = scalar_lea.vmem %s7398_s11, 256  ;;  %p7400_p0 = scmp.lt.s32.totalorder %s994_s14, %s7398_s11 }
  0x99   : > { %p7395_p12 = pnand %p7393_p8, %p7381_p5  ;;  %p7401_p10 = scmp.lt.s32.totalorder %s7399_s18, %s7392_s28 }
  0x9b   : > { %p7396_p13 = pneg %p7395_p12  ;;  %p7402_p11 = por %p7401_p10, %p7400_p0 }
  0x9d   : > { %p7403_p3 = pnand %p7402_p11, %p7396_p13 }
  0x9f   : > { %7406 = shalt.err (!%p7403_p3)
}
  0xa0   : > { %p8709_p7 = scmp.ne.s32.totalorder %s8708_s27, 0  ;;  %p8710_p1 = scmp.ne.s32.totalorder %s8698_s22, 0 }
  0xa2   : > { %7097 = dma.hbm_to_vmem [thread:$0]  (!%p8709_p7), %s7806_s4, 128, %s994_s14, %s983_s24  }
  0xa3   : > { %1027 = sbr.rel (%p8710_p1) target bundleno = 11569 (0x2d31), region = 152 }
  0xa8   : > { %s7825_s1 = sand.u32 1, %s7471_s10   ;;  %p8712_p10 = scmp.ne.s32.totalorder %s8695_s16, 0 }
  0xa9   : > { %8711 = sst [smem:[#allocation51_spill]] %s7825_s1  ;;  %s8625_s23 = sshll.u32 %s7825_s1, 3 }
  0xaa   : > { %s1030_s11 = scalar_lea.sflag [#allocation4], %s7825_s1  ;;  %s7831_s28 = scalar_lea.vmem [#allocation3], %s8625_s23 }
  0xab   : > { %7450 = dma.done.wait (%p8712_p10), %s1030_s11, 128  }
  0xac   : > { %7452 = vsyncadd (%p8712_p10), %s1030_s11, 4294967168  ;;  %p8713_p11 = scmp.eq.s32.totalorder %s7732_s0, 0 }
  0xae   : > { %7454 = dma.done.wait (%p8713_p11), [#allocation7], 2048   ;;  %p8714_p5 = pmov %p8713_p11 }
  0xb0   : > { %7456 = vsyncadd (%p8714_p5), [#allocation7], 4294965248  ;;  %p8715_p2 = pmov %p8714_p5 }
  0xb2   : > { %7458 = dma.done.wait (%p8715_p2), [#allocation10], 512   ;;  %p8716_p9 = pmov %p8715_p2 }
  0xb3   : > { %s8717_s5 = sld [smem:[#allocation16_spill]]  ;;  %p1150_p4 = scmp.lt.s32.totalorder %s7732_s0, 1  ;;  %v7520_v1 = vmov 0.0   ;;  %vm1182_vm0 = vcmask 261120   ;;  %v1236_v9 = vld [vmem:[#allocation6 + $0x18] sm:$0xff]  ;;  %v1235_v10 = vld [vmem:[#allocation6 + $0x10] sm:$0xff]  ;;  %v1211_v34 = vlaneseq }
  0xb4   : > { %7460 = vsyncadd (%p8716_p9), [#allocation10], 4294966784  ;;  %6648 = vmatprep.subr.mxu0 %v7520_v1  ;;  %6659 = vmatprep.subr.mxu1 %v7520_v1  ;;  %vm7521_vm1 = vmmov 0   ;;  %s8718_s3 = sld [smem:[#allocation23_spill]]  ;;  %v1234_v11 = vld [vmem:[#allocation6 + $0x8] sm:$0xff]  ;;  %v1233_v12 = vld [vmem:[#allocation6] sm:$0xff] }
  0xb5   : > { %s7849_s14 = scalar_select %p1150_p4, %s7732_s0, 1  ;;  %6649 = vmatpush3.msra.mxu0 %v1236_v9  ;;  %6656 = vmatprep.mubr.msk.f32.mxu0 %vm7521_vm1, %v7520_v1  ;;  %v6322_v22 = vld [vmem:[%s8689_s19] ss:$0 sm:$0xff]  ;;  %vm1321_vm2 = vcmask 64512   ;;  %v7908_v35 = vshrl.u32 %v1211_v34, 7  ;;  %v1214_v36 = vand.u32 127, %v1211_v34 }
  0xb6   : > { %6650 = vmatprep.subr.mxu0 %v7520_v1  ;;  %s8719_s8 = sld [smem:[#allocation24_spill]]  ;;  %6661 = vmatprep.mubr.msk.f32.mxu1 %vm7521_vm1, %v7520_v1  ;;  %s8647_s16 = smov 96   ;;  %v1998_v34 = vld [vmem:[#allocation8 + $0x10] sm:$0xff]  ;;  %vm1992_vm4 = vcmask 130048   ;;  %vm1994_vm5 = vcmask 195584   ;;  %vm3195_vm6 = vcmask 523264  }
  0xb7   : > { %s8626_s24 = sshll.u32 %s7849_s14, 3  ;;  %6651 = vmatpush3.msra.mxu0 %v1235_v10  ;;  %s8641_s22 = smov 120   ;;  %vm1215_vm3 = vcmp.le.s32.totalorder %v1214_v36, %v7908_v35  ;;  %v1997_v36 = vld [vmem:[#allocation8 + $0x8] sm:$0xff] }
  0xb8   : > { %6652 = vmatprep.subr.mxu0 %v7520_v1  ;;  %s8649_s27 = smov 88   ;;  %s8645_s2 = smov 80   ;;  %v6320_v38 = vsel %vm1215_vm3, 1.0, %v7520_v1 }
  0xb9   : > { %s1153_s4 = scalar_lea.vmem %s8717_s5, %s8626_s24  ;;  %6653 = vmatpush3.msra.mxu0 %v1234_v11  ;;  %s8628_s18 = smov 72  }
  0xba   : > { %v1172_v2 = vld [vmem:[%s1153_s4] sm:$0xff]  ;;  %6654 = vmatprep.subr.mxu0 %v7520_v1  ;;  %s8643_s11 = smov 112   ;;  %s8639_s4 = smov 104  }
  0xbb   : > { %v1183_v3 = vsel %vm1182_vm0, %v1172_v2, 0.0  ;;  %6655 = vmatpush3.msra.mxu0 %v1233_v12  ;;  %v6318_v17 = vld [vmem:[%s8718_s3] ss:$0 sm:$0xff]  ;;  %s8720_s21 = sld [smem:[#allocation20_spill]]  ;;  %s8632_s24 = smov 48  }
  0xbc   : > { %1184 = vadd.xlane.f32.xlu0 %v1183_v3  ;;  %6669 = vmatprep.subr.mxu0 %v7520_v1  ;;  %v6319_v19 = vld [vmem:[%s8719_s8] ss:$0 sm:$0xff]  ;;  %s8721_s9 = sld [smem:[#allocation17_spill]]  ;;  %s8732_s3 = smov 24  }
  0xbd   : > { %s8733_s5 = sld [smem:[#allocation33_spill]]  ;;  %s8738_s10 = smov 96  }
  0xbe   : > { %s8734_s8 = sld [smem:[#allocation35_spill]]  ;;  %s8739_s26 = smov 80  }
  0xbf   : > { %s8736_s13 = sld [smem:[#allocation36_spill]]  ;;  %s8740_s15 = smov 120  }
  0xc0   : > { %s8742_s7 = smov 64   ;;  %s8744_s25 = smov 40  }
  0xc1   : > { %s1165_s23 = scalar_lea.vmem %s8720_s21, %s7849_s14  ;;  %s8737_s21 = smov 88  }
  0xc2   : > { %v6321_v37 = vld [vmem:[%s1165_s23] ss:$0 sm:$0xff]  ;;  %s8627_s23 = smov 64   ;;  %s8745_s1 = smov 56  }
  0xc3   : > { %v1224_v39 = vmul.f32 %v6321_v37, %v6320_v38  ;;  %v1996_v38 = vld [vmem:[#allocation8] sm:$0xff] }
  0xc5   : > { %v1225_v40 = vsub.f32 1.0, %v1224_v39 }
  0xc7   : > { %v7914_v41 = vmul.f32 -1e+09, %v1225_v40 }
 0x145   : > { %v1185_v4 = vpop.xlane.xlu0 %1184 }
 0x146   : > { %v1187_v5 = vmul.f32 0.03125, %v1185_v4 }
 0x148   : > { %v1188_v6 = vsub.f32 %v1172_v2, %v1187_v5 }
 0x14a   : > { %v1189_v7 = vmul.f32 %v1188_v6, %v1188_v6 }
 0x14c   : > { %v1190_v8 = vsel %vm1182_vm0, %v1189_v7, 0.0 }
 0x14d   : > { %1191 = vadd.xlane.f32.xlu0 %v1190_v8 }
 0x1d6   : > { %v1192_v13 = vpop.xlane.xlu0 %1191 }
 0x1d7   : > { %v1193_v14 = vmul.f32 0.03125, %v1192_v13 }
 0x1d9   : > { %v1194_v15 = vadd.f32 1e-05, %v1193_v14 }
 0x1db   : > { %7199 = vrsqrt.f32 %v1194_v15 }
 0x1e8   : > { %v7200_v16 = vpop.eup %7199 }
 0x1e9   : > { %v1196_v18 = vmul.f32 %v7200_v16, %v1188_v6 }
 0x1eb   : > { %v1203_v20 = vmul.f32 %v6318_v17, %v1196_v18 }
 0x1ed   : > { %v7867_v21 = vadd.f32 %v6319_v19, %v1203_v20 }
 0x1ef   : > { %6657 = vmatmul.mubr.msk.f32.vlgmr.msra.gmra.mxu0 %vm1182_vm0, %v7867_v21 }
 0x1f0   : > { %6671 = vmatprep.mubr.msk.f32.mxu0 %vm7521_vm1, %v7520_v1 }
 0x2af   : > { %v1313_v23 = vpop.f32.mrf.mxu0 }
 0x2b0   : > { %v7874_v24 = vadd.f32 %v6322_v22, %v1313_v23 }
 0x2b1   : > { %v6658_v25 = vpop.f32.mrf.mxu0 }
 0x2b2   : > { %1319 = vrot.lane.b32.xlu1 %v7874_v24, %s8647_s16  ;;  %v1317_v26 = vmul.f32 0.35355338, %v7874_v24 }
 0x2b4   : > { %1484 = vrot.lane.b32.xlu0 %v1317_v26, %s8641_s22 }
 0x2b6   : > { %1486 = vrot.lane.b32.xlu1 %v7874_v24, %s8649_s27 }
 0x2ba   : > { %1651 = vrot.lane.b32.xlu1 %v7874_v24, %s8645_s2 }
 0x2be   : > { %1816 = vrot.lane.b32.xlu1 %v7874_v24, %s8628_s18  ;;  %s8630_s18 = smov 56  }
 0x2c2   : > { %1649 = vrot.lane.b32.xlu1 %v1317_v26, %s8643_s11 }
 0x2c6   : > { %1814 = vrot.lane.b32.xlu1 %v1317_v26, %s8639_s4  ;;  %s8725_s4 = sld [smem:[#allocation21_spill]] }
 0x324   : > { %v1320_v27 = vpop.permute.xlu1 %1319 }
 0x325   : > { %6660 = vmatpush3.xpose.msk.msra.mxu1 %vm1321_vm2, %v1320_v27 }
 0x326   : > { %6664 = vmatprep.subr.mxu1 %v7520_v1  ;;  %v1485_v29 = vpop.permute.xlu0 %1484 }
 0x328   : > { %v1487_v28 = vpop.permute.xlu1 %1486  ;;  %6662 = vmatmul.mubr.msk.f32.vlgmr.msra.gmra.mxu1 %vm1321_vm2, %v1317_v26 }
 0x329   : > { %6670 = vmatpush3.xpose.msk.msra.mxu0 %vm1321_vm2, %v1487_v28  ;;  %6666 = vmatprep.mubr.msk.f32.mxu1 %vm7521_vm1, %v7520_v1 }
 0x32a   : > { %6679 = vmatprep.subr.mxu0 %v7520_v1 }
 0x32c   : > { %v1652_v30 = vpop.permute.xlu1 %1651  ;;  %6672 = vmatmul.mubr.msk.f32.vlgmr.msra.gmra.mxu0 %vm1321_vm2, %v1485_v29 }
 0x32d   : > { %6680 = vmatpush3.xpose.msk.msra.mxu0 %vm1321_vm2, %v1652_v30  ;;  %6681 = vmatprep.mubr.msk.f32.mxu0 %vm7521_vm1, %v7520_v1 }
 0x32e   : > { %6689 = vmatprep.subr.mxu0 %v7520_v1 }
 0x330   : > { %v1817_v31 = vpop.permute.xlu1 %1816 }
 0x334   : > { %v1650_v32 = vpop.permute.xlu1 %1649 }
 0x335   : > { %6682 = vmatmul.mubr.msk.f32.vlgmr.msra.gmra.mxu0 %vm1321_vm2, %v1650_v32  ;;  %v1999_v32 = vld [vmem:[#allocation8 + $0x18] sm:$0xff] }
 0x336   : > { %6690 = vmatpush3.xpose.msk.msra.mxu0 %vm1321_vm2, %v1817_v31  ;;  %6691 = vmatprep.mubr.msk.f32.mxu0 %vm7521_vm1, %v7520_v1 }
 0x337   : > { %6699 = vmatprep.subr.mxu0 %v7520_v1 }
 0x338   : > { %v1815_v33 = vpop.permute.xlu1 %1814 }
 0x339   : > { %6692 = vmatmul.mubr.msk.f32.vlgmr.msra.gmra.mxu0 %vm1321_vm2, %v1815_v33 }
 0x33a   : > { %6707 = vmatprep.mubr.msk.f32.mxu0 %vm7521_vm1, %v7520_v1  ;;  %6700 = vmatpush3.msra.mxu0 %v1999_v32 }
 0x33b   : > { %6701 = vmatprep.subr.mxu0 %v7520_v1 }
 0x33c   : > { %6702 = vmatpush3.msra.mxu0 %v1998_v34 }
 0x33d   : > { %6703 = vmatprep.subr.mxu0 %v7520_v1 }
 0x33e   : > { %6704 = vmatpush3.msra.mxu0 %v1997_v36 }
 0x33f   : > { %6705 = vmatprep.subr.mxu0 %v7520_v1 }
 0x340   : > { %6706 = vmatpush3.msra.mxu0 %v1996_v38 }
 0x3e8   : > { %v1393_v42 = vpop.f32.mrf.mxu1 }
 0x3e9   : > { %v1394_v43 = vadd.f32 %v1393_v42, %v7914_v41 }
 0x3ea   : > { %v6663_v44 = vpop.f32.mrf.mxu1 }
 0x3eb   : > { %v1397_v45 = vsel %vm1321_vm2, %v1394_v43, -inf }
 0x3ec   : > { %1398 = vmax.xlane.f32.xlu1 %v1397_v45  ;;  %v1558_v46 = vpop.f32.mrf.mxu0 }
 0x3ed   : > { %v1559_v47 = vadd.f32 %v1558_v46, %v7914_v41 }
 0x3ee   : > { %v6673_v48 = vpop.f32.mrf.mxu0 }
 0x3ef   : > { %v1562_v49 = vsel %vm1321_vm2, %v1559_v47, -inf }
 0x3f0   : > { %1563 = vmax.xlane.f32.xlu0 %v1562_v49 }
 0x3f5   : > { %v1723_v50 = vpop.f32.mrf.mxu0 }
 0x3f6   : > { %v1724_v51 = vadd.f32 %v1723_v50, %v7914_v41 }
 0x3f7   : > { %v6683_v52 = vpop.f32.mrf.mxu0 }
 0x3f8   : > { %v1727_v53 = vsel %vm1321_vm2, %v1724_v51, -inf  ;;  %v6336_v52 = vld [vmem:[%s7606_s30] ss:$0 sm:$0xff] }
 0x3f9   : > { %1728 = vmax.xlane.f32.xlu1 %v1727_v53  ;;  %v1888_v54 = vpop.f32.mrf.mxu0 }
 0x3fa   : > { %v1889_v55 = vadd.f32 %v1888_v54, %v7914_v41 }
 0x3fb   : > { %v6693_v56 = vpop.f32.mrf.mxu0 }
 0x3fc   : > { %v1892_v57 = vsel %vm1321_vm2, %v1889_v55, -inf }
 0x3fd   : > { %1893 = vmax.xlane.f32.xlu0 %v1892_v57 }
 0x40a   : > { %1408 = vrot.lane.b32.xlu1 %v7874_v24, %s8627_s23  ;;  %s8631_s23 = smov 40  }
 0x475   : > { %v1399_v58 = vpop.xlane.xlu1 %1398 }
 0x476   : > { %v1400_v59 = vsub.f32 %v1394_v43, %v1399_v58 }
 0x478   : > { %v1401_v60 = vmul.f32 1.442695, %v1400_v59 }
 0x479   : > { %v1564_v61 = vpop.xlane.xlu0 %1563 }
 0x47a   : > { %7201 = vpow2.f32 %v1401_v60  ;;  %v1565_v62 = vsub.f32 %v1559_v47, %v1564_v61 }
 0x47c   : > { %v1566_v63 = vmul.f32 1.442695, %v1565_v62 }
 0x47e   : > { %7203 = vpow2.f32 %v1566_v63  ;;  %v2191_v63 = vld [vmem:[%s7621_s20 + $0x18] sm:$0xff] }
 0x47f   : > { %6721 = vmatprep.subr.mxu0 %v2191_v63 }
 0x482   : > { %v1729_v0 = vpop.xlane.xlu1 %1728 }
 0x483   : > { %v1730_v2 = vsub.f32 %v1724_v51, %v1729_v0  ;;  %v2190_v0 = vld [vmem:[%s7621_s20 + $0x10] sm:$0xff] }
 0x485   : > { %v1731_v3 = vmul.f32 1.442695, %v1730_v2  ;;  %v2189_v2 = vld [vmem:[%s7621_s20 + $0x8] sm:$0xff] }
 0x486   : > { %v1409_v4 = vpop.permute.xlu1 %1408  ;;  %v1894_v5 = vpop.xlane.xlu0 %1893 }
 0x487   : > { %v7202_v6 = vpop.eup %7201  ;;  %7205 = vpow2.f32 %v1731_v3  ;;  %v1895_v7 = vsub.f32 %v1889_v55, %v1894_v5  ;;  %6665 = vmatpush3.msra.mxu1 %v1409_v4  ;;  %v2106_v4 = vld [vmem:[%s7611_s6 + $0x10] sm:$0xff]  ;;  %v2188_v5 = vld [vmem:[%s7621_s20] sm:$0xff] }
 0x488   : > { %v1403_v8 = vsel %vm1321_vm2, %v7202_v6, 0.0  ;;  %6674 = vmatprep.subr.mxu1 %v7520_v1 }
 0x489   : > { %v1896_v9 = vmul.f32 1.442695, %v1895_v7  ;;  %1404 = vadd.xlane.f32.xlu1 %v1403_v8  ;;  %v2104_v8 = vld [vmem:[%s7611_s6] sm:$0xff] }
 0x48b   : > { %v7204_v10 = vpop.eup %7203  ;;  %7207 = vpow2.f32 %v1896_v9 }
 0x48c   : > { %v1568_v11 = vsel %vm1321_vm2, %v7204_v10, 0.0 }
 0x48d   : > { %1569 = vadd.xlane.f32.xlu0 %v1568_v11 }
 0x494   : > { %v7206_v12 = vpop.eup %7205 }
 0x495   : > { %v1733_v13 = vsel %vm1321_vm2, %v7206_v12, 0.0 }
 0x496   : > { %1734 = vadd.xlane.f32.xlu1 %v1733_v13  ;;  %v7995_v13 = vld [vmem:[%s7641_s29] sm:$0x7] }
 0x498   : > { %v7208_v14 = vpop.eup %7207 }
 0x499   : > { %v1898_v15 = vsel %vm1321_vm2, %v7208_v14, 0.0 }
 0x49a   : > { %1899 = vadd.xlane.f32.xlu0 %v1898_v15 }
 0x4a7   : > { %1738 = vrot.lane.b32.xlu1 %v7874_v24, %s8632_s24  ;;  %s8633_s24 = smov 24  }
 0x4ab   : > { %1903 = vrot.lane.b32.xlu1 %v7874_v24, %s8631_s23  ;;  %s8635_s23 = smov 16  }
 0x4b0   : > { %1573 = vrot.lane.b32.xlu0 %v7874_v24, %s8630_s18  ;;  %s8637_s18 = smov 8  }
 0x512   : > { %v1405_v16 = vpop.xlane.xlu1 %1404 }
 0x513   : > { %7209 = vrcp.f32 %v1405_v16 }
 0x516   : > { %v1570_v17 = vpop.xlane.xlu0 %1569 }
 0x517   : > { %7211 = vrcp.f32 %v1570_v17 }
 0x51f   : > { %v1735_v18 = vpop.xlane.xlu1 %1734 }
 0x520   : > { %v7210_v19 = vpop.eup %7209  ;;  %7213 = vrcp.f32 %v1735_v18 }
 0x521   : > { %v1407_v20 = vmul.f32 %v7210_v19, %v7202_v6  ;;  %v2105_v6 = vld [vmem:[%s7611_s6 + $0x8] sm:$0xff] }
 0x523   : > { %6667 = vmatmul.mubr.msk.f32.vlgmr.msra.gmra.mxu1 %vm1321_vm2, %v1407_v20  ;;  %v1900_v22 = vpop.xlane.xlu0 %1899  ;;  %v1739_v24 = vpop.permute.xlu1 %1738 }
 0x524   : > { %v7212_v23 = vpop.eup %7211  ;;  %7215 = vrcp.f32 %v1900_v22  ;;  %6676 = vmatprep.mubr.msk.f32.mxu1 %vm7521_vm1, %v7520_v1 }
 0x525   : > { %v1572_v26 = vmul.f32 %v7212_v23, %v7204_v10 }
 0x527   : > { %v1574_v25 = vpop.permute.xlu0 %1573  ;;  %v1904_v29 = vpop.permute.xlu1 %1903 }
 0x528   : > { %6675 = vmatpush3.msra.mxu1 %v1574_v25 }
 0x529   : > { %6677 = vmatmul.mubr.msk.f32.vlgmr.msra.gmra.mxu1 %vm1321_vm2, %v1572_v26  ;;  %6684 = vmatprep.subr.mxu1 %v7520_v1 }
 0x52a   : > { %6685 = vmatpush3.msra.mxu1 %v1739_v24  ;;  %6686 = vmatprep.mubr.msk.f32.mxu1 %vm7521_vm1, %v7520_v1 }
 0x52b   : > { %6694 = vmatprep.subr.mxu1 %v7520_v1 }
 0x52d   : > { %v7214_v27 = vpop.eup %7213 }
 0x52e   : > { %v1737_v28 = vmul.f32 %v7214_v27, %v7206_v12  ;;  %v7992_v12 = vsub.s32 0, %v7908_v35 }
 0x530   : > { %6687 = vmatmul.mubr.msk.f32.vlgmr.msra.gmra.mxu1 %vm1321_vm2, %v1737_v28  ;;  %v2097_v15 = vrot.slane %v7995_v13, %v7992_v12 }
 0x531   : > { %v7216_v30 = vpop.eup %7215  ;;  %6695 = vmatpush3.msra.mxu1 %v1904_v29  ;;  %6696 = vmatprep.mubr.msk.f32.mxu1 %vm7521_vm1, %v7520_v1 }
 0x532   : > { %v1902_v31 = vmul.f32 %v7216_v30, %v7208_v14  ;;  %6710 = vmatprep.subr.mxu1 %v7520_v1 }
 0x534   : > { %6697 = vmatmul.mubr.msk.f32.vlgmr.msra.gmra.mxu1 %vm1321_vm2, %v1902_v31 }
 0x535   : > { %6718 = vmatprep.mubr.msk.f32.mxu1 %vm7521_vm1, %v7520_v1 }
 0x5e3   : > { %v1480_v33 = vpop.f32.mrf.mxu1 }
 0x5e5   : > { %v6668_v37 = vpop.f32.mrf.mxu1 }
 0x5e9   : > { %v1645_v39 = vpop.f32.mrf.mxu1 }
 0x5ea   : > { %1980 = vrot.lane.b32.xlu0 %v1645_v39, %s8637_s18  ;;  %s8724_s18 = sld [smem:[#allocation28_spill]] }
 0x5eb   : > { %v6678_v40 = vpop.f32.mrf.mxu1 }
 0x5f0   : > { %v1810_v42 = vpop.f32.mrf.mxu1  ;;  %v6338_v27 = vld [vmem:[%s8724_s18] ss:$0 sm:$0xff] }
 0x5f1   : > { %1984 = vrot.lane.b32.xlu1 %v1810_v42, %s8635_s23 }
 0x5f2   : > { %v6688_v43 = vpop.f32.mrf.mxu1 }
 0x5f4   : > { %v1975_v44 = vpop.f32.mrf.mxu1 }
 0x5f5   : > { %1988 = vrot.lane.b32.xlu0 %v1975_v44, %s8633_s24  ;;  %s6462_s24 = sshll.u32 %s7849_s14, 4 }
 0x5f6   : > { %v6698_v45 = vpop.f32.mrf.mxu1  ;;  %s1158_s23 = scalar_lea.vmem %s8721_s9, %s6462_s24  ;;  %s8722_s24 = sld [smem:[#allocation32_spill]] }
 0x5f7   : > { %v7972_v3 = vld [vmem:[%s1158_s23] sm:$0xff]  ;;  %v7980_v7 = vld [vmem:[%s1158_s23 + $0x8] sm:$0xff]  ;;  %s8723_s23 = sld [smem:[#allocation29_spill]] }
 0x5f8   : > { %s8735_s9 = sld [smem:[#allocation34_spill]] }
 0x5fc   : > { %v7998_v14 = vld [vmem:[%s8722_s24] sm:$0x7] }
 0x5fd   : > { %v2102_v18 = vrot.slane %v7998_v14, %v7992_v12  ;;  %v6340_v22 = vld [vmem:[%s8723_s23] ss:$0 sm:$0xff] }
 0x65c   : > { %v1981_v46 = vpop.permute.xlu0 %1980 }
 0x65d   : > { %v1991_v48 = vsel %vm1321_vm2, %v1480_v33, %v1981_v46 }
 0x663   : > { %v1985_v47 = vpop.permute.xlu1 %1984 }
 0x664   : > { %v1993_v49 = vsel %vm1992_vm4, %v1991_v48, %v1985_v47 }
 0x667   : > { %v1989_v50 = vpop.permute.xlu0 %1988 }
 0x668   : > { %v1995_v51 = vsel %vm1994_vm5, %v1993_v49, %v1989_v50 }
 0x669   : > { %6708 = vmatmul.mubr.msk.f32.vlgmr.msra.gmra.mxu0 %vm1182_vm0, %v1995_v51 }
 0x66a   : > { %6722 = vmatpush3.msra.mxu0 %v2191_v63  ;;  %6729 = vmatprep.mubr.msk.f32.mxu0 %vm1182_vm0, %v7972_v3 }
 0x66b   : > { %6723 = vmatprep.subr.mxu0 %v2190_v0 }
 0x66c   : > { %6724 = vmatpush3.msra.mxu0 %v2190_v0 }
 0x66d   : > { %6725 = vmatprep.subr.mxu0 %v2189_v2 }
 0x66e   : > { %6726 = vmatpush3.msra.mxu0 %v2189_v2 }
 0x66f   : > { %6727 = vmatprep.subr.mxu0 %v2188_v5 }
 0x670   : > { %6728 = vmatpush3.msra.mxu0 %v2188_v5 }
 0x671   : > { %6730 = vmatmul.mubr.msk.f32.vlgmr.msra.gmra.mxu0 %vm1182_vm0, %v7980_v7  ;;  %6739 = vmatprep.subr.mxu0 %v7520_v1 }
 0x672   : > { %6743 = vmatprep.mubr.msk.f32.mxu0 %vm7521_vm1, %v7520_v1 }
 0x729   : > { %v2076_v53 = vpop.f32.mrf.mxu0 }
 0x72a   : > { %v2077_v54 = vadd.f32 %v6336_v52, %v2076_v53 }
 0x72b   : > { %v6709_v55 = vpop.f32.mrf.mxu0 }
 0x72c   : > { %v2080_v56 = vadd.f32 %v2077_v54, %v7867_v21  ;;  %v2107_v21 = vld [vmem:[%s7611_s6 + $0x18] sm:$0xff] }
 0x72d   : > { %6711 = vmatpush3.msra.mxu1 %v2107_v21 }
 0x72e   : > { %v2081_v57 = vsel %vm1182_vm0, %v2080_v56, 0.0  ;;  %6712 = vmatprep.subr.mxu1 %v7520_v1 }
 0x72f   : > { %2082 = vadd.xlane.f32.xlu1 %v2081_v57  ;;  %6713 = vmatpush3.msra.mxu1 %v2106_v4 }
 0x730   : > { %6714 = vmatprep.subr.mxu1 %v7520_v1 }
 0x731   : > { %6715 = vmatpush3.msra.mxu1 %v2105_v6  ;;  %v6731_v23 = vpop.f32.mrf.mxu0 }
 0x732   : > { %6716 = vmatprep.subr.mxu1 %v7520_v1  ;;  %v8011_v25 = vadd.f32 %v6731_v23, %v6340_v22 }
 0x733   : > { %6717 = vmatpush3.msra.mxu1 %v2104_v8  ;;  %v2271_v26 = vpop.f32.mrf.mxu0 }
 0x734   : > { %6732 = vmatprep.subr.mxu1 %v7520_v1  ;;  %v8017_v24 = vadd.f32 %v6340_v22, %v2271_v26 }
 0x740   : > { %2458 = vrot.lane.b32.xlu1 %v8017_v24, %s8641_s22 }
 0x7b8   : > { %v2083_v58 = vpop.xlane.xlu1 %2082 }
 0x7b9   : > { %v2084_v59 = vmul.f32 0.03125, %v2083_v58 }
 0x7bb   : > { %v2085_v60 = vsub.f32 %v2080_v56, %v2084_v59 }
 0x7bc   : > { %v2459_v33 = vpop.permute.xlu1 %2458 }
 0x7bd   : > { %v2086_v61 = vmul.f32 %v2085_v60, %v2085_v60 }
 0x7bf   : > { %v2087_v62 = vsel %vm1182_vm0, %v2086_v61, 0.0 }
 0x7c0   : > { %2088 = vadd.xlane.f32.xlu0 %v2087_v62 }
 0x7d6   : > { %2460 = vrot.lane.b32.xlu0 %v8011_v25, %s8641_s22 }
 0x849   : > { %v2089_v9 = vpop.xlane.xlu0 %2088 }
 0x84a   : > { %v2090_v10 = vmul.f32 0.03125, %v2089_v9 }
 0x84c   : > { %v2091_v11 = vadd.f32 1e-05, %v2090_v10 }
 0x84d   : > { %v2461_v32 = vpop.permute.xlu0 %2460 }
 0x84e   : > { %7217 = vrsqrt.f32 %v2091_v11 }
 0x85b   : > { %v7218_v16 = vpop.eup %7217 }
 0x85c   : > { %v2093_v17 = vmul.f32 %v7218_v16, %v2085_v60 }
 0x85e   : > { %v2098_v19 = vmul.f32 %v2097_v15, %v2093_v17 }
 0x860   : > { %v8004_v20 = vadd.f32 %v2102_v18, %v2098_v19 }
 0x862   : > { %6719 = vmatmul.mubr.msk.f32.vlgmr.msra.gmra.mxu1 %vm1182_vm0, %v8004_v20 }
 0x863   : > { %6736 = vmatprep.mubr.msk.f32.mxu1 %vm7521_vm1, %v7520_v1  ;;  %6733 = vmatpush3.xpose.msk.msra.mxu1 %vm1321_vm2, %v8011_v25 }
 0x864   : > { %6734 = vmatprep.subr.mxu1 %v7520_v1 }
 0x867   : > { %6735 = vmatpush3.xpose.msk.msra.mxu1 %vm1321_vm2, %v8017_v24 }
 0x868   : > { %6746 = vmatprep.subr.mxu1 %v7520_v1 }
 0x922   : > { %v2184_v28 = vpop.f32.mrf.mxu1 }
 0x923   : > { %v2185_v29 = vadd.f32 %v6338_v27, %v2184_v28 }
 0x924   : > { %v6720_v30 = vpop.f32.mrf.mxu1 }
 0x925   : > { %v8026_v31 = vmul.f32 0.35355338, %v2185_v29 }
 0x927   : > { %2456 = vrot.lane.b32.xlu1 %v8026_v31, %s8641_s22  ;;  %6737 = vmatmul.mubr.msk.f32.vlgmr.msra.gmra.mxu1 %vm1321_vm2, %v8026_v31  ;;  %s1168_s22 = scalar_lea.vmem %s8725_s4, %s7849_s14  ;;  %s8727_s4 = smov 72  }
 0x928   : > { %6747 = vmatpush3.xpose.msk.msra.mxu1 %vm1321_vm2, %v2461_v32  ;;  %6750 = vmatprep.mubr.msk.f32.mxu1 %vm7521_vm1, %v7520_v1  ;;  %v1178_v36 = vld [vmem:[%s1168_s22] sm:$0x1]  ;;  %s8726_s22 = smov 104  }
 0x929   : > { %6748 = vmatprep.subr.mxu1 %v7520_v1  ;;  %v1227_v37 = vsub.f32 1.0, %v1178_v36 }
 0x92b   : > { %v1228_v38 = vmul.f32 -1e+09, %v1227_v37 }
 0x92c   : > { %6749 = vmatpush3.xpose.msk.msra.mxu1 %vm1321_vm2, %v2459_v33 }
 0x92d   : > { %6767 = vmatprep.subr.mxu1 %v7520_v1  ;;  %v8044_v39 = vrot.slane %v1228_v38, %v7992_v12 }
 0x999   : > { %v2457_v34 = vpop.permute.xlu1 %2456 }
 0x99a   : > { %6751 = vmatmul.mubr.msk.f32.vlgmr.msra.gmra.mxu1 %vm1321_vm2, %v2457_v34 }
 0x99b   : > { %6771 = vmatprep.mubr.msk.f32.mxu1 %vm7521_vm1, %v7520_v1 }
 0x9e7   : > { %v2362_v40 = vpop.f32.mrf.mxu1 }
 0x9e8   : > { %v2363_v42 = vadd.f32 %v2362_v40, %v8044_v39 }
 0x9e9   : > { %v6738_v43 = vpop.f32.mrf.mxu1 }
 0x9ea   : > { %v2366_v44 = vsel %vm1992_vm4, %v2363_v42, -inf }
 0x9eb   : > { %2367 = vmax.xlane.f32.xlu0 %v2366_v44 }
 0xa01   : > { %2377 = vrot.lane.b32.xlu0 %v8017_v24, %s8647_s16 }
 0xa5a   : > { %v2534_v45 = vpop.f32.mrf.mxu1 }
 0xa5b   : > { %v2535_v46 = vadd.f32 %v2534_v45, %v8044_v39 }
 0xa5c   : > { %v6752_v47 = vpop.f32.mrf.mxu1 }
 0xa5d   : > { %v2538_v48 = vsel %vm1992_vm4, %v2535_v46, -inf }
 0xa5e   : > { %2539 = vmax.xlane.f32.xlu1 %v2538_v48 }
 0xa6f   : > { %2379 = vrot.lane.b32.xlu1 %v8011_v25, %s8647_s16  ;;  %s8730_s16 = smov 16  }
 0xa73   : > { %2551 = vrot.lane.b32.xlu1 %v8011_v25, %s8649_s27 }
 0xa74   : > { %v2368_v49 = vpop.xlane.xlu0 %2367 }
 0xa75   : > { %v2369_v50 = vsub.f32 %v2363_v42, %v2368_v49 }
 0xa77   : > { %v2370_v51 = vmul.f32 1.442695, %v2369_v50  ;;  %2549 = vrot.lane.b32.xlu1 %v8017_v24, %s8649_s27  ;;  %s8731_s27 = sld [smem:[#allocation31_spill]] }
 0xa78   : > { %v2378_v58 = vpop.permute.xlu0 %2377 }
 0xa79   : > { %7219 = vpow2.f32 %v2370_v51 }
 0xa7b   : > { %2630 = vrot.lane.b32.xlu1 %v8017_v24, %s8643_s11 }
 0xa86   : > { %v7220_v52 = vpop.eup %7219 }
 0xa87   : > { %v2372_v53 = vsel %vm1992_vm4, %v7220_v52, 0.0 }
 0xa88   : > { %2373 = vadd.xlane.f32.xlu0 %v2372_v53 }
 0xae7   : > { %v2540_v54 = vpop.xlane.xlu1 %2539 }
 0xae8   : > { %v2541_v55 = vsub.f32 %v2535_v46, %v2540_v54 }
 0xaea   : > { %v2542_v56 = vmul.f32 1.442695, %v2541_v55 }
 0xaeb   : > { %v2380_v57 = vpop.permute.xlu1 %2379 }
 0xaec   : > { %7221 = vpow2.f32 %v2542_v56  ;;  %6740 = vmatpush3.msra.mxu0 %v2380_v57 }
 0xaed   : > { %6741 = vmatprep.subr.mxu0 %v7520_v1 }
 0xaee   : > { %6742 = vmatpush3.msra.mxu0 %v2378_v58 }
 0xaef   : > { %6753 = vmatprep.subr.mxu0 %v7520_v1  ;;  %v2552_v62 = vpop.permute.xlu1 %2551 }
 0xaf3   : > { %v2550_v21 = vpop.permute.xlu1 %2549 }
 0xaf7   : > { %v2631_v8 = vpop.permute.xlu1 %2630 }
 0xaf9   : > { %v7222_v59 = vpop.eup %7221 }
 0xafa   : > { %v2544_v60 = vsel %vm1992_vm4, %v7222_v59, 0.0 }
 0xafb   : > { %2545 = vadd.xlane.f32.xlu0 %v2544_v60 }
 0xb11   : > { %v2374_v61 = vpop.xlane.xlu0 %2373  ;;  %2632 = vrot.lane.b32.xlu0 %v8011_v25, %s8643_s11 }
 0xb12   : > { %7223 = vrcp.f32 %v2374_v61 }
 0xb15   : > { %2628 = vrot.lane.b32.xlu0 %v8026_v31, %s8643_s11  ;;  %s8728_s11 = smov 8  }
 0xb1f   : > { %v7224_v63 = vpop.eup %7223 }
 0xb20   : > { %v2376_v0 = vmul.f32 %v7224_v63, %v7220_v52 }
 0xb22   : > { %6744 = vmatmul.mubr.msk.f32.vlgmr.msra.gmra.mxu0 %vm1992_vm4, %v2376_v0 }
 0xb23   : > { %6754 = vmatpush3.msra.mxu0 %v2552_v62  ;;  %6757 = vmatprep.mubr.msk.f32.mxu0 %vm7521_vm1, %v7520_v1 }
 0xb24   : > { %6755 = vmatprep.subr.mxu0 %v7520_v1 }
 0xb25   : > { %6756 = vmatpush3.msra.mxu0 %v2550_v21 }
 0xb26   : > { %6760 = vmatprep.subr.mxu0 %v7520_v1 }
 0xb84   : > { %v2546_v2 = vpop.xlane.xlu0 %2545 }
 0xb85   : > { %7225 = vrcp.f32 %v2546_v2 }
 0xb88   : > { %v2633_v6 = vpop.permute.xlu0 %2632 }
 0xb8c   : > { %v2629_v9 = vpop.permute.xlu0 %2628 }
 0xb92   : > { %v7226_v4 = vpop.eup %7225 }
 0xb93   : > { %v2548_v5 = vmul.f32 %v7226_v4, %v7222_v59  ;;  %v6359_v4 = vld [vmem:[%s8731_s27] ss:$0 sm:$0xff] }
 0xb95   : > { %6758 = vmatmul.mubr.msk.f32.vlgmr.msra.gmra.mxu0 %vm1992_vm4, %v2548_v5 }
 0xb96   : > { %6761 = vmatpush3.xpose.msk.msra.mxu0 %vm1321_vm2, %v2633_v6  ;;  %6764 = vmatprep.mubr.msk.f32.mxu0 %vm7521_vm1, %v7520_v1 }
 0xb97   : > { %6762 = vmatprep.subr.mxu0 %v7520_v1 }
 0xb9a   : > { %6763 = vmatpush3.xpose.msk.msra.mxu0 %vm1321_vm2, %v2631_v8 }
 0xb9b   : > { %6781 = vmatprep.subr.mxu0 %v7520_v1 }
 0xb9d   : > { %6765 = vmatmul.mubr.msk.f32.vlgmr.msra.gmra.mxu0 %vm1321_vm2, %v2629_v9 }
 0xb9e   : > { %6785 = vmatprep.mubr.msk.f32.mxu0 %vm7521_vm1, %v7520_v1 }
 0xbe2   : > { %v8083_v10 = vpop.f32.mrf.mxu0 }
 0xbe4   : > { %v6745_v11 = vpop.f32.mrf.mxu0 }
 0xc55   : > { %v2624_v15 = vpop.f32.mrf.mxu0 }
 0xc57   : > { %v6759_v16 = vpop.f32.mrf.mxu0 }
 0xc5d   : > { %v2706_v17 = vpop.f32.mrf.mxu0 }
 0xc5e   : > { %v2707_v18 = vadd.f32 %v2706_v17, %v8044_v39 }
 0xc5f   : > { %v6766_v19 = vpop.f32.mrf.mxu0 }
 0xc60   : > { %v2710_v22 = vsel %vm1992_vm4, %v2707_v18, -inf  ;;  %v3098_v19 = vld [vmem:[%s8733_s5 + $0x18] sm:$0xff] }
 0xc61   : > { %2711 = vmax.xlane.f32.xlu1 %v2710_v22  ;;  %v3097_v22 = vld [vmem:[%s8733_s5 + $0x10] sm:$0xff] }
 0xc72   : > { %2721 = vrot.lane.b32.xlu1 %v8017_v24, %s8645_s2 }
 0xc76   : > { %2804 = vrot.lane.b32.xlu1 %v8011_v25, %s8726_s22 }
 0xc7a   : > { %2800 = vrot.lane.b32.xlu1 %v8026_v31, %s8726_s22 }
 0xcea   : > { %v2712_v23 = vpop.xlane.xlu1 %2711 }
 0xceb   : > { %v2713_v26 = vsub.f32 %v2707_v18, %v2712_v23  ;;  %v3095_v23 = vld [vmem:[%s8733_s5] sm:$0xff] }
 0xced   : > { %v2714_v27 = vmul.f32 1.442695, %v2713_v26  ;;  %v3187_v26 = vld [vmem:[%s8734_s8 + $0x38] sm:$0xff] }
 0xcee   : > { %v2722_v33 = vpop.permute.xlu1 %2721 }
 0xcef   : > { %7227 = vpow2.f32 %v2714_v27  ;;  %v3186_v27 = vld [vmem:[%s8734_s8 + $0x30] sm:$0xff] }
 0xcf2   : > { %v2805_v36 = vpop.permute.xlu1 %2804 }
 0xcf6   : > { %v2801_v38 = vpop.permute.xlu1 %2800 }
 0xcfc   : > { %v7228_v28 = vpop.eup %7227 }
 0xcfd   : > { %v2716_v29 = vsel %vm1992_vm4, %v7228_v28, 0.0 }
 0xcfe   : > { %2717 = vadd.xlane.f32.xlu0 %v2716_v29  ;;  %v3184_v29 = vld [vmem:[%s8734_s8 + $0x20] sm:$0xff] }
 0xd14   : > { %2723 = vrot.lane.b32.xlu0 %v8011_v25, %s8645_s2  ;;  %s8729_s2 = sld [smem:[#allocation30_spill]] }
 0xd18   : > { %2802 = vrot.lane.b32.xlu0 %v8017_v24, %s8726_s22 }
 0xd1a   : > { %v2990_v56 = vld [vmem:[%s8729_s2 + $0x18] sm:$0xff]  ;;  %v2989_v57 = vld [vmem:[%s8729_s2 + $0x10] sm:$0xff]  ;;  %v2987_v58 = vld [vmem:[%s8729_s2] sm:$0xff] }
 0xd87   : > { %v2718_v30 = vpop.xlane.xlu0 %2717 }
 0xd88   : > { %7229 = vrcp.f32 %v2718_v30  ;;  %v3183_v30 = vld [vmem:[%s8734_s8 + $0x18] sm:$0xff] }
 0xd8b   : > { %v2724_v32 = vpop.permute.xlu0 %2723 }
 0xd8c   : > { %6768 = vmatpush3.msra.mxu1 %v2724_v32 }
 0xd8d   : > { %6769 = vmatprep.subr.mxu1 %v7520_v1 }
 0xd8e   : > { %6770 = vmatpush3.msra.mxu1 %v2722_v33 }
 0xd8f   : > { %6774 = vmatprep.subr.mxu1 %v7520_v1  ;;  %v2803_v37 = vpop.permute.xlu0 %2802 }
 0xd95   : > { %v7230_v31 = vpop.eup %7229 }
 0xd96   : > { %v2720_v34 = vmul.f32 %v7230_v31, %v7228_v28  ;;  %v3185_v28 = vld [vmem:[%s8734_s8 + $0x28] sm:$0xff] }
 0xd98   : > { %6772 = vmatmul.mubr.msk.f32.vlgmr.msra.gmra.mxu1 %vm1992_vm4, %v2720_v34  ;;  %v8163_v34 = vsub.s32 1, %v7908_v35 }
 0xd99   : > { %6775 = vmatpush3.xpose.msk.msra.mxu1 %vm1321_vm2, %v2805_v36  ;;  %6778 = vmatprep.mubr.msk.f32.mxu1 %vm7521_vm1, %v7520_v1 }
 0xd9a   : > { %6776 = vmatprep.subr.mxu1 %v7520_v1  ;;  %v3088_v36 = vrot.slane %v7995_v13, %v8163_v34 }
 0xd9d   : > { %6777 = vmatpush3.xpose.msk.msra.mxu1 %vm1321_vm2, %v2803_v37 }
 0xd9e   : > { %6799 = vmatprep.subr.mxu1 %v7520_v1 }
 0xda0   : > { %6779 = vmatmul.mubr.msk.f32.vlgmr.msra.gmra.mxu1 %vm1321_vm2, %v2801_v38 }
 0xda1   : > { %6807 = vmatprep.mubr.msk.f32.mxu1 %vm7521_vm1, %v7520_v1  ;;  %6800 = vmatpush3.msra.mxu1 %v3098_v19 }
 0xda2   : > { %6801 = vmatprep.subr.mxu1 %v7520_v1 }
 0xda3   : > { %6802 = vmatpush3.msra.mxu1 %v3097_v22 }
 0xda4   : > { %6803 = vmatprep.subr.mxu1 %v7520_v1 }
 0xe58   : > { %v2796_v40 = vpop.f32.mrf.mxu1 }
 0xe5a   : > { %v6773_v42 = vpop.f32.mrf.mxu1 }
 0xe60   : > { %v2878_v43 = vpop.f32.mrf.mxu1 }
 0xe61   : > { %v2879_v44 = vadd.f32 %v2878_v43, %v8044_v39 }
 0xe62   : > { %v6780_v45 = vpop.f32.mrf.mxu1 }
 0xe63   : > { %v2882_v46 = vsel %vm1992_vm4, %v2879_v44, -inf  ;;  %v3181_v45 = vld [vmem:[%s8734_s8 + $0x8] sm:$0xff] }
 0xe64   : > { %2883 = vmax.xlane.f32.xlu0 %v2882_v46  ;;  %v3180_v46 = vld [vmem:[%s8734_s8] sm:$0xff] }
 0xe7a   : > { %2895 = vrot.lane.b32.xlu0 %v8011_v25, %s8727_s4 }
 0xe7e   : > { %2973 = vrot.lane.b32.xlu0 %v2624_v15, %s8728_s11 }
 0xeed   : > { %v2884_v47 = vpop.xlane.xlu0 %2883 }
 0xeee   : > { %v2885_v48 = vsub.f32 %v2879_v44, %v2884_v47  ;;  %v3182_v44 = vld [vmem:[%s8734_s8 + $0x10] sm:$0xff]  ;;  %v6361_v47 = vld [vmem:[%s8735_s9] ss:$0 sm:$0xff] }
 0xef0   : > { %v2886_v49 = vmul.f32 1.442695, %v2885_v48 }
 0xef1   : > { %v2896_v50 = vpop.permute.xlu0 %2895 }
 0xef2   : > { %7231 = vpow2.f32 %v2886_v49  ;;  %6782 = vmatpush3.msra.mxu0 %v2896_v50 }
 0xef3   : > { %6783 = vmatprep.subr.mxu0 %v7520_v1 }
 0xef5   : > { %v2974_v61 = vpop.permute.xlu0 %2973 }
 0xef6   : > { %v2984_v63 = vsel %vm1321_vm2, %v8083_v10, %v2974_v61  ;;  %v3301_v61 = vld [vmem:[#allocation6 + $0x38] sm:$0xff] }
 0xeff   : > { %v7232_v51 = vpop.eup %7231 }
 0xf00   : > { %v2888_v52 = vsel %vm1992_vm4, %v7232_v51, 0.0 }
 0xf01   : > { %2889 = vadd.xlane.f32.xlu1 %v2888_v52  ;;  %v6363_v52 = vld [vmem:[%s8736_s13] ss:$0 sm:$0xff] }
 0xf12   : > { %2893 = vrot.lane.b32.xlu1 %v8017_v24, %s8727_s4  ;;  %v2988_v24 = vld [vmem:[%s8729_s2 + $0x8] sm:$0xff] }
 0xf16   : > { %2977 = vrot.lane.b32.xlu1 %v2796_v40, %s8730_s16  ;;  %v3093_v40 = vrot.slane %v7998_v14, %v8163_v34 }
 0xf8a   : > { %v2890_v25 = vpop.xlane.xlu1 %2889 }
 0xf8b   : > { %7233 = vrcp.f32 %v2890_v25 }
 0xf8e   : > { %v2894_v53 = vpop.permute.xlu1 %2893 }
 0xf8f   : > { %6784 = vmatpush3.msra.mxu0 %v2894_v53 }
 0xf90   : > { %6788 = vmatprep.subr.mxu0 %v7520_v1 }
 0xf92   : > { %v2978_v62 = vpop.permute.xlu1 %2977 }
 0xf93   : > { %v2985_v0 = vsel %vm1992_vm4, %v2984_v63, %v2978_v62  ;;  %v3300_v62 = vld [vmem:[#allocation6 + $0x30] sm:$0xff]  ;;  %v3299_v63 = vld [vmem:[#allocation6 + $0x28] sm:$0xff] }
 0xf98   : > { %v7234_v54 = vpop.eup %7233 }
 0xf99   : > { %v2892_v55 = vmul.f32 %v7234_v54, %v7232_v51 }
 0xf9b   : > { %6786 = vmatmul.mubr.msk.f32.vlgmr.msra.gmra.mxu0 %vm1992_vm4, %v2892_v55 }
 0xf9c   : > { %6796 = vmatprep.mubr.msk.f32.mxu0 %vm7521_vm1, %v7520_v1  ;;  %6789 = vmatpush3.msra.mxu0 %v2990_v56 }
 0xf9d   : > { %6790 = vmatprep.subr.mxu0 %v7520_v1 }
 0xf9e   : > { %6791 = vmatpush3.msra.mxu0 %v2989_v57 }
 0xf9f   : > { %6792 = vmatprep.subr.mxu0 %v7520_v1 }
 0xfa0   : > { %6793 = vmatpush3.msra.mxu0 %v2988_v24 }
 0xfa1   : > { %6794 = vmatprep.subr.mxu0 %v7520_v1 }
 0xfa2   : > { %6795 = vmatpush3.msra.mxu0 %v2987_v58 }
 0xfa3   : > { %6810 = vmatprep.subr.mxu0 %v7520_v1 }
0x105b   : > { %v2968_v59 = vpop.f32.mrf.mxu0 }
0x105c   : > { %2981 = vrot.lane.b32.xlu0 %v2968_v59, %s8732_s3 }
0x105d   : > { %v6787_v60 = vpop.f32.mrf.mxu0 }
0x10ce   : > { %v2982_v21 = vpop.permute.xlu0 %2981 }
0x10cf   : > { %v2986_v2 = vsel %vm1994_vm5, %v2985_v0, %v2982_v21  ;;  %v3298_v0 = vld [vmem:[#allocation6 + $0x20] sm:$0xff] }
0x10d0   : > { %6797 = vmatmul.mubr.msk.f32.vlgmr.msra.gmra.mxu0 %vm1182_vm0, %v2986_v2 }
0x10d1   : > { %6826 = vmatprep.mubr.msk.f32.mxu0 %vm7521_vm1, %v7520_v1  ;;  %6811 = vmatpush3.msra.mxu0 %v3187_v26 }
0x10d2   : > { %6812 = vmatprep.subr.mxu0 %v7520_v1 }
0x10d3   : > { %6813 = vmatpush3.msra.mxu0 %v3186_v27 }
0x10d4   : > { %6814 = vmatprep.subr.mxu0 %v7520_v1 }
0x10d5   : > { %6815 = vmatpush3.msra.mxu0 %v3185_v28 }
0x10d6   : > { %6816 = vmatprep.subr.mxu0 %v7520_v1 }
0x10d7   : > { %6817 = vmatpush3.msra.mxu0 %v3184_v29 }
0x10d8   : > { %6818 = vmatprep.subr.mxu0 %v7520_v1 }
0x10d9   : > { %6819 = vmatpush3.msra.mxu0 %v3183_v30 }
0x10da   : > { %6820 = vmatprep.subr.mxu0 %v7520_v1 }
0x10db   : > { %6821 = vmatpush3.msra.mxu0 %v3182_v44 }
0x10dc   : > { %6822 = vmatprep.subr.mxu0 %v7520_v1 }
0x10dd   : > { %6823 = vmatpush3.msra.mxu0 %v3181_v45 }
0x10de   : > { %6824 = vmatprep.subr.mxu0 %v7520_v1 }
0x10df   : > { %6825 = vmatpush3.msra.mxu0 %v3180_v46 }
0x10e0   : > { %6850 = vmatprep.subr.mxu0 %v7520_v1 }
0x1190   : > { %v3067_v5 = vpop.f32.mrf.mxu0 }
0x1191   : > { %v3068_v6 = vadd.f32 %v6359_v4, %v3067_v5  ;;  %v8190_v5 = vsub.s32 2, %v7908_v35 }
0x1192   : > { %v6798_v8 = vpop.f32.mrf.mxu0 }
0x1193   : > { %v3071_v9 = vadd.f32 %v3068_v6, %v8004_v20  ;;  %v3096_v20 = vld [vmem:[%s8733_s5 + $0x8] sm:$0xff]  ;;  %v3286_v6 = vrot.slane %v7995_v13, %v8190_v5 }
0x1194   : > { %6804 = vmatpush3.msra.mxu1 %v3096_v20 }
0x1195   : > { %v3072_v10 = vsel %vm1182_vm0, %v3071_v9, 0.0  ;;  %6805 = vmatprep.subr.mxu1 %v7520_v1 }
0x1196   : > { %3073 = vadd.xlane.f32.xlu1 %v3072_v10  ;;  %6806 = vmatpush3.msra.mxu1 %v3095_v23  ;;  %v3291_v10 = vrot.slane %v7998_v14, %v8190_v5 }
0x1197   : > { %6829 = vmatprep.subr.mxu1 %v7520_v1 }
0x121f   : > { %v3074_v11 = vpop.xlane.xlu1 %3073 }
0x1220   : > { %v3075_v15 = vmul.f32 0.03125, %v3074_v11 }
0x1222   : > { %v3076_v16 = vsub.f32 %v3071_v9, %v3075_v15 }
0x1224   : > { %v3077_v17 = vmul.f32 %v3076_v16, %v3076_v16 }
0x1226   : > { %v3078_v18 = vsel %vm1182_vm0, %v3077_v17, 0.0 }
0x1227   : > { %3079 = vadd.xlane.f32.xlu0 %v3078_v18 }
0x12b0   : > { %v3080_v32 = vpop.xlane.xlu0 %3079 }
0x12b1   : > { %v3081_v33 = vmul.f32 0.03125, %v3080_v32 }
0x12b3   : > { %v3082_v31 = vadd.f32 1e-05, %v3081_v33 }
0x12b5   : > { %7235 = vrsqrt.f32 %v3082_v31 }
0x12c2   : > { %v7236_v37 = vpop.eup %7235 }
0x12c3   : > { %v3084_v38 = vmul.f32 %v7236_v37, %v3076_v16  ;;  %v6368_v16 = vld [vmem:[%s8689_s19 + $0x1] ss:$0 sm:$0xff]  ;;  %s8741_s19 = smov 112  }
0x12c5   : > { %v3089_v42 = vmul.f32 %v3088_v36, %v3084_v38 }
0x12c7   : > { %v3094_v43 = vadd.f32 %v3093_v40, %v3089_v42 }
0x12c9   : > { %6808 = vmatmul.mubr.msk.f32.vlgmr.msra.gmra.mxu1 %vm1182_vm0, %v3094_v43 }
0x12ca   : > { %6837 = vmatprep.mubr.msk.f32.mxu1 %vm7521_vm1, %v7520_v1  ;;  %6830 = vmatpush3.msra.mxu1 %v3301_v61 }
0x12cb   : > { %6831 = vmatprep.subr.mxu1 %v7520_v1 }
0x12cc   : > { %6832 = vmatpush3.msra.mxu1 %v3300_v62 }
0x12cd   : > { %6833 = vmatprep.subr.mxu1 %v7520_v1 }
0x12ce   : > { %6834 = vmatpush3.msra.mxu1 %v3299_v63 }
0x12cf   : > { %6835 = vmatprep.subr.mxu1 %v7520_v1 }
0x12d0   : > { %6836 = vmatpush3.msra.mxu1 %v3298_v0 }
0x12d1   : > { %6840 = vmatprep.subr.mxu1 %v7520_v1 }
0x1389   : > { %v3175_v48 = vpop.f32.mrf.mxu1 }
0x138a   : > { %v3176_v49 = vadd.f32 %v6361_v47, %v3175_v48 }
0x138b   : > { %v6809_v50 = vpop.f32.mrf.mxu1 }
0x138c   : > { %v3179_v51 = vmax.f32 %v3176_v49, 0.0 }
0x138e   : > { %6827 = vmatmul.mubr.msk.f32.vlgmr.msra.gmra.mxu0 %vm3195_vm6, %v3179_v51 }
0x138f   : > { %6852 = vmatprep.mubr.msk.f32.mxu0 %vm7521_vm1, %v7520_v1 }
0x144e   : > { %v3265_v25 = vpop.f32.mrf.mxu0 }
0x144f   : > { %v3266_v53 = vadd.f32 %v6363_v52, %v3265_v25 }
0x1450   : > { %v6828_v54 = vpop.f32.mrf.mxu0 }
0x1451   : > { %v3269_v55 = vadd.f32 %v3266_v53, %v3094_v43 }
0x1453   : > { %v3270_v56 = vsel %vm1182_vm0, %v3269_v55, 0.0 }
0x1454   : > { %3271 = vadd.xlane.f32.xlu0 %v3270_v56 }
0x14dd   : > { %v3272_v57 = vpop.xlane.xlu0 %3271 }
0x14de   : > { %v3273_v24 = vmul.f32 0.03125, %v3272_v57 }
0x14e0   : > { %v3274_v58 = vsub.f32 %v3269_v55, %v3273_v24 }
0x14e2   : > { %v3275_v59 = vmul.f32 %v3274_v58, %v3274_v58 }
0x14e4   : > { %v3276_v60 = vsel %vm1182_vm0, %v3275_v59, 0.0 }
0x14e5   : > { %3277 = vadd.xlane.f32.xlu1 %v3276_v60 }
0x156e   : > { %v3278_v21 = vpop.xlane.xlu1 %3277 }
0x156f   : > { %v3279_v2 = vmul.f32 0.03125, %v3278_v21 }
0x1571   : > { %v3280_v4 = vadd.f32 1e-05, %v3279_v2 }
0x1573   : > { %7237 = vrsqrt.f32 %v3280_v4 }
0x1580   : > { %v7238_v8 = vpop.eup %7237 }
0x1581   : > { %v3282_v9 = vmul.f32 %v7238_v8, %v3274_v58 }
0x1583   : > { %v3287_v11 = vmul.f32 %v3286_v6, %v3282_v9 }
0x1585   : > { %v8196_v15 = vadd.f32 %v3291_v10, %v3287_v11 }
0x1587   : > { %6838 = vmatmul.mubr.msk.f32.vlgmr.msra.gmra.mxu1 %vm1182_vm0, %v8196_v15 }
0x1588   : > { %6842 = vmatprep.mubr.msk.f32.mxu1 %vm7521_vm1, %v7520_v1 }
0x1647   : > { %v3379_v35 = vpop.f32.mrf.mxu1 }
0x1648   : > { %v8203_v17 = vadd.f32 %v6368_v16, %v3379_v35 }
0x1649   : > { %v6839_v18 = vpop.f32.mrf.mxu1 }
0x164a   : > { %3551 = vrot.lane.b32.xlu1 %v8203_v17, %s8737_s21  ;;  %3385 = vrot.lane.b32.xlu0 %v8203_v17, %s8738_s10  ;;  %v3383_v13 = vmul.f32 0.35355338, %v8203_v17 }
0x164e   : > { %3716 = vrot.lane.b32.xlu0 %v8203_v17, %s8739_s26  ;;  %3549 = vrot.lane.b32.xlu1 %v3383_v13, %s8740_s15 }
0x1652   : > { %3881 = vrot.lane.b32.xlu0 %v8203_v17, %s8727_s4  ;;  %3714 = vrot.lane.b32.xlu1 %v3383_v13, %s8741_s19 }
0x1656   : > { %3879 = vrot.lane.b32.xlu1 %v3383_v13, %s8726_s22 }
0x16bc   : > { %v3552_v14 = vpop.permute.xlu1 %3551  ;;  %v3386_v19 = vpop.permute.xlu0 %3385 }
0x16bd   : > { %6841 = vmatpush3.xpose.msk.msra.mxu1 %vm1321_vm2, %v3386_v19  ;;  %6851 = vmatpush3.xpose.msk.msra.mxu0 %vm1321_vm2, %v3552_v14 }
0x16be   : > { %6860 = vmatprep.subr.mxu0 %v7520_v1  ;;  %6845 = vmatprep.subr.mxu1 %v7520_v1 }
0x16c0   : > { %v3717_v22 = vpop.permute.xlu0 %3716  ;;  %v3550_v20 = vpop.permute.xlu1 %3549  ;;  %6843 = vmatmul.mubr.msk.f32.vlgmr.msra.gmra.mxu1 %vm1321_vm2, %v3383_v13 }
0x16c1   : > { %6853 = vmatmul.mubr.msk.f32.vlgmr.msra.gmra.mxu0 %vm1321_vm2, %v3550_v20  ;;  %6847 = vmatprep.mubr.msk.f32.mxu1 %vm7521_vm1, %v7520_v1  ;;  %v4063_v20 = vld [vmem:[#allocation8 + $0x38] sm:$0xff] }
0x16c2   : > { %6861 = vmatpush3.xpose.msk.msra.mxu0 %vm1321_vm2, %v3717_v22  ;;  %6862 = vmatprep.mubr.msk.f32.mxu0 %vm7521_vm1, %v7520_v1 }
0x16c3   : > { %6870 = vmatprep.subr.mxu0 %v7520_v1 }
0x16c4   : > { %v3882_v23 = vpop.permute.xlu0 %3881  ;;  %v3715_v26 = vpop.permute.xlu1 %3714 }
0x16c5   : > { %6863 = vmatmul.mubr.msk.f32.vlgmr.msra.gmra.mxu0 %vm1321_vm2, %v3715_v26  ;;  %v4061_v26 = vld [vmem:[#allocation8 + $0x28] sm:$0xff] }
0x16c6   : > { %6871 = vmatpush3.xpose.msk.msra.mxu0 %vm1321_vm2, %v3882_v23  ;;  %6872 = vmatprep.mubr.msk.f32.mxu0 %vm7521_vm1, %v7520_v1  ;;  %v4062_v23 = vld [vmem:[#allocation8 + $0x30] sm:$0xff] }
0x16c7   : > { %6880 = vmatprep.subr.mxu0 %v7520_v1 }
0x16c8   : > { %v3880_v27 = vpop.permute.xlu1 %3879 }
0x16c9   : > { %6873 = vmatmul.mubr.msk.f32.vlgmr.msra.gmra.mxu0 %vm1321_vm2, %v3880_v27 }
0x16ca   : > { %6888 = vmatprep.mubr.msk.f32.mxu0 %vm7521_vm1, %v7520_v1  ;;  %6881 = vmatpush3.msra.mxu0 %v4063_v20 }
0x16cb   : > { %6882 = vmatprep.subr.mxu0 %v7520_v1 }
0x16cc   : > { %6883 = vmatpush3.msra.mxu0 %v4062_v23 }
0x16cd   : > { %6884 = vmatprep.subr.mxu0 %v7520_v1 }
0x16ce   : > { %6885 = vmatpush3.msra.mxu0 %v4061_v26 }
0x16cf   : > { %6886 = vmatprep.subr.mxu0 %v7520_v1 }
0x1780   : > { %v3458_v28 = vpop.f32.mrf.mxu1 }
0x1781   : > { %v3459_v29 = vadd.f32 %v3458_v28, %v7914_v41  ;;  %v3623_v30 = vpop.f32.mrf.mxu0  ;;  %v4060_v28 = vld [vmem:[#allocation8 + $0x20] sm:$0xff] }
0x1782   : > { %v3624_v32 = vadd.f32 %v3623_v30, %v7914_v41  ;;  %v6844_v33 = vpop.f32.mrf.mxu1  ;;  %6887 = vmatpush3.msra.mxu0 %v4060_v28 }
0x1783   : > { %v6854_v31 = vpop.f32.mrf.mxu0  ;;  %v3462_v36 = vsel %vm1321_vm2, %v3459_v29, -inf }
0x1784   : > { %3463 = vmax.xlane.f32.xlu0 %v3462_v36  ;;  %v3627_v37 = vsel %vm1321_vm2, %v3624_v32, -inf }
0x1785   : > { %3628 = vmax.xlane.f32.xlu1 %v3627_v37  ;;  %v3788_v38 = vpop.f32.mrf.mxu0 }
0x1786   : > { %v3789_v40 = vadd.f32 %v3788_v38, %v7914_v41 }
0x1787   : > { %v6864_v42 = vpop.f32.mrf.mxu0 }
0x1788   : > { %v3792_v43 = vsel %vm1321_vm2, %v3789_v40, -inf }
0x1789   : > { %v3953_v44 = vpop.f32.mrf.mxu0  ;;  %3793 = vmax.xlane.f32.xlu0 %v3792_v43 }
0x178a   : > { %v3954_v45 = vadd.f32 %v3953_v44, %v7914_v41 }
0x178b   : > { %v6874_v46 = vpop.f32.mrf.mxu0 }
0x178c   : > { %v3957_v47 = vsel %vm1321_vm2, %v3954_v45, -inf  ;;  %v6383_v46 = vld [vmem:[%s7606_s30 + $0x1] ss:$0 sm:$0xff] }
0x178d   : > { %3958 = vmax.xlane.f32.xlu0 %v3957_v47 }
0x1796   : > { %3473 = vrot.lane.b32.xlu1 %v8203_v17, %s8742_s7  ;;  %s8743_s7 = smov 48  }
0x180d   : > { %v3464_v48 = vpop.xlane.xlu0 %3463 }
0x180e   : > { %v3465_v49 = vsub.f32 %v3459_v29, %v3464_v48  ;;  %v3629_v50 = vpop.xlane.xlu1 %3628 }
0x180f   : > { %v3630_v51 = vsub.f32 %v3624_v32, %v3629_v50 }
0x1810   : > { %v3466_v52 = vmul.f32 1.442695, %v3465_v49 }
0x1811   : > { %v3631_v25 = vmul.f32 1.442695, %v3630_v51 }
0x1812   : > { %7239 = vpow2.f32 %v3466_v52  ;;  %v3474_v53 = vpop.permute.xlu1 %3473  ;;  %v3794_v54 = vpop.xlane.xlu0 %3793 }
0x1813   : > { %7241 = vpow2.f32 %v3631_v25  ;;  %v3795_v55 = vsub.f32 %v3789_v40, %v3794_v54  ;;  %6846 = vmatpush3.msra.mxu1 %v3474_v53 }
0x1814   : > { %6855 = vmatprep.subr.mxu1 %v7520_v1 }
0x1815   : > { %v3796_v41 = vmul.f32 1.442695, %v3795_v55 }
0x1816   : > { %v3959_v56 = vpop.xlane.xlu0 %3958 }
0x1817   : > { %7243 = vpow2.f32 %v3796_v41  ;;  %v3960_v57 = vsub.f32 %v3954_v45, %v3959_v56  ;;  %v6394_v41 = vld [vmem:[%s7621_s20 + $0x30] sm:$0xff]  ;;  %v6392_v56 = vld [vmem:[%s7621_s20 + $0x20] sm:$0xff] }
0x1819   : > { %v3961_v24 = vmul.f32 1.442695, %v3960_v57  ;;  %v6388_v57 = vld [vmem:[%s7611_s6 + $0x38] sm:$0xff] }
0x181b   : > { %7245 = vpow2.f32 %v3961_v24  ;;  %v6387_v24 = vld [vmem:[%s7611_s6 + $0x30] sm:$0xff] }
0x181f   : > { %v7240_v58 = vpop.eup %7239 }
0x1820   : > { %v7242_v59 = vpop.eup %7241  ;;  %v3468_v60 = vsel %vm1321_vm2, %v7240_v58, 0.0 }
0x1821   : > { %3469 = vadd.xlane.f32.xlu1 %v3468_v60  ;;  %v3633_v61 = vsel %vm1321_vm2, %v7242_v59, 0.0 }
0x1822   : > { %3634 = vadd.xlane.f32.xlu0 %v3633_v61 }
0x1824   : > { %v7244_v62 = vpop.eup %7243 }
0x1825   : > { %v3798_v63 = vsel %vm1321_vm2, %v7244_v62, 0.0 }
0x1826   : > { %3799 = vadd.xlane.f32.xlu1 %v3798_v63  ;;  %v8310_v63 = vld [vmem:[%s8722_s24 + $0x4] sm:$0x7] }
0x1828   : > { %v7246_v0 = vpop.eup %7245 }
0x1829   : > { %v3963_v21 = vsel %vm1321_vm2, %v7246_v0, 0.0 }
0x182a   : > { %3964 = vadd.xlane.f32.xlu0 %v3963_v21 }
0x1837   : > { %3803 = vrot.lane.b32.xlu1 %v8203_v17, %s8743_s7 }
0x183b   : > { %3968 = vrot.lane.b32.xlu1 %v8203_v17, %s8744_s25  ;;  %s8747_s25 = sld [smem:[#allocation39_spill]] }
0x1840   : > { %3638 = vrot.lane.b32.xlu0 %v8203_v17, %s8745_s1  ;;  %s8752_s1 = sshll.u32 %s7849_s14, 3 }
0x18aa   : > { %v3470_v2 = vpop.xlane.xlu1 %3469 }
0x18ab   : > { %7247 = vrcp.f32 %v3470_v2  ;;  %v3635_v4 = vpop.xlane.xlu0 %3634 }
0x18ac   : > { %7249 = vrcp.f32 %v3635_v4  ;;  %v4167_v4 = vrot.slane %v8310_v63, %v7992_v12 }
0x18af   : > { %v3800_v6 = vpop.xlane.xlu1 %3799 }
0x18b0   : > { %7251 = vrcp.f32 %v3800_v6 }
0x18b3   : > { %v3965_v8 = vpop.xlane.xlu0 %3964  ;;  %v3804_v35 = vpop.permute.xlu1 %3803 }
0x18b4   : > { %7253 = vrcp.f32 %v3965_v8 }
0x18b7   : > { %v3639_v16 = vpop.permute.xlu0 %3638  ;;  %v3969_v19 = vpop.permute.xlu1 %3968 }
0x18b8   : > { %v7248_v9 = vpop.eup %7247 }
0x18b9   : > { %v3472_v10 = vmul.f32 %v7248_v9, %v7240_v58  ;;  %v7250_v11 = vpop.eup %7249  ;;  %v6386_v58 = vld [vmem:[%s7611_s6 + $0x28] sm:$0xff]  ;;  %v6397_v9 = vld [vmem:[%s8723_s23 + $0x1] ss:$0 sm:$0xff] }
0x18ba   : > { %v3637_v17 = vmul.f32 %v7250_v11, %v7242_v59  ;;  %v6385_v59 = vld [vmem:[%s7611_s6 + $0x20] sm:$0xff] }
0x18bb   : > { %6848 = vmatmul.mubr.msk.f32.vlgmr.msra.gmra.mxu1 %vm1321_vm2, %v3472_v10 }
0x18bc   : > { %6856 = vmatpush3.msra.mxu1 %v3639_v16  ;;  %6857 = vmatprep.mubr.msk.f32.mxu1 %vm7521_vm1, %v7520_v1 }
0x18bd   : > { %6865 = vmatprep.subr.mxu1 %v7520_v1  ;;  %v7252_v18 = vpop.eup %7251 }
0x18be   : > { %v3802_v13 = vmul.f32 %v7252_v18, %v7244_v62  ;;  %v8307_v62 = vld [vmem:[%s7641_s29 + $0x4] sm:$0x7] }
0x18bf   : > { %6858 = vmatmul.mubr.msk.f32.vlgmr.msra.gmra.mxu1 %vm1321_vm2, %v3637_v17  ;;  %v6390_v17 = vld [vmem:[%s8724_s18 + $0x1] ss:$0 sm:$0xff] }
0x18c0   : > { %6866 = vmatpush3.msra.mxu1 %v3804_v35  ;;  %6867 = vmatprep.mubr.msk.f32.mxu1 %vm7521_vm1, %v7520_v1 }
0x18c1   : > { %6875 = vmatprep.subr.mxu1 %v7520_v1  ;;  %v7254_v14 = vpop.eup %7253 }
0x18c2   : > { %v3967_v22 = vmul.f32 %v7254_v14, %v7246_v0  ;;  %v4162_v0 = vrot.slane %v8307_v62, %v7992_v12 }
0x18c3   : > { %6868 = vmatmul.mubr.msk.f32.vlgmr.msra.gmra.mxu1 %vm1321_vm2, %v3802_v13 }
0x18c4   : > { %6876 = vmatpush3.msra.mxu1 %v3969_v19  ;;  %6877 = vmatprep.mubr.msk.f32.mxu1 %vm7521_vm1, %v7520_v1 }
0x18c5   : > { %6891 = vmatprep.subr.mxu1 %v7520_v1 }
0x18c7   : > { %6878 = vmatmul.mubr.msk.f32.vlgmr.msra.gmra.mxu1 %vm1321_vm2, %v3967_v22 }
0x18c8   : > { %6899 = vmatprep.mubr.msk.f32.mxu1 %vm7521_vm1, %v7520_v1  ;;  %6892 = vmatpush3.msra.mxu1 %v6388_v57 }
0x18c9   : > { %6893 = vmatprep.subr.mxu1 %v7520_v1 }
0x18ca   : > { %6894 = vmatpush3.msra.mxu1 %v6387_v24 }
0x18cb   : > { %6895 = vmatprep.subr.mxu1 %v7520_v1 }
0x18cc   : > { %6896 = vmatpush3.msra.mxu1 %v6386_v58 }
0x18cd   : > { %6897 = vmatprep.subr.mxu1 %v7520_v1 }
0x18ce   : > { %6898 = vmatpush3.msra.mxu1 %v6385_v59 }
0x18cf   : > { %6913 = vmatprep.subr.mxu1 %v7520_v1 }
0x197b   : > { %v3545_v27 = vpop.f32.mrf.mxu1 }
0x197d   : > { %v6849_v29 = vpop.f32.mrf.mxu1 }
0x197f   : > { %v3710_v30 = vpop.f32.mrf.mxu1 }
0x1980   : > { %4045 = vrot.lane.b32.xlu0 %v3710_v30, %s8728_s11 }
0x1981   : > { %v6859_v32 = vpop.f32.mrf.mxu1 }
0x1983   : > { %v3875_v33 = vpop.f32.mrf.mxu1 }
0x1984   : > { %4049 = vrot.lane.b32.xlu1 %v3875_v33, %s8730_s16 }
0x1985   : > { %v6869_v31 = vpop.f32.mrf.mxu1 }
0x1987   : > { %v4040_v36 = vpop.f32.mrf.mxu1 }
0x1988   : > { %4053 = vrot.lane.b32.xlu0 %v4040_v36, %s8732_s3 }
0x1989   : > { %v6879_v37 = vpop.f32.mrf.mxu1 }
0x19f2   : > { %v4046_v38 = vpop.permute.xlu0 %4045 }
0x19f3   : > { %v4056_v42 = vsel %vm1321_vm2, %v3545_v27, %v4046_v38 }
0x19f6   : > { %v4050_v40 = vpop.permute.xlu1 %4049 }
0x19f7   : > { %v4057_v43 = vsel %vm1992_vm4, %v4056_v42, %v4050_v40 }
0x19fa   : > { %v4054_v44 = vpop.permute.xlu0 %4053 }
0x19fb   : > { %v4058_v45 = vsel %vm1994_vm5, %v4057_v43, %v4054_v44 }
0x19fc   : > { %6889 = vmatmul.mubr.msk.f32.vlgmr.msra.gmra.mxu0 %vm1182_vm0, %v4058_v45 }
0x19fd   : > { %6910 = vmatprep.mubr.msk.f32.mxu0 %vm1182_vm0, %v7972_v3  ;;  %v6395_v3 = vld [vmem:[%s7621_s20 + $0x38] sm:$0xff] }
0x19fe   : > { %6902 = vmatprep.subr.mxu0 %v6395_v3 }
0x19ff   : > { %6903 = vmatpush3.msra.mxu0 %v6395_v3 }
0x1a00   : > { %6904 = vmatprep.subr.mxu0 %v6394_v41 }
0x1a01   : > { %6905 = vmatpush3.msra.mxu0 %v6394_v41 }
0x1abc   : > { %v4141_v47 = vpop.f32.mrf.mxu0 }
0x1abd   : > { %v4142_v48 = vadd.f32 %v6383_v46, %v4141_v47 }
0x1abe   : > { %v6890_v49 = vpop.f32.mrf.mxu0 }
0x1abf   : > { %v4145_v50 = vadd.f32 %v4142_v48, %v8196_v15  ;;  %v6393_v15 = vld [vmem:[%s7621_s20 + $0x28] sm:$0xff] }
0x1ac0   : > { %6906 = vmatprep.subr.mxu0 %v6393_v15 }
0x1ac1   : > { %v4146_v51 = vsel %vm1182_vm0, %v4145_v50, 0.0  ;;  %6907 = vmatpush3.msra.mxu0 %v6393_v15 }
0x1ac2   : > { %4147 = vadd.xlane.f32.xlu1 %v4146_v51  ;;  %6908 = vmatprep.subr.mxu0 %v6392_v56 }
0x1ac3   : > { %6909 = vmatpush3.msra.mxu0 %v6392_v56 }
0x1ac4   : > { %6911 = vmatmul.mubr.msk.f32.vlgmr.msra.gmra.mxu0 %vm1182_vm0, %v7980_v7  ;;  %6920 = vmatprep.subr.mxu0 %v7520_v1 }
0x1ac5   : > { %6924 = vmatprep.mubr.msk.f32.mxu0 %vm7521_vm1, %v7520_v1 }
0x1b4b   : > { %v4148_v52 = vpop.xlane.xlu1 %4147 }
0x1b4c   : > { %v4149_v25 = vmul.f32 0.03125, %v4148_v52 }
0x1b4e   : > { %v4150_v53 = vsub.f32 %v4145_v50, %v4149_v25 }
0x1b50   : > { %v4151_v54 = vmul.f32 %v4150_v53, %v4150_v53 }
0x1b52   : > { %v4152_v55 = vsel %vm1182_vm0, %v4151_v54, 0.0 }
0x1b53   : > { %4153 = vadd.xlane.f32.xlu0 %v4152_v55 }
0x1b84   : > { %v6912_v10 = vpop.f32.mrf.mxu0 }
0x1b85   : > { %v8323_v11 = vadd.f32 %v6912_v10, %v6397_v9 }
0x1b86   : > { %v4334_v16 = vpop.f32.mrf.mxu0 }
0x1b87   : > { %4517 = vrot.lane.b32.xlu0 %v8323_v11, %s8740_s15  ;;  %v8329_v35 = vadd.f32 %v6397_v9, %v4334_v16 }
0x1b89   : > { %4515 = vrot.lane.b32.xlu1 %v8329_v35, %s8740_s15 }
0x1bdc   : > { %v4154_v7 = vpop.xlane.xlu0 %4153 }
0x1bdd   : > { %v4155_v60 = vmul.f32 0.03125, %v4154_v7 }
0x1bdf   : > { %v4156_v61 = vadd.f32 1e-05, %v4155_v60 }
0x1be1   : > { %7255 = vrsqrt.f32 %v4156_v61 }
0x1bee   : > { %v7256_v21 = vpop.eup %7255 }
0x1bef   : > { %v4158_v2 = vmul.f32 %v7256_v21, %v4150_v53 }
0x1bf1   : > { %v4163_v6 = vmul.f32 %v4162_v0, %v4158_v2 }
0x1bf3   : > { %v8316_v8 = vadd.f32 %v4167_v4, %v4163_v6 }
0x1bf5   : > { %6900 = vmatmul.mubr.msk.f32.vlgmr.msra.gmra.mxu1 %vm1182_vm0, %v8316_v8 }
0x1bf6   : > { %6917 = vmatprep.mubr.msk.f32.mxu1 %vm7521_vm1, %v7520_v1  ;;  %6914 = vmatpush3.xpose.msk.msra.mxu1 %vm1321_vm2, %v8323_v11 }
0x1bf7   : > { %6915 = vmatprep.subr.mxu1 %v7520_v1 }
0x1bf9   : > { %v4518_v22 = vpop.permute.xlu0 %4517 }
0x1bfa   : > { %6916 = vmatpush3.xpose.msk.msra.mxu1 %vm1321_vm2, %v8329_v35 }
0x1bfb   : > { %6927 = vmatprep.subr.mxu1 %v7520_v1  ;;  %v4516_v20 = vpop.permute.xlu1 %4515 }
0x1cb5   : > { %v4251_v18 = vpop.f32.mrf.mxu1 }
0x1cb6   : > { %v4252_v13 = vadd.f32 %v6390_v17, %v4251_v18 }
0x1cb7   : > { %v6901_v14 = vpop.f32.mrf.mxu1 }
0x1cb8   : > { %v8338_v19 = vmul.f32 0.35355338, %v4252_v13 }
0x1cba   : > { %4513 = vrot.lane.b32.xlu1 %v8338_v19, %s8740_s15  ;;  %6918 = vmatmul.mubr.msk.f32.vlgmr.msra.gmra.mxu1 %vm1321_vm2, %v8338_v19 }
0x1cbb   : > { %6928 = vmatpush3.xpose.msk.msra.mxu1 %vm1321_vm2, %v4518_v22  ;;  %6931 = vmatprep.mubr.msk.f32.mxu1 %vm7521_vm1, %v7520_v1 }
0x1cbc   : > { %6929 = vmatprep.subr.mxu1 %v7520_v1 }
0x1cbf   : > { %6930 = vmatpush3.xpose.msk.msra.mxu1 %vm1321_vm2, %v4516_v20 }
0x1cc0   : > { %6948 = vmatprep.subr.mxu1 %v7520_v1 }
0x1d2c   : > { %v4514_v23 = vpop.permute.xlu1 %4513 }
0x1d2d   : > { %6932 = vmatmul.mubr.msk.f32.vlgmr.msra.gmra.mxu1 %vm1321_vm2, %v4514_v23 }
0x1d2e   : > { %6952 = vmatprep.mubr.msk.f32.mxu1 %vm7521_vm1, %v7520_v1 }
0x1d7a   : > { %v4419_v26 = vpop.f32.mrf.mxu1 }
0x1d7b   : > { %v4420_v27 = vadd.f32 %v4419_v26, %v8044_v39 }
0x1d7c   : > { %v6919_v28 = vpop.f32.mrf.mxu1 }
0x1d7d   : > { %v4423_v29 = vsel %vm1992_vm4, %v4420_v27, -inf }
0x1d7e   : > { %4424 = vmax.xlane.f32.xlu0 %v4423_v29 }
0x1d94   : > { %4434 = vrot.lane.b32.xlu0 %v8329_v35, %s8738_s10 }
0x1ded   : > { %v4591_v30 = vpop.f32.mrf.mxu1 }
0x1dee   : > { %v4592_v32 = vadd.f32 %v4591_v30, %v8044_v39 }
0x1def   : > { %v6933_v33 = vpop.f32.mrf.mxu1 }
0x1df0   : > { %v4595_v31 = vsel %vm1992_vm4, %v4592_v32, -inf }
0x1df1   : > { %4596 = vmax.xlane.f32.xlu1 %v4595_v31 }
0x1e02   : > { %4436 = vrot.lane.b32.xlu1 %v8323_v11, %s8738_s10  ;;  %s8749_s10 = sld [smem:[#allocation22_spill]] }
0x1e06   : > { %4608 = vrot.lane.b32.xlu1 %v8323_v11, %s8737_s21 }
0x1e07   : > { %v4425_v36 = vpop.xlane.xlu0 %4424 }
0x1e08   : > { %v4426_v37 = vsub.f32 %v4420_v27, %v4425_v36 }
0x1e0a   : > { %v4427_v38 = vmul.f32 1.442695, %v4426_v37  ;;  %4606 = vrot.lane.b32.xlu1 %v8329_v35, %s8737_s21  ;;  %s8746_s21 = sld [smem:[#allocation41_spill]] }
0x1e0b   : > { %v4435_v47 = vpop.permute.xlu0 %4434 }
0x1e0c   : > { %7257 = vpow2.f32 %v4427_v38 }
0x1e0e   : > { %4687 = vrot.lane.b32.xlu1 %v8329_v35, %s8741_s19 }
0x1e19   : > { %v7258_v40 = vpop.eup %7257 }
0x1e1a   : > { %v4429_v42 = vsel %vm1992_vm4, %v7258_v40, 0.0 }
0x1e1b   : > { %4430 = vadd.xlane.f32.xlu0 %v4429_v42  ;;  %v6419_v42 = vld [vmem:[%s8729_s2 + $0x38] sm:$0xff] }
0x1e7a   : > { %v4597_v43 = vpop.xlane.xlu1 %4596 }
0x1e7b   : > { %v4598_v44 = vsub.f32 %v4592_v32, %v4597_v43  ;;  %v6418_v43 = vld [vmem:[%s8729_s2 + $0x30] sm:$0xff] }
0x1e7d   : > { %v4599_v45 = vmul.f32 1.442695, %v4598_v44  ;;  %v6416_v44 = vld [vmem:[%s8729_s2 + $0x20] sm:$0xff] }
0x1e7e   : > { %v4437_v46 = vpop.permute.xlu1 %4436 }
0x1e7f   : > { %7259 = vpow2.f32 %v4599_v45  ;;  %6921 = vmatpush3.msra.mxu0 %v4437_v46 }
0x1e80   : > { %6922 = vmatprep.subr.mxu0 %v7520_v1 }
0x1e81   : > { %6923 = vmatpush3.msra.mxu0 %v4435_v47 }
0x1e82   : > { %6934 = vmatprep.subr.mxu0 %v7520_v1  ;;  %v4609_v51 = vpop.permute.xlu1 %4608 }
0x1e86   : > { %v4607_v53 = vpop.permute.xlu1 %4606 }
0x1e8a   : > { %v4688_v15 = vpop.permute.xlu1 %4687 }
0x1e8c   : > { %v7260_v48 = vpop.eup %7259 }
0x1e8d   : > { %v4601_v49 = vsel %vm1992_vm4, %v7260_v48, 0.0 }
0x1e8e   : > { %4602 = vadd.xlane.f32.xlu0 %v4601_v49 }
0x1ea4   : > { %v4431_v50 = vpop.xlane.xlu0 %4430  ;;  %4689 = vrot.lane.b32.xlu0 %v8323_v11, %s8741_s19 }
0x1ea5   : > { %7261 = vrcp.f32 %v4431_v50 }
0x1ea8   : > { %4685 = vrot.lane.b32.xlu0 %v8338_v19, %s8741_s19 }
0x1eb2   : > { %v7262_v52 = vpop.eup %7261 }
0x1eb3   : > { %v4433_v25 = vmul.f32 %v7262_v52, %v7258_v40 }
0x1eb5   : > { %6925 = vmatmul.mubr.msk.f32.vlgmr.msra.gmra.mxu0 %vm1992_vm4, %v4433_v25  ;;  %v6421_v25 = vld [vmem:[%s8731_s27 + $0x1] ss:$0 sm:$0xff] }
0x1eb6   : > { %6935 = vmatpush3.msra.mxu0 %v4609_v51  ;;  %6938 = vmatprep.mubr.msk.f32.mxu0 %vm7521_vm1, %v7520_v1 }
0x1eb7   : > { %6936 = vmatprep.subr.mxu0 %v7520_v1 }
0x1eb8   : > { %6937 = vmatpush3.msra.mxu0 %v4607_v53 }
0x1eb9   : > { %6941 = vmatprep.subr.mxu0 %v7520_v1 }
0x1f17   : > { %v4603_v54 = vpop.xlane.xlu0 %4602 }
0x1f18   : > { %7263 = vrcp.f32 %v4603_v54 }
0x1f1b   : > { %v4690_v41 = vpop.permute.xlu0 %4689 }
0x1f1f   : > { %v4686_v56 = vpop.permute.xlu0 %4685 }
0x1f25   : > { %v7264_v55 = vpop.eup %7263 }
0x1f26   : > { %v4605_v3 = vmul.f32 %v7264_v55, %v7260_v48 }
0x1f28   : > { %6939 = vmatmul.mubr.msk.f32.vlgmr.msra.gmra.mxu0 %vm1992_vm4, %v4605_v3 }
0x1f29   : > { %6942 = vmatpush3.xpose.msk.msra.mxu0 %vm1321_vm2, %v4690_v41  ;;  %6945 = vmatprep.mubr.msk.f32.mxu0 %vm7521_vm1, %v7520_v1 }
0x1f2a   : > { %6943 = vmatprep.subr.mxu0 %v7520_v1 }
0x1f2d   : > { %6944 = vmatpush3.xpose.msk.msra.mxu0 %vm1321_vm2, %v4688_v15 }
0x1f2e   : > { %6962 = vmatprep.subr.mxu0 %v7520_v1 }
0x1f30   : > { %6946 = vmatmul.mubr.msk.f32.vlgmr.msra.gmra.mxu0 %vm1321_vm2, %v4686_v56 }
0x1f31   : > { %6966 = vmatprep.mubr.msk.f32.mxu0 %vm7521_vm1, %v7520_v1 }
0x1f75   : > { %v8390_v57 = vpop.f32.mrf.mxu0 }
0x1f77   : > { %v6926_v24 = vpop.f32.mrf.mxu0 }
0x1fe8   : > { %v4681_v58 = vpop.f32.mrf.mxu0 }
0x1fea   : > { %v6940_v59 = vpop.f32.mrf.mxu0 }
0x1feb   : > { %v6426_v59 = vld [vmem:[%s8733_s5 + $0x38] sm:$0xff] }
0x1ff0   : > { %v4763_v7 = vpop.f32.mrf.mxu0 }
0x1ff1   : > { %v4764_v60 = vadd.f32 %v4763_v7, %v8044_v39  ;;  %v6425_v7 = vld [vmem:[%s8733_s5 + $0x30] sm:$0xff] }
0x1ff2   : > { %v6947_v61 = vpop.f32.mrf.mxu0 }
0x1ff3   : > { %v4767_v0 = vsel %vm1992_vm4, %v4764_v60, -inf  ;;  %v6437_v61 = vld [vmem:[%s8734_s8 + $0x78] sm:$0xff] }
0x1ff4   : > { %4768 = vmax.xlane.f32.xlu1 %v4767_v0  ;;  %v6436_v0 = vld [vmem:[%s8734_s8 + $0x70] sm:$0xff] }
0x2005   : > { %4778 = vrot.lane.b32.xlu1 %v8329_v35, %s8739_s26 }
0x2009   : > { %4861 = vrot.lane.b32.xlu1 %v8323_v11, %s8726_s22 }
0x200d   : > { %4857 = vrot.lane.b32.xlu1 %v8338_v19, %s8726_s22 }
0x207d   : > { %v4769_v21 = vpop.xlane.xlu1 %4768 }
0x207e   : > { %v4770_v2 = vsub.f32 %v4764_v60, %v4769_v21  ;;  %v6423_v60 = vld [vmem:[%s8733_s5 + $0x20] sm:$0xff]  ;;  %v6435_v21 = vld [vmem:[%s8734_s8 + $0x68] sm:$0xff] }
0x2080   : > { %v4771_v4 = vmul.f32 1.442695, %v4770_v2  ;;  %v6434_v2 = vld [vmem:[%s8734_s8 + $0x60] sm:$0xff] }
0x2081   : > { %v4779_v17 = vpop.permute.xlu1 %4778 }
0x2082   : > { %7265 = vpow2.f32 %v4771_v4  ;;  %v6433_v4 = vld [vmem:[%s8734_s8 + $0x58] sm:$0xff] }
0x2085   : > { %v4862_v14 = vpop.permute.xlu1 %4861 }
0x2089   : > { %v4858_v22 = vpop.permute.xlu1 %4857 }
0x208f   : > { %v7266_v6 = vpop.eup %7265 }
0x2090   : > { %v4773_v9 = vsel %vm1992_vm4, %v7266_v6, 0.0 }
0x2091   : > { %4774 = vadd.xlane.f32.xlu0 %v4773_v9 }
0x20a7   : > { %4780 = vrot.lane.b32.xlu0 %v8323_v11, %s8739_s26  ;;  %s8751_s26 = sld [smem:[#allocation19_spill]] }
0x20ab   : > { %4859 = vrot.lane.b32.xlu0 %v8329_v35, %s8726_s22 }
0x211a   : > { %v4775_v10 = vpop.xlane.xlu0 %4774 }
0x211b   : > { %7267 = vrcp.f32 %v4775_v10 }
0x211e   : > { %v4781_v16 = vpop.permute.xlu0 %4780 }
0x211f   : > { %6949 = vmatpush3.msra.mxu1 %v4781_v16  ;;  %v5147_v16 = vrot.slane %v8307_v62, %v8163_v34 }
0x2120   : > { %6950 = vmatprep.subr.mxu1 %v7520_v1 }
0x2121   : > { %6951 = vmatpush3.msra.mxu1 %v4779_v17 }
0x2122   : > { %6955 = vmatprep.subr.mxu1 %v7520_v1  ;;  %v4860_v19 = vpop.permute.xlu0 %4859 }
0x2128   : > { %v7268_v18 = vpop.eup %7267 }
0x2129   : > { %v4777_v13 = vmul.f32 %v7268_v18, %v7266_v6 }
0x212b   : > { %6953 = vmatmul.mubr.msk.f32.vlgmr.msra.gmra.mxu1 %vm1992_vm4, %v4777_v13  ;;  %v5152_v13 = vrot.slane %v8310_v63, %v8163_v34  ;;  %v6428_v34 = vld [vmem:[%s8735_s9 + $0x1] ss:$0 sm:$0xff] }
0x212c   : > { %6956 = vmatpush3.xpose.msk.msra.mxu1 %vm1321_vm2, %v4862_v14  ;;  %6959 = vmatprep.mubr.msk.f32.mxu1 %vm7521_vm1, %v7520_v1 }
0x212d   : > { %6957 = vmatprep.subr.mxu1 %v7520_v1 }
0x2130   : > { %6958 = vmatpush3.xpose.msk.msra.mxu1 %vm1321_vm2, %v4860_v19 }
0x2131   : > { %6980 = vmatprep.subr.mxu1 %v7520_v1 }
0x2133   : > { %6960 = vmatmul.mubr.msk.f32.vlgmr.msra.gmra.mxu1 %vm1321_vm2, %v4858_v22  ;;  %v6432_v22 = vld [vmem:[%s8734_s8 + $0x50] sm:$0xff] }
0x2134   : > { %6988 = vmatprep.mubr.msk.f32.mxu1 %vm7521_vm1, %v7520_v1  ;;  %6981 = vmatpush3.msra.mxu1 %v6426_v59 }
0x2135   : > { %6982 = vmatprep.subr.mxu1 %v7520_v1 }
0x2136   : > { %6983 = vmatpush3.msra.mxu1 %v6425_v7 }
0x2137   : > { %6984 = vmatprep.subr.mxu1 %v7520_v1 }
0x21eb   : > { %v4853_v20 = vpop.f32.mrf.mxu1 }
0x21ed   : > { %v6954_v23 = vpop.f32.mrf.mxu1 }
0x21ee   : > { %v6430_v23 = vld [vmem:[%s8734_s8 + $0x40] sm:$0xff] }
0x21f3   : > { %v4935_v26 = vpop.f32.mrf.mxu1 }
0x21f4   : > { %v4936_v27 = vadd.f32 %v4935_v26, %v8044_v39 }
0x21f5   : > { %v6961_v28 = vpop.f32.mrf.mxu1 }
0x21f6   : > { %v4939_v29 = vsel %vm1992_vm4, %v4936_v27, -inf }
0x21f7   : > { %4940 = vmax.xlane.f32.xlu0 %v4939_v29 }
0x220d   : > { %4952 = vrot.lane.b32.xlu0 %v8323_v11, %s8727_s4 }
0x2211   : > { %5030 = vrot.lane.b32.xlu0 %v4681_v58, %s8728_s11  ;;  %s8755_s11 = sld [smem:[#allocation50_spill]] }
0x2217   : > { %p8757_p8 = scmp.ne.s32.totalorder %s8755_s11, 0 }
0x2280   : > { %v4941_v30 = vpop.xlane.xlu0 %4940 }
0x2281   : > { %v4942_v32 = vsub.f32 %v4936_v27, %v4941_v30  ;;  %v6439_v30 = vld [vmem:[%s8736_s13 + $0x1] ss:$0 sm:$0xff] }
0x2283   : > { %v4943_v33 = vmul.f32 1.442695, %v4942_v32 }
0x2284   : > { %v4953_v31 = vpop.permute.xlu0 %4952 }
0x2285   : > { %7269 = vpow2.f32 %v4943_v33  ;;  %6963 = vmatpush3.msra.mxu0 %v4953_v31 }
0x2286   : > { %6964 = vmatprep.subr.mxu0 %v7520_v1 }
0x2288   : > { %v5031_v47 = vpop.permute.xlu0 %5030 }
0x2289   : > { %v5041_v49 = vsel %vm1321_vm2, %v8390_v57, %v5031_v47  ;;  %v5355_v47 = vld [vmem:[#allocation9] sm:$0xff] }
0x2292   : > { %v7270_v39 = vpop.eup %7269 }
0x2293   : > { %v4945_v36 = vsel %vm1992_vm4, %v7270_v39, 0.0 }
0x2294   : > { %4946 = vadd.xlane.f32.xlu1 %v4945_v36 }
0x22a5   : > { %4950 = vrot.lane.b32.xlu1 %v8329_v35, %s8727_s4  ;;  %v6417_v35 = vld [vmem:[%s8729_s2 + $0x28] sm:$0xff] }
0x22a9   : > { %5034 = vrot.lane.b32.xlu1 %v4853_v20, %s8730_s16  ;;  %v6431_v20 = vld [vmem:[%s8734_s8 + $0x48] sm:$0xff]  ;;  %s8754_s16 = sld [smem:[#allocation42_spill]] }
0x231d   : > { %v4947_v11 = vpop.xlane.xlu1 %4946 }
0x231e   : > { %7271 = vrcp.f32 %v4947_v11 }
0x2321   : > { %v4951_v37 = vpop.permute.xlu1 %4950 }
0x2322   : > { %6965 = vmatpush3.msra.mxu0 %v4951_v37 }
0x2323   : > { %6969 = vmatprep.subr.mxu0 %v7520_v1 }
0x2325   : > { %v5035_v48 = vpop.permute.xlu1 %5034 }
0x2326   : > { %v5042_v50 = vsel %vm1992_vm4, %v5041_v49, %v5035_v48  ;;  %v5531_v48 = vld [vmem:[%s8746_s21 + $0x8] sm:$0xff]  ;;  %v5530_v49 = vld [vmem:[%s8746_s21] sm:$0xff] }
0x232b   : > { %v7272_v38 = vpop.eup %7271 }
0x232c   : > { %v4949_v40 = vmul.f32 %v7272_v38, %v7270_v39 }
0x232e   : > { %6967 = vmatmul.mubr.msk.f32.vlgmr.msra.gmra.mxu0 %vm1992_vm4, %v4949_v40 }
0x232f   : > { %6977 = vmatprep.mubr.msk.f32.mxu0 %vm7521_vm1, %v7520_v1  ;;  %6970 = vmatpush3.msra.mxu0 %v6419_v42 }
0x2330   : > { %6971 = vmatprep.subr.mxu0 %v7520_v1 }
0x2331   : > { %6972 = vmatpush3.msra.mxu0 %v6418_v43  ;;  %v5358_v43 = vld [vmem:[#allocation9 + $0x18] sm:$0xff] }
0x2332   : > { %6973 = vmatprep.subr.mxu0 %v7520_v1 }
0x2333   : > { %6974 = vmatpush3.msra.mxu0 %v6417_v35  ;;  %v5357_v35 = vld [vmem:[#allocation9 + $0x10] sm:$0xff] }
0x2334   : > { %6975 = vmatprep.subr.mxu0 %v7520_v1 }
0x2335   : > { %6976 = vmatpush3.msra.mxu0 %v6416_v44  ;;  %v5533_v44 = vld [vmem:[%s8746_s21 + $0x18] sm:$0xff] }
0x2336   : > { %6991 = vmatprep.subr.mxu0 %v7520_v1 }
0x23ee   : > { %v5025_v45 = vpop.f32.mrf.mxu0 }
0x23ef   : > { %5038 = vrot.lane.b32.xlu0 %v5025_v45, %s8732_s3  ;;  %v5356_v45 = vld [vmem:[#allocation9 + $0x8] sm:$0xff]  ;;  %s8748_s3 = sld [smem:[#allocation40_spill]] }
0x23f0   : > { %v6968_v46 = vpop.f32.mrf.mxu0 }
0x23f1   : > { %v5532_v46 = vld [vmem:[%s8746_s21 + $0x10] sm:$0xff] }
0x2461   : > { %v5039_v51 = vpop.permute.xlu0 %5038 }
0x2462   : > { %v5043_v52 = vsel %vm1994_vm5, %v5042_v50, %v5039_v51  ;;  %v1175_v50 = vld [vmem:[%s7831_s28] sm:$0xff]  ;;  %s1162_s28 = scalar_lea.vmem %s8751_s26, %s8752_s1  ;;  %s7537_s26 = smov [#allocation11]  }
0x2463   : > { %6978 = vmatmul.mubr.msk.f32.vlgmr.msra.gmra.mxu0 %vm1182_vm0, %v5043_v52  ;;  %s7411_s1 = sshll.u32 %s7537_s26, 4  ;;  %s7412_s1 = int_to_ptr.vmem [resolvable:$false] %s7411_s1 }
0x2464   : > { %7007 = vmatprep.mubr.msk.f32.mxu0 %vm7521_vm1, %v7520_v1  ;;  %6992 = vmatpush3.msra.mxu0 %v6437_v61  ;;  %v6443_v61 = vld [vmem:[%s8748_s3] ss:$0 sm:$0xff] }
0x2465   : > { %6993 = vmatprep.subr.mxu0 %v7520_v1 }
0x2466   : > { %6994 = vmatpush3.msra.mxu0 %v6436_v0 }
0x2467   : > { %6995 = vmatprep.subr.mxu0 %v7520_v1 }
0x2468   : > { %6996 = vmatpush3.msra.mxu0 %v6435_v21 }
0x2469   : > { %6997 = vmatprep.subr.mxu0 %v7520_v1 }
0x246a   : > { %6998 = vmatpush3.msra.mxu0 %v6434_v2 }
0x246b   : > { %6999 = vmatprep.subr.mxu0 %v7520_v1 }
0x246c   : > { %7000 = vmatpush3.msra.mxu0 %v6433_v4 }
0x246d   : > { %7001 = vmatprep.subr.mxu0 %v7520_v1 }
0x246e   : > { %7002 = vmatpush3.msra.mxu0 %v6432_v22 }
0x246f   : > { %7003 = vmatprep.subr.mxu0 %v7520_v1 }
0x2470   : > { %7004 = vmatpush3.msra.mxu0 %v6431_v20 }
0x2471   : > { %7005 = vmatprep.subr.mxu0 %v7520_v1 }
0x2472   : > { %7006 = vmatpush3.msra.mxu0 %v6430_v23 }
0x2473   : > { %7032 = vmatprep.subr.mxu0 %v7520_v1 }
0x2523   : > { %v5126_v53 = vpop.f32.mrf.mxu0 }
0x2524   : > { %v5127_v54 = vadd.f32 %v6421_v25, %v5126_v53  ;;  %v5348_v53 = vrot.slane %v8307_v62, %v8190_v5  ;;  %v5449_v62 = vld [vmem:[%s8747_s25 + $0x8] sm:$0xff] }
0x2525   : > { %v6979_v55 = vpop.f32.mrf.mxu0 }
0x2526   : > { %v5130_v3 = vadd.f32 %v5127_v54, %v8316_v8  ;;  %v6424_v8 = vld [vmem:[%s8733_s5 + $0x28] sm:$0xff] }
0x2527   : > { %6985 = vmatpush3.msra.mxu1 %v6424_v8 }
0x2528   : > { %v5131_v41 = vsel %vm1182_vm0, %v5130_v3, 0.0  ;;  %6986 = vmatprep.subr.mxu1 %v7520_v1 }
0x2529   : > { %5132 = vadd.xlane.f32.xlu1 %v5131_v41  ;;  %6987 = vmatpush3.msra.mxu1 %v6423_v60 }
0x252a   : > { %7010 = vmatprep.subr.mxu1 %v7520_v1 }
0x25b2   : > { %v5133_v15 = vpop.xlane.xlu1 %5132 }
0x25b3   : > { %v5134_v56 = vmul.f32 0.03125, %v5133_v15 }
0x25b5   : > { %v5135_v57 = vsub.f32 %v5130_v3, %v5134_v56  ;;  %v5353_v3 = vrot.slane %v8310_v63, %v8190_v5  ;;  %v5451_v56 = vld [vmem:[%s8747_s25 + $0x18] sm:$0xff]  ;;  %v5448_v5 = vld [vmem:[%s8747_s25] sm:$0xff] }
0x25b6   : > { %v6445_v63 = vld [vmem:[%s7696_s17] ss:$0 sm:$0xff] }
0x25b7   : > { %v5136_v24 = vmul.f32 %v5135_v57, %v5135_v57 }
0x25b9   : > { %v5137_v58 = vsel %vm1182_vm0, %v5136_v24, 0.0 }
0x25ba   : > { %5138 = vadd.xlane.f32.xlu0 %v5137_v58 }
0x2643   : > { %v5139_v6 = vpop.xlane.xlu0 %5138 }
0x2644   : > { %v5140_v9 = vmul.f32 0.03125, %v5139_v6 }
0x2646   : > { %v5141_v10 = vadd.f32 1e-05, %v5140_v9 }
0x2648   : > { %7273 = vrsqrt.f32 %v5141_v10 }
0x2655   : > { %v7274_v17 = vpop.eup %7273 }
0x2656   : > { %v5143_v18 = vmul.f32 %v7274_v17, %v5135_v57  ;;  %v5450_v57 = vld [vmem:[%s8747_s25 + $0x10] sm:$0xff] }
0x2658   : > { %v5148_v14 = vmul.f32 %v5147_v16, %v5143_v18 }
0x265a   : > { %v5153_v19 = vadd.f32 %v5152_v13, %v5148_v14 }
0x265c   : > { %6989 = vmatmul.mubr.msk.f32.vlgmr.msra.gmra.mxu1 %vm1182_vm0, %v5153_v19 }
0x265d   : > { %7018 = vmatprep.mubr.msk.f32.mxu1 %vm7521_vm1, %v7520_v1  ;;  %7011 = vmatpush3.msra.mxu1 %v5358_v43 }
0x265e   : > { %7012 = vmatprep.subr.mxu1 %v7520_v1 }
0x265f   : > { %7013 = vmatpush3.msra.mxu1 %v5357_v35 }
0x2660   : > { %7014 = vmatprep.subr.mxu1 %v7520_v1 }
0x2661   : > { %7015 = vmatpush3.msra.mxu1 %v5356_v45 }
0x2662   : > { %7016 = vmatprep.subr.mxu1 %v7520_v1 }
0x2663   : > { %7017 = vmatpush3.msra.mxu1 %v5355_v47 }
0x2664   : > { %7021 = vmatprep.subr.mxu1 %v7520_v1 }
0x271c   : > { %v5236_v26 = vpop.f32.mrf.mxu1 }
0x271d   : > { %v5237_v27 = vadd.f32 %v6428_v34, %v5236_v26 }
0x271e   : > { %v6990_v28 = vpop.f32.mrf.mxu1 }
0x271f   : > { %v5240_v29 = vmax.f32 %v5237_v27, 0.0 }
0x2721   : > { %7008 = vmatmul.mubr.msk.f32.vlgmr.msra.gmra.mxu0 %vm3195_vm6, %v5240_v29 }
0x2722   : > { %7040 = vmatprep.mubr.msk.f32.mxu0 %vm7521_vm1, %v7520_v1  ;;  %7033 = vmatpush3.msra.mxu0 %v5533_v44 }
0x2723   : > { %7034 = vmatprep.subr.mxu0 %v7520_v1 }
0x2724   : > { %7035 = vmatpush3.msra.mxu0 %v5532_v46 }
0x2725   : > { %7036 = vmatprep.subr.mxu0 %v7520_v1 }
0x2726   : > { %7037 = vmatpush3.msra.mxu0 %v5531_v48 }
0x2727   : > { %7038 = vmatprep.subr.mxu0 %v7520_v1 }
0x2728   : > { %7039 = vmatpush3.msra.mxu0 %v5530_v49 }
0x2729   : > { %7041 = vmatmul.mubr.msk.f32.vlgmr.msra.gmra.mxu0 %vm1182_vm0, %v1175_v50  ;;  %7053 = vmatprep.subr.mxu0 %v7520_v1 }
0x272a   : > { %7055 = vmatprep.mubr.msk.f32.mxu0 %vm7521_vm1, %v7520_v1 }
0x27e1   : > { %v5327_v32 = vpop.f32.mrf.mxu0 }
0x27e2   : > { %v5328_v33 = vadd.f32 %v6439_v30, %v5327_v32 }
0x27e3   : > { %v7009_v31 = vpop.f32.mrf.mxu0 }
0x27e4   : > { %v5331_v39 = vadd.f32 %v5328_v33, %v5153_v19 }
0x27e6   : > { %v5332_v36 = vsel %vm1182_vm0, %v5331_v39, 0.0 }
0x27e7   : > { %5333 = vadd.xlane.f32.xlu0 %v5332_v36 }
0x27e9   : > { %v5610_v24 = vpop.f32.mrf.mxu0 }
0x27ea   : > { %v5611_v58 = vadd.f32 %v6445_v63, %v5610_v24  ;;  %v7536_v63 = vmov 0  }
0x27eb   : > { %v7042_v59 = vpop.f32.mrf.mxu0  ;;  %7197 = vset.pattern.permute.xlu1 %v7536_v63  ;;  %7198 = vset.pattern.permute.xlu0 %v7536_v63 }
0x27fd   : > { %5709 = vrot.lane.b32.xlu0 %v5611_v58, %s8740_s15 }
0x2801   : > { %5889 = vrot.lane.b32.xlu0 %v5611_v58, %s8726_s22 }
0x2870   : > { %v5334_v11 = vpop.xlane.xlu0 %5333 }
0x2871   : > { %v5335_v37 = vmul.f32 0.03125, %v5334_v11 }
0x2873   : > { %v5336_v38 = vsub.f32 %v5331_v39, %v5335_v37 }
0x2874   : > { %v5710_v6 = vpop.permute.xlu0 %5709 }
0x2875   : > { %v5337_v40 = vmul.f32 %v5336_v38, %v5336_v38 }
0x2877   : > { %v5338_v42 = vsel %vm1182_vm0, %v5337_v40, 0.0 }
0x2878   : > { %5339 = vadd.xlane.f32.xlu1 %v5338_v42  ;;  %v5890_v9 = vpop.permute.xlu0 %5889 }
0x2889   : > { %5799 = vrot.lane.b32.xlu1 %v5611_v58, %s8741_s19 }
0x2901   : > { %v5340_v51 = vpop.xlane.xlu1 %5339 }
0x2902   : > { %v5341_v52 = vmul.f32 0.03125, %v5340_v51 }
0x2904   : > { %v5342_v25 = vadd.f32 1e-05, %v5341_v52 }
0x2905   : > { %v5800_v7 = vpop.permute.xlu1 %5799 }
0x2906   : > { %7275 = vrsqrt.f32 %v5342_v25  ;;  %7054 = vmatpush3.xpose.msk.msra.mxu0 %vm1321_vm2, %v5800_v7 }
0x2907   : > { %7063 = vmatprep.subr.mxu0 %v7520_v1 }
0x2913   : > { %v7276_v54 = vpop.eup %7275 }
0x2914   : > { %v5344_v55 = vmul.f32 %v7276_v54, %v5336_v38 }
0x2916   : > { %v5349_v41 = vmul.f32 %v5348_v53, %v5344_v55 }
0x2918   : > { %v8509_v15 = vadd.f32 %v5353_v3, %v5349_v41  ;;  %v6456_v41 = vld [vmem:[%s7701_s12] ss:$0 sm:$0xff] }
0x291a   : > { %7019 = vmatmul.mubr.msk.f32.vlgmr.msra.gmra.mxu1 %vm1182_vm0, %v8509_v15 }
0x291b   : > { %7022 = vmatpush3.msra.mxu1 %v5451_v56  ;;  %7029 = vmatprep.mubr.msk.f32.mxu1 %vm7521_vm1, %v7520_v1 }
0x291c   : > { %7023 = vmatprep.subr.mxu1 %v7520_v1 }
0x291d   : > { %7024 = vmatpush3.msra.mxu1 %v5450_v57  ;;  %v6058_v57 = vmul.f32 %v6456_v41, %v8509_v15 }
0x291e   : > { %7025 = vmatprep.subr.mxu1 %v7520_v1 }
0x291f   : > { %7026 = vmatpush3.msra.mxu1 %v5449_v62  ;;  %v6059_v62 = vsel %vm1182_vm0, %v6058_v57, 0.0 }
0x2920   : > { %7027 = vmatprep.subr.mxu1 %v7520_v1 }
0x2921   : > { %7028 = vmatpush3.msra.mxu1 %v5448_v5  ;;  %v1176_v5 = vld [vmem:[%s1162_s28] sm:$0xff] }
0x2922   : > { %7030 = vmatmul.mubr.msk.f32.vlgmr.msra.gmra.mxu1 %vm1182_vm0, %v8509_v15  ;;  %7043 = vmatprep.subr.mxu1 %v7520_v1 }
0x2923   : > { %7045 = vmatprep.mubr.msk.f32.mxu1 %vm7521_vm1, %v7520_v1  ;;  %7044 = vmatpush3.xpose.msk.msra.mxu1 %vm1321_vm2, %v5611_v58 }
0x2924   : > { %7048 = vmatprep.subr.mxu1 %v7520_v1 }
0x29da   : > { %v8535_v8 = vpop.f32.mrf.mxu1 }
0x29dc   : > { %v7020_v60 = vpop.f32.mrf.mxu1 }
0x29dd   : > { %v6457_v60 = vld [vmem:[#allocation2] ss:$0 sm:$0xff] }
0x29e2   : > { %v5525_v0 = vpop.f32.mrf.mxu1 }
0x29e3   : > { %v5526_v21 = vadd.f32 %v6443_v61, %v5525_v0 }
0x29e4   : > { %v7031_v2 = vpop.f32.mrf.mxu1 }
0x29e5   : > { %v5529_v4 = vmul.f32 0.35355338, %v5526_v21 }
0x29e7   : > { %5887 = vrot.lane.b32.xlu0 %v5529_v4, %s8726_s22  ;;  %5707 = vrot.lane.b32.xlu1 %v5529_v4, %s8740_s15  ;;  %s1171_s15 = scalar_lea.vmem %s8749_s10, %s7849_s14  ;;  %s8753_s14 = sld [smem:[#allocation51_spill]] }
0x29e8   : > { %7046 = vmatmul.mubr.msk.f32.vlgmr.msra.gmra.mxu1 %vm1321_vm2, %v5529_v4  ;;  %v1179_v18 = vld [vmem:[%s1171_s15] sm:$0x1]  ;;  %s6459_s22 = sshll.u32 %s7732_s0, 7  ;;  %s7413_s0 = scalar_lea.vmem %s7412_s1, 256 }
0x29e9   : > { %7049 = vmatpush3.xpose.msk.msra.mxu1 %vm1321_vm2, %v5710_v6  ;;  %7050 = vmatprep.mubr.msk.f32.mxu1 %vm7521_vm1, %v7520_v1  ;;  %v1229_v13 = vsub.f32 1.0, %v1179_v18  ;;  %s6103_s10 = scalar_lea.hbm %s8754_s16, %s6459_s22 }
0x29ea   : > { %7058 = vmatprep.subr.mxu1 %v7520_v1 }
0x29eb   : > { %5797 = vrot.lane.b32.xlu1 %v5529_v4, %s8741_s19  ;;  %v1230_v14 = vmul.f32 -1e+09, %v1229_v13  ;;  %s8750_s19 = sld [smem:[#allocation38_spill]] }
0x29ed   : > { %v5618_v19 = vrot.slane %v1230_v14, %v7992_v12  ;;  %s8756_s4 = sshll.u32 %s8753_s14, 3  ;;  %s6092_s15 = scalar_lea.sflag [#allocation5], %s8753_s14 }
0x29ee   : > { %s1149_s7 = scalar_lea.vmem [#allocation11], %s8756_s4 }
0x29ef   : > { %s6105_s3 = sshll.u32 %s1149_s7, 4  ;;  %s6106_s3 = int_to_ptr.vmem [resolvable:$true] %s6105_s3 }
0x29f0   : > { %p7414_p0 = scmp.lt.s32.totalorder %s6106_s3, %s7412_s1 }
0x29f1   : > { %v6441_v54 = vld [vmem:[%s8750_s19] ss:$0 sm:$0xff]  ;;  %s7407_s19 = scalar_lea.vmem %s6106_s3, 128 }
0x29f2   : > { %v5436_v56 = vadd.f32 %v6441_v54, %v8535_v8  ;;  %p7408_p6 = scmp.ne.s32.totalorder %s6106_s3, %s7407_s19  ;;  %p7415_p3 = scmp.lt.s32.totalorder %s7413_s0, %s7407_s19 }
0x29f4   : > { %p7409_p12 = pnand %p7408_p6, %p8757_p8  ;;  %p7416_p7 = por %p7415_p3, %p7414_p0 }
0x29f6   : > { %p7410_p13 = pneg %p7409_p12 }
0x29f8   : > { %p7417_p1 = pnand %p7416_p7, %p7410_p13 }
0x2a59   : > { %v5708_v10 = vpop.permute.xlu1 %5707  ;;  %v5888_v16 = vpop.permute.xlu0 %5887 }
0x2a5a   : > { %7051 = vmatmul.mubr.msk.f32.vlgmr.msra.gmra.mxu1 %vm1321_vm2, %v5708_v10 }
0x2a5b   : > { %7059 = vmatpush3.xpose.msk.msra.mxu1 %vm1321_vm2, %v5890_v9  ;;  %7060 = vmatprep.mubr.msk.f32.mxu1 %vm7521_vm1, %v7520_v1 }
0x2a5d   : > { %v5798_v17 = vpop.permute.xlu1 %5797 }
0x2a5e   : > { %7056 = vmatmul.mubr.msk.f32.vlgmr.msra.gmra.mxu0 %vm1321_vm2, %v5798_v17  ;;  %7061 = vmatmul.mubr.msk.f32.vlgmr.msra.gmra.mxu1 %vm1321_vm2, %v5888_v16 }
0x2a5f   : > { %7065 = vmatprep.mubr.msk.f32.mxu0 %vm7521_vm1, %v7520_v1  ;;  %7064 = vmatpush3.msra.mxu0 %v1176_v5 }
0x2aa8   : > { %v5692_v22 = vpop.f32.mrf.mxu1 }
0x2aa9   : > { %v5693_v20 = vadd.f32 %v5692_v22, %v5618_v19 }
0x2aaa   : > { %v7047_v23 = vpop.f32.mrf.mxu1 }
0x2aab   : > { %v5696_v34 = vsel %vm1321_vm2, %v5693_v20, -inf }
0x2aac   : > { %5697 = vmax.xlane.f32.xlu1 %v5696_v34 }
0x2b1a   : > { %v5781_v26 = vpop.f32.mrf.mxu1 }
0x2b1b   : > { %v5782_v27 = vadd.f32 %v5781_v26, %v5618_v19 }
0x2b1c   : > { %v7052_v28 = vpop.f32.mrf.mxu1 }
0x2b1d   : > { %v5785_v29 = vsel %vm1321_vm2, %v5782_v27, -inf }
0x2b1e   : > { %v5871_v30 = vpop.f32.mrf.mxu0  ;;  %5786 = vmax.xlane.f32.xlu0 %v5785_v29  ;;  %v5961_v1 = vpop.f32.mrf.mxu1 }
0x2b1f   : > { %v5872_v32 = vadd.f32 %v5871_v30, %v5618_v19  ;;  %v5962_v33 = vadd.f32 %v5961_v1, %v5618_v19 }
0x2b20   : > { %v7057_v31 = vpop.f32.mrf.mxu0  ;;  %v7062_v39 = vpop.f32.mrf.mxu1 }
0x2b21   : > { %v5875_v12 = vsel %vm1321_vm2, %v5872_v32, -inf  ;;  %v5965_v36 = vsel %vm1321_vm2, %v5962_v33, -inf }
0x2b22   : > { %5876 = vmax.xlane.f32.xlu0 %v5875_v12  ;;  %5966 = vmax.xlane.f32.xlu1 %v5965_v36 }
0x2b35   : > { %v5698_v11 = vpop.xlane.xlu1 %5697 }
0x2b36   : > { %v5699_v37 = vsub.f32 %v5693_v20, %v5698_v11 }
0x2b38   : > { %v5700_v38 = vmul.f32 1.442695, %v5699_v37 }
0x2b3a   : > { %7277 = vpow2.f32 %v5700_v38 }
0x2b47   : > { %v7278_v40 = vpop.eup %7277 }
0x2b48   : > { %v5702_v42 = vsel %vm1321_vm2, %v7278_v40, 0.0 }
0x2b49   : > { %5703 = vadd.xlane.f32.xlu0 %v5702_v42 }
0x2ba7   : > { %v5787_v43 = vpop.xlane.xlu0 %5786 }
0x2ba8   : > { %v5788_v35 = vsub.f32 %v5782_v27, %v5787_v43 }
0x2baa   : > { %v5789_v44 = vmul.f32 1.442695, %v5788_v35 }
0x2bab   : > { %v5877_v45 = vpop.xlane.xlu0 %5876  ;;  %v5967_v46 = vpop.xlane.xlu1 %5966 }
0x2bac   : > { %7279 = vpow2.f32 %v5789_v44  ;;  %v5878_v47 = vsub.f32 %v5872_v32, %v5877_v45  ;;  %v5968_v48 = vsub.f32 %v5962_v33, %v5967_v46 }
0x2bae   : > { %v5879_v49 = vmul.f32 1.442695, %v5878_v47  ;;  %v5969_v50 = vmul.f32 1.442695, %v5968_v48 }
0x2bb0   : > { %7281 = vpow2.f32 %v5879_v49 }
0x2bb1   : > { %7283 = vpow2.f32 %v5969_v50 }
0x2bb9   : > { %v7280_v51 = vpop.eup %7279 }
0x2bba   : > { %v5791_v52 = vsel %vm1321_vm2, %v7280_v51, 0.0 }
0x2bbb   : > { %5792 = vadd.xlane.f32.xlu1 %v5791_v52 }
0x2bbd   : > { %v7282_v25 = vpop.eup %7281 }
0x2bbe   : > { %v7284_v53 = vpop.eup %7283  ;;  %v5881_v55 = vsel %vm1321_vm2, %v7282_v25, 0.0 }
0x2bbf   : > { %5882 = vadd.xlane.f32.xlu0 %v5881_v55  ;;  %v5971_v3 = vsel %vm1321_vm2, %v7284_v53, 0.0 }
0x2bc0   : > { %5972 = vadd.xlane.f32.xlu1 %v5971_v3 }
0x2bc3   : > { %5439 = vmax.xlane.f32.xlu0 %v5436_v56 }
0x2bc7   : > { %6060 = vadd.xlane.f32.xlu0 %v6059_v62 }
0x2bd2   : > { %v5704_v24 = vpop.xlane.xlu0 %5703 }
0x2bd3   : > { %7285 = vrcp.f32 %v5704_v24 }
0x2be0   : > { %v7286_v21 = vpop.eup %7285 }
0x2be1   : > { %v5706_v10 = vmul.f32 %v7286_v21, %v7278_v40 }
0x2c44   : > { %v5793_v58 = vpop.xlane.xlu1 %5792 }
0x2c45   : > { %7287 = vrcp.f32 %v5793_v58 }
0x2c48   : > { %v5883_v59 = vpop.xlane.xlu0 %5882 }
0x2c49   : > { %7289 = vrcp.f32 %v5883_v59  ;;  %v5973_v7 = vpop.xlane.xlu1 %5972 }
0x2c4a   : > { %7291 = vrcp.f32 %v5973_v7 }
0x2c4c   : > { %v5440_v15 = vpop.xlane.xlu0 %5439 }
0x2c4d   : > { %v5441_v8 = vsub.f32 %v5436_v56, %v5440_v15 }
0x2c4f   : > { %v5442_v61 = vmul.f32 1.442695, %v5441_v8 }
0x2c50   : > { %v6061_v0 = vpop.xlane.xlu0 %6060 }
0x2c51   : > { %7293 = vpow2.f32 %v5442_v61  ;;  %v6069_v2 = vadd.f32 %v6457_v60, %v6061_v0 }
0x2c52   : > { %v7288_v4 = vpop.eup %7287 }
0x2c53   : > { %v5795_v6 = vmul.f32 %v7288_v4, %v7280_v51  ;;  %v6070_v9 = vsub.f32 0.0, %v6069_v2 }
0x2c55   : > { %v6071_v16 = vmul.f32 1.442695, %v6070_v9  ;;  %v5796_v14 = vadd.f32 %v5795_v6, %v5706_v10 }
0x2c56   : > { %v7290_v17 = vpop.eup %7289 }
0x2c57   : > { %v7292_v18 = vpop.eup %7291  ;;  %v5885_v13 = vmul.f32 %v7290_v17, %v7282_v25  ;;  %7295 = vpow2.f32 %v6071_v16 }
0x2c58   : > { %v5975_v22 = vmul.f32 %v7292_v18, %v7284_v53 }
0x2c59   : > { %v5886_v19 = vadd.f32 %v5885_v13, %v5796_v14 }
0x2c5b   : > { %v5976_v20 = vadd.f32 %v5975_v22, %v5886_v19 }
0x2c5d   : > { %v5977_v23 = vmul.f32 0.25, %v5976_v20 }
0x2c5e   : > { %v7294_v34 = vpop.eup %7293 }
0x2c5f   : > { %5444 = vadd.xlane.f32.xlu1 %v7294_v34  ;;  %7066 = vmatmul.mubr.msk.f32.vlgmr.msra.gmra.mxu0 %vm1321_vm2, %v5977_v23 }
0x2c64   : > { %v7296_v26 = vpop.eup %7295 }
0x2c65   : > { %v6073_v27 = vadd.f32 1.0, %v7296_v26 }
0x2c67   : > { %7297 = vrcp.f32 %v6073_v27 }
0x2c74   : > { %v7298_v28 = vpop.eup %7297 }
0x2c75   : > { %6078 = vperm.xlu1 %7197, %v7298_v28   ;;  %v6082_v29 = vsub.f32 1.0, %v7298_v28 }
0x2c77   : > { %6085 = vperm.xlu0 %7198, %v6082_v29  }
0x2ce8   : > { %v5445_v30 = vpop.xlane.xlu1 %5444 }
0x2ce9   : > { %7299 = vrcp.f32 %v5445_v30 }
0x2cf0   : > { %v6079_v33 = vpop.permute.xlu1 %6078 }
0x2cf2   : > { %v6086_v31 = vpop.permute.xlu0 %6085 }
0x2cf6   : > { %v7300_v1 = vpop.eup %7299 }
0x2cf7   : > { %v5447_v32 = vmul.f32 %v7300_v1, %v7294_v34 }
0x2cf9   : > { %v6081_v12 = vmul.f32 %v6079_v33, %v5447_v32 }
0x2d1f   : > { %v6047_v39 = vpop.f32.mrf.mxu0 }
0x2d20   : > { %v6088_v36 = vmul.f32 %v6086_v31, %v6047_v39 }
0x2d21   : > { %v7067_v11 = vpop.f32.mrf.mxu0 }
0x2d22   : > { %v6089_v37 = vadd.f32 %v6088_v36, %v6081_v12 }
0x2d24   : > { %6090 = vst [vmem:[%s1149_s7] sm:$0xff] %v6089_v37 }
0x2d25   : > { %7420 = shalt.err (!%p7417_p1)
}
0x2d26   : > { %s7421_s28 = scalar_lea.hbm %s6103_s10, 128  ;;  %s7425_s14 = scalar_lea.hbm %s8754_s16, 256 }
0x2d27   : > { %p7422_p10 = scmp.ne.s32.totalorder %s6103_s10, %s7421_s28  ;;  %p7426_p2 = scmp.lt.s32.totalorder %s6103_s10, %s8754_s16 }
0x2d28   : > { %p7427_p9 = scmp.lt.s32.totalorder %s7425_s14, %s7421_s28 }
0x2d29   : > { %p7423_p11 = pnand %p7422_p10, %p8757_p8 }
0x2d2a   : > { %p7428_p4 = por %p7427_p9, %p7426_p2 }
0x2d2b   : > { %p7424_p5 = pneg %p7423_p11 }
0x2d2d   : > { %p7429_p6 = pnand %p7428_p4, %p7424_p5 }
0x2d2f   : > { %7432 = shalt.err (!%p7429_p6)
}
0x2d30   : > { %7082 = dma.vmem_to_hbm [thread:$0]  (%p8757_p8), %s6106_s3, 128, %s6103_s10, %s6092_s15  }
0x2d31 PF: > { %s8758_s22 = sld [smem:[#allocation43_spill]] }
0x2d32   : > { %s8759_s4 = sld [smem:[#allocation47_spill]] }
0x2d33   : > { %s8760_s7 = sld [smem:[#allocation46_spill]] }
0x2d37   : > { %s6117_s19 = sand.u32 1, %s8758_s22  }
0x2d38   : > { %p8761_p12 = scmp.ne.s32.totalorder %s8759_s4, 0  ;;  %s6118_s26 = scalar_lea.sflag [#allocation5], %s6117_s19 }
0x2d39   : > { %p8762_p13 = scmp.ge.s32.totalorder %s8760_s7, 2 }
0x2d3b   : > { %p7099_p0 = pnand %p8762_p13, %p8761_p12 }
0x2d3d   : > { %p7100_p3 = pneg %p7099_p0 }
0x2d3f   : > { %7462 = dma.done.wait (%p7100_p3), %s6118_s26, 128  }
0x2d40   : > { %7464 = vsyncadd (%p7100_p3), %s6118_s26, 4294967168  ;;  %s8763_s15 = sld [smem:[#allocation48_spill]] }
0x2d41   : > { %s8764_s7 = sld [smem:[#allocation44_spill]] }
0x2d42   : > { %s8765_s10 = sld [smem:[#allocation45_spill]] }
0x2d43   : > { %s8766_s11 = sld [smem:[#allocation49_spill]] }
0x2d46   : > { %p84_p7 = scmp.ge.s32.totalorder %s8763_s15, 4  }
0x2d48   :  { %86 = sbr.rel (!%p84_p7) target bundleno = 76 (0x4c), region = 276 }
0x2d4d   :  { %6123 = vsyncpa [#allocation4], 1 }
0x2d4e   :  { %6125 = vsyncpa [#allocation4 + $0x1], 1 }
0x2d4f   :  { %6126 = vsyncpa [#allocation7], 1 }
0x2d50   :  { %6127 = vsyncpa [#allocation10], 1 }
0x2d51   :  { %6128 = vsyncpa [#allocation5], 1 }
0x2d52   :  { %6130 = vsyncpa [#allocation5 + $0x1], 1 }

</bundles_post_ra>
